<compile_context>
chip_gen: v7x
topology: tpu7x:2x2x1
jax: 0.10.0
libtpu: 0.0.40
codegen_flags: <defaults>
</compile_context>

<pallas_src>
import functools

import numpy as np
import jax
import jax.numpy as jnp
from jax.experimental import pallas as pl
from jax.experimental.pallas import tpu as pltpu


def _apply_activation(h, name):
    if name == "identity":            # module default: nn.Identity()
        return h
    if name == "relu":
        return jnp.maximum(h, 0.0)
    if name == "tanh":
        return jnp.tanh(h)
    raise ValueError(f"unsupported activation: {name!r}")


def _round_up(x, m):
    return (x + m - 1) // m * m


def _vmem_capacity_bytes():
    """Physical VMEM per TensorCore; falls back to the v7x 64 MiB floor."""
    try:
        cap = getattr(pltpu.get_tpu_info(), "vmem_capacity_bytes", None)
        if cap:
            return int(cap)
    except Exception:
        pass
    return 64 * 1024 * 1024


def _convnet_kernel(*refs, num_layers, kernel_size, pad, tb, seg, seq_valid,
                    seq_pad, activation, mxu_dtype):
    """Fused Conv1d(+folded BN)(+activation) stack for TB batch rows.

    In-kernel layout is sequence-major (rows = sequence, cols = channels):
    channels ride the 128-wide lane axis, the sequence rides sublanes, so
    each conv tap is one big (M, Cin) @ (Cin, Cout) MXU matmul and the tap
    shift is a cheap sublane-offset read from a zero-haloed f32 scratch.
    TB batch rows are concatenated (each in its own `seg`-row segment with a
    `pad`-row zero halo top and bottom); output rows that straddle two
    segments are computed but never stored.
    """
    x_ref = refs[0]                                   # (TB, Cin, Spad)
    wb_refs = refs[1:1 + 2 * num_layers]              # (w, b) per layer
    out_ref = refs[1 + 2 * num_layers]                # (TB, Cout, Spad)
    buf_in = refs[2 + 2 * num_layers]                 # (TB*seg, Cin)  f32
    mids = refs[3 + 2 * num_layers:]                  # (TB*seg, Cout) f32 x n

    M = tb * seg - 2 * pad        # conv-output rows produced per tap matmul

    # ---- zero the rows the taps may read but that are never written this
    # step: per-segment halos (the module's implicit "same" zero padding)
    # and, for the intermediate buffers, the lane-padding tail
    # [seq_valid, Spad) so layer l+1 sees zeros there exactly like the
    # reference length-`seq_valid` convolution does.
    if pad > 0:
        z_in = jnp.zeros((pad, buf_in.shape[1]), jnp.float32)
        for r in range(tb):
            buf_in[pl.ds(r * seg, pad), :] = z_in                    # top halo
            buf_in[pl.ds(r * seg + pad + seq_pad, pad), :] = z_in    # bottom halo
    tail = seg - pad - seq_valid   # padded-tail columns + bottom halo
    for mid in mids:
        if pad > 0:
            z_halo = jnp.zeros((pad, mid.shape[1]), jnp.float32)
            for r in range(tb):
                mid[pl.ds(r * seg, pad), :] = z_halo
        if tail > 0:
            z_tail = jnp.zeros((tail, mid.shape[1]), jnp.float32)
            for r in range(tb):
                mid[pl.ds(r * seg + pad + seq_valid, tail), :] = z_tail

    # ---- stage the TB batch rows sequence-major.  The per-row transpose is
    # XLU work expected to hide under the K*num_layers MXU matmuls below
    # (2 XLUs vs. the much larger matmul stream); if a bundle dump shows XLU
    # saturating for a given C/S, fold it into the first matmul via
    # lax.dot_general operand transposition instead of materializing it.
    for r in range(tb):
        buf_in[pl.ds(r * seg + pad, seq_pad), :] = x_ref[r].T.astype(jnp.float32)

    def conv_bn(src_ref, w_ref, b_ref):
        # src_ref: (TB*seg, Cin) zero-haloed f32 activations
        # w_ref:   (K, Cin, Cout) BN-folded weights (mxu_dtype operands)
        # b_ref:   (1, Cout)      BN-folded bias (f32)
        acc = jnp.dot(src_ref[pl.ds(0, M), :].astype(mxu_dtype), w_ref[0],
                      preferred_element_type=jnp.float32)
        for k in range(1, kernel_size):               # static, fully unrolled
            acc = acc + jnp.dot(src_ref[pl.ds(k, M), :].astype(mxu_dtype),
                                w_ref[k], preferred_element_type=jnp.float32)
        return acc + b_ref[...]                       # (M, Cout) f32

    src = buf_in
    for li in range(num_layers):
        w_ref, b_ref = wb_refs[2 * li], wb_refs[2 * li + 1]
        h = _apply_activation(conv_bn(src, w_ref, b_ref), activation)
        if li == num_layers - 1:
            # Lane-dense store: out block last dim = Spad (multiple of 128).
            for r in range(tb):
                out_ref[r] = h[r * seg:r * seg + seq_pad, :].T.astype(out_ref.dtype)
        else:
            dst = mids[li % len(mids)]                # ping-pong intermediates
            for r in range(tb):
                dst[pl.ds(r * seg + pad, seq_valid), :] = \
                    h[r * seg:r * seg + seq_valid, :]
            src = dst


def sodium_encoder_convnet(x, params, *, activation="identity",
                           mxu_dtype=jnp.bfloat16, eps=1e-5, batch_tile=None):
    """Forward pass of SodiumEncoderConvnet (eval-mode BatchNorm folded in).

    x:      (batch, input_features, sequence) float32
    params: {"layers": [{"w","b","gamma","beta","running_mean","running_var"}]}
            with "w" in the PyTorch Conv1d layout (out_ch, in_ch, kernel).
    mxu_dtype: MXU operand dtype.  bf16 (default) = native MXU rate with f32
            accumulation; pass jnp.float32 for bit-accurate verification.
    Returns (batch, output_features, sequence) with x.dtype.
    """
    # TODO(synk): training-mode BatchNorm (batch statistics + running-stat
    # updates) is not computed in-kernel; this implements eval() semantics.
    batch, c_in, seq = x.shape
    layers = params["layers"]
    num_layers = len(layers)
    c_out, _, ksize = layers[0]["w"].shape
    pad = (ksize - 1) // 2
    assert ksize % 2 == 1, "kernel_size must be odd for 'same' padding"
    # The halo / scratch math assumes a uniform stack (the module guarantees
    # it); assert instead of silently mis-computing.
    for i, layer in enumerate(layers):
        o, ci, kk = layer["w"].shape
        assert kk == ksize and o == c_out and ci == (c_in if i == 0 else c_out)

    # Lane-dense tiles: pad the sequence to a multiple of 128 so the input
    # DMAs and (especially) the output stores are full-lane.  The padded
    # columns are sliced off before returning.
    seq_pad = _round_up(seq, 128)
    seg = seq_pad + 2 * pad
    n_mid = min(num_layers - 1, 2)

    w_itemsize = jnp.dtype(mxu_dtype).itemsize
    io_itemsize = x.dtype.itemsize
    weight_bytes = sum(
        ksize * (c_in if i == 0 else c_out) * c_out * w_itemsize + c_out * 4
        for i in range(num_layers))

    def step_vmem_bytes(tb_):
        scratch = tb_ * seg * (c_in + n_mid * c_out) * 4          # f32 scratch
        io = 2 * tb_ * seq_pad * (c_in + c_out) * io_itemsize     # dbl-buffered
        return scratch + io + weight_bytes

    cap = _vmem_capacity_bytes()
    if batch_tile is None:
        # Fill the MXU M dimension (target ~512 rows per tap matmul) while
        # keeping >= 4 grid steps (>= 2 per v7x TensorCore) when the batch
        # allows it, and staying inside ~55% of the per-core VMEM.
        tb = max(1, min(batch, 512 // seq_pad))
        tb = min(tb, max(1, batch // 4))
        while tb > 1 and step_vmem_bytes(tb) > int(0.55 * cap):
            tb -= 1
    else:
        tb = int(batch_tile)
    tb = max(1, min(tb, batch))
    # TODO(synk): add a sequence-tile grid axis (with a num_layers*pad-deep
    # recomputed halo) for sequences so long that even tb=1 busts the budget.

    b_pad = _round_up(batch, tb)
    grid = (b_pad // tb,)

    x_p = x
    if b_pad != batch or seq_pad != seq:
        x_p = jnp.pad(x, ((0, b_pad - batch), (0, 0), (0, seq_pad - seq)))

    # Fold eval-mode BatchNorm into each conv's weight/bias (one-time
    # O(K*Cin*Cout) wrapper transform); the kernel body is pure
    # matmul + bias + activation.  Weights cast to the MXU operand dtype.
    operands = [x_p]
    for layer in layers:
        w, b = layer["w"], layer["b"]                 # (Cout, Cin, K), (Cout,)
        scale = layer["gamma"] / jnp.sqrt(layer["running_var"] + eps)
        w_f = (jnp.transpose(w, (2, 1, 0)) * scale[None, None, :]).astype(mxu_dtype)
        b_f = ((b - layer["running_mean"]) * scale + layer["beta"])[None, :]
        operands += [w_f, b_f.astype(jnp.float32)]

    kernel = functools.partial(
        _convnet_kernel, num_layers=num_layers, kernel_size=ksize, pad=pad,
        tb=tb, seg=seg, seq_valid=seq, seq_pad=seq_pad, activation=activation,
        mxu_dtype=mxu_dtype)

    flops = sum(2 * batch * seq * ksize * (c_in if i == 0 else c_out) * c_out
                for i in range(num_layers))
    transcendentals = batch * seq * c_out * num_layers if activation == "tanh" else 0
    bytes_accessed = (batch * (c_in + c_out) * seq) * io_itemsize + weight_bytes
    cost = pl.CostEstimate(flops=flops, transcendentals=transcendentals,
                           bytes_accessed=bytes_accessed)

    required = step_vmem_bytes(tb)
    vmem_limit = min(int(0.85 * cap), max(32 * 1024 * 1024, int(1.5 * required)))

    def call(single_buffer_consts):
        # Constant weight/bias blocks: single-buffer them (their index_map
        # never changes, so double-buffering only wastes VMEM).
        const_kw = ({"pipeline_mode": pl.Buffered(1)}
                    if single_buffer_consts else {})
        in_specs = [pl.BlockSpec((tb, c_in, seq_pad), lambda b: (b, 0, 0))]
        for w_f, b_f in zip(operands[1::2], operands[2::2]):
            kk, ci, co = w_f.shape
            in_specs += [
                pl.BlockSpec((kk, ci, co), lambda b: (0, 0, 0), **const_kw),
                pl.BlockSpec((1, co), lambda b: (0, 0), **const_kw),
            ]
        return pl.pallas_call(
            kernel,
            out_shape=jax.ShapeDtypeStruct((b_pad, c_out, seq_pad), x.dtype),
            grid=grid,
            in_specs=in_specs,
            out_specs=pl.BlockSpec((tb, c_out, seq_pad), lambda b: (b, 0, 0)),
            scratch_shapes=(
                [pltpu.VMEM((tb * seg, c_in), jnp.float32)]
                + [pltpu.VMEM((tb * seg, c_out), jnp.float32)] * n_mid),
            compiler_params=pltpu.CompilerParams(
                dimension_semantics=("parallel",),   # batch tiles independent
                vmem_limit_bytes=vmem_limit),
            cost_estimate=cost,
        )(*operands)

    try:
        out_padded = call(True)
    except Exception:
        # Fallback for jax versions whose TPU pallas_call does not accept
        # pipeline_mode on input BlockSpecs: identical kernel, default
        # (double-buffered) constant blocks.
        out_padded = call(False)

    # Slice off lane / batch padding (padded rows & columns are garbage by
    # construction and must never be exposed to the caller).
    return out_padded[:batch, :, :seq]


# --------------- pure-JAX reference (mirrors the PyTorch module) ---------------
def reference_forward(x, params, *, activation="identity", eps=1e-5):
    """Conv1d -> eval-mode BatchNorm1d -> activation, stacked."""
    h = x.astype(jnp.float32)
    batch, _, seq = x.shape
    for layer in params["layers"]:
        w, b = layer["w"], layer["b"]                 # (Cout, Cin, K), (Cout,)
        ksize = w.shape[2]
        pad = (ksize - 1) // 2
        hp = jnp.pad(h, ((0, 0), (0, 0), (pad, pad)))
        y = jnp.zeros((batch, w.shape[0], seq), jnp.float32)
        for k in range(ksize):
            y = y + jnp.einsum("oi,bis->bos", w[:, :, k], hp[:, :, k:k + seq],
                               precision=jax.lax.Precision.HIGHEST)
        y = y + b[None, :, None]
        scale = layer["gamma"] / jnp.sqrt(layer["running_var"] + eps)
        y = (y - layer["running_mean"][None, :, None]) * scale[None, :, None] \
            + layer["beta"][None, :, None]
        h = _apply_activation(y, activation)
    return h


def init_params(key, num_convolutions, input_features, output_features, kernel_size):
    """Deterministic synthetic Conv1d + BatchNorm1d parameters (PyTorch layouts)."""
    layers = []
    for i, k in enumerate(jax.random.split(key, num_convolutions)):
        c_in = input_features if i == 0 else output_features
        kw, kb, kg, kbe, km, kv = jax.random.split(k, 6)
        bound = 1.0 / np.sqrt(c_in * kernel_size)       # PyTorch Conv1d init bound
        layers.append({
            "w": jax.random.uniform(kw, (output_features, c_in, kernel_size),
                                    jnp.float32, -bound, bound),
            "b": jax.random.uniform(kb, (output_features,), jnp.float32,
                                    -bound, bound),
            "gamma": jax.random.uniform(kg, (output_features,), jnp.float32,
                                        0.8, 1.2),
            "beta": 0.1 * jax.random.normal(kbe, (output_features,), jnp.float32),
            "running_mean": 0.1 * jax.random.normal(km, (output_features,),
                                                    jnp.float32),
            "running_var": jax.random.uniform(kv, (output_features,), jnp.float32,
                                              0.5, 1.5),
        })
    return {"layers": layers}


if __name__ == "__main__":
    # Small shapes consistent with the module (defaults: 256->256, k=5, 3 convs).
    BATCH, IN_FEAT, OUT_FEAT, SEQ, KSIZE, N_CONV = 2, 48, 64, 32, 5, 3
    key = jax.random.PRNGKey(0)
    k_x, k_p = jax.random.split(key)
    x = jax.random.normal(k_x, (BATCH, IN_FEAT, SEQ), jnp.float32)
    params = init_params(k_p, N_CONV, IN_FEAT, OUT_FEAT, KSIZE)

    ref = reference_forward(x, params)

    # Default path: bf16 MXU operands, f32 accumulation.  Loose tolerance
    # bound against the reference (bf16 error compounds over 3 layers).
    out = jax.block_until_ready(sodium_encoder_convnet(x, params))
    assert out.shape == (BATCH, OUT_FEAT, SEQ) and out.dtype == x.dtype
    np.testing.assert_allclose(np.asarray(out), np.asarray(ref),
                               rtol=5e-2, atol=5e-2)

    # f32 verification path: tight check against the pure-JAX reference.
    out_f32 = jax.block_until_ready(
        sodium_encoder_convnet(x, params, mxu_dtype=jnp.float32))
    np.testing.assert_allclose(np.asarray(out_f32), np.asarray(ref),
                               rtol=2e-4, atol=2e-4)

    # Batch-stacked path (2 rows per grid step -> one big matmul per tap)
    # with relu, bf16 operands: exercises the multi-segment halo logic.
    ref_relu = reference_forward(x, params, activation="relu")
    out_tb2 = jax.block_until_ready(
        sodium_encoder_convnet(x, params, activation="relu", batch_tile=2))
    np.testing.assert_allclose(np.asarray(out_tb2), np.asarray(ref_relu),
                               rtol=5e-2, atol=5e-2)

    print("KERNEL_OK")
</pallas_src>

<mosaic_0001>
module attributes {stable_mosaic.version = 11 : i64} {
  func.func @_convnet_kernel(%arg0: i32, %arg1: memref<1x48x128xf32, #tpu.memory_space<vmem>>, %arg2: memref<5x48x64xbf16, #tpu.memory_space<vmem>>, %arg3: memref<1x64xf32, #tpu.memory_space<vmem>>, %arg4: memref<5x64x64xbf16, #tpu.memory_space<vmem>>, %arg5: memref<1x64xf32, #tpu.memory_space<vmem>>, %arg6: memref<5x64x64xbf16, #tpu.memory_space<vmem>>, %arg7: memref<1x64xf32, #tpu.memory_space<vmem>>, %arg8: memref<1x64x128xf32, #tpu.memory_space<vmem>>, %arg9: memref<132x48xf32, #tpu.memory_space<vmem>>, %arg10: memref<132x64xf32, #tpu.memory_space<vmem>>, %arg11: memref<132x64xf32, #tpu.memory_space<vmem>>) attributes {dimension_semantics = [#tpu.dimension_semantics<parallel>], iteration_bounds = array<i64: 2>, scalar_prefetch = 0 : i64, scratch_operands = 3 : i64, tpu.core_type = #tpu.core_type<tc>, window_params = [{transform_indices = @transform_0, window_bounds = array<i64: 1, 48, 128>}, {pipeline_mode = #tpu.pipeline_mode<synchronous>, transform_indices = @transform_1, window_bounds = array<i64: 5, 48, 64>}, {pipeline_mode = #tpu.pipeline_mode<synchronous>, transform_indices = @transform_2, window_bounds = array<i64: 1, 64>}, {pipeline_mode = #tpu.pipeline_mode<synchronous>, transform_indices = @transform_3, window_bounds = array<i64: 5, 64, 64>}, {pipeline_mode = #tpu.pipeline_mode<synchronous>, transform_indices = @transform_4, window_bounds = array<i64: 1, 64>}, {pipeline_mode = #tpu.pipeline_mode<synchronous>, transform_indices = @transform_5, window_bounds = array<i64: 5, 64, 64>}, {pipeline_mode = #tpu.pipeline_mode<synchronous>, transform_indices = @transform_6, window_bounds = array<i64: 1, 64>}, {transform_indices = @transform_7, window_bounds = array<i64: 1, 64, 128>}]} {
    %cst = arith.constant 0.000000e+00 : f32
    %0 = vector.broadcast %cst : f32 to vector<2x48xf32>
    %c0 = arith.constant 0 : index
    %c0_0 = arith.constant 0 : index
    %1 = vector.load %arg9[%c0, %c0_0] : memref<132x48xf32, #tpu.memory_space<vmem>>, vector<2x48xf32>
    tpu.vector_store %arg9[%c0, %c0_0], %0 {strides = array<i32>} : memref<132x48xf32, #tpu.memory_space<vmem>>, vector<2x48xf32>,
    %c130 = arith.constant 130 : index
    %c0_1 = arith.constant 0 : index
    %2 = vector.load %arg9[%c130, %c0_1] : memref<132x48xf32, #tpu.memory_space<vmem>>, vector<2x48xf32>
    tpu.vector_store %arg9[%c130, %c0_1], %0 {strides = array<i32>} : memref<132x48xf32, #tpu.memory_space<vmem>>, vector<2x48xf32>,
    %cst_2 = arith.constant 0.000000e+00 : f32
    %3 = vector.broadcast %cst_2 : f32 to vector<2x64xf32>
    %c0_3 = arith.constant 0 : index
    %c0_4 = arith.constant 0 : index
    %4 = vector.load %arg10[%c0_3, %c0_4] : memref<132x64xf32, #tpu.memory_space<vmem>>, vector<2x64xf32>
    tpu.vector_store %arg10[%c0_3, %c0_4], %3 {strides = array<i32>} : memref<132x64xf32, #tpu.memory_space<vmem>>, vector<2x64xf32>,
    %cst_5 = arith.constant 0.000000e+00 : f32
    %5 = vector.broadcast %cst_5 : f32 to vector<98x64xf32>
    %c34 = arith.constant 34 : index
    %c0_6 = arith.constant 0 : index
    %6 = vector.load %arg10[%c34, %c0_6] : memref<132x64xf32, #tpu.memory_space<vmem>>, vector<98x64xf32>
    tpu.vector_store %arg10[%c34, %c0_6], %5 {strides = array<i32>} : memref<132x64xf32, #tpu.memory_space<vmem>>, vector<98x64xf32>,
    %cst_7 = arith.constant 0.000000e+00 : f32
    %7 = vector.broadcast %cst_7 : f32 to vector<2x64xf32>
    %c0_8 = arith.constant 0 : index
    %c0_9 = arith.constant 0 : index
    %8 = vector.load %arg11[%c0_8, %c0_9] : memref<132x64xf32, #tpu.memory_space<vmem>>, vector<2x64xf32>
    tpu.vector_store %arg11[%c0_8, %c0_9], %7 {strides = array<i32>} : memref<132x64xf32, #tpu.memory_space<vmem>>, vector<2x64xf32>,
    %cst_10 = arith.constant 0.000000e+00 : f32
    %9 = vector.broadcast %cst_10 : f32 to vector<98x64xf32>
    %c34_11 = arith.constant 34 : index
    %c0_12 = arith.constant 0 : index
    %10 = vector.load %arg11[%c34_11, %c0_12] : memref<132x64xf32, #tpu.memory_space<vmem>>, vector<98x64xf32>
    tpu.vector_store %arg11[%c34_11, %c0_12], %9 {strides = array<i32>} : memref<132x64xf32, #tpu.memory_space<vmem>>, vector<98x64xf32>,
    %c0_13 = arith.constant 0 : index
    %c0_14 = arith.constant 0 : index
    %c0_15 = arith.constant 0 : index
    %11 = vector.load %arg1[%c0_13, %c0_14, %c0_15] : memref<1x48x128xf32, #tpu.memory_space<vmem>>, vector<1x48x128xf32>
    %12 = vector.shape_cast %11 : vector<1x48x128xf32> to vector<48x128xf32>
    %13 = tpu.transpose %12, [1, 0] : vector<48x128xf32> -> vector<128x48xf32>
    %c2 = arith.constant 2 : index
    %c0_16 = arith.constant 0 : index
    %14 = vector.load %arg9[%c2, %c0_16] : memref<132x48xf32, #tpu.memory_space<vmem>>, vector<128x48xf32>
    tpu.vector_store %arg9[%c2, %c0_16], %13 {strides = array<i32>} : memref<132x48xf32, #tpu.memory_space<vmem>>, vector<128x48xf32>,
    %c0_17 = arith.constant 0 : index
    %c0_18 = arith.constant 0 : index
    %15 = vector.load %arg9[%c0_17, %c0_18] : memref<132x48xf32, #tpu.memory_space<vmem>>, vector<128x48xf32>
    %16 = arith.truncf %15 : vector<128x48xf32> to vector<128x48xbf16>
    %c0_19 = arith.constant 0 : index
    %c0_20 = arith.constant 0 : index
    %c0_21 = arith.constant 0 : index
    %17 = vector.load %arg2[%c0_19, %c0_20, %c0_21] : memref<5x48x64xbf16, #tpu.memory_space<vmem>>, vector<1x48x64xbf16>
    %18 = vector.shape_cast %17 : vector<1x48x64xbf16> to vector<48x64xbf16>
    %cst_22 = arith.constant dense<0.000000e+00> : vector<128x64xf32>
    %19 = tpu.matmul %16, %18, %cst_22 {dimension_numbers = #tpu.dot_dimension_numbers<[1], [0], [0], [1], [0, 0, 1, 1], [], []>} : vector<128x48xbf16>, vector<48x64xbf16>, vector<128x64xf32> -> vector<128x64xf32>
    %c1 = arith.constant 1 : index
    %c0_23 = arith.constant 0 : index
    %20 = vector.load %arg9[%c1, %c0_23] : memref<132x48xf32, #tpu.memory_space<vmem>>, vector<128x48xf32>
    %21 = arith.truncf %20 : vector<128x48xf32> to vector<128x48xbf16>
    %c1_24 = arith.constant 1 : index
    %c0_25 = arith.constant 0 : index
    %c0_26 = arith.constant 0 : index
    %22 = vector.load %arg2[%c1_24, %c0_25, %c0_26] : memref<5x48x64xbf16, #tpu.memory_space<vmem>>, vector<1x48x64xbf16>
    %23 = vector.shape_cast %22 : vector<1x48x64xbf16> to vector<48x64xbf16>
    %cst_27 = arith.constant dense<0.000000e+00> : vector<128x64xf32>
    %24 = tpu.matmul %21, %23, %cst_27 {dimension_numbers = #tpu.dot_dimension_numbers<[1], [0], [0], [1], [0, 0, 1, 1], [], []>} : vector<128x48xbf16>, vector<48x64xbf16>, vector<128x64xf32> -> vector<128x64xf32>
    %25 = arith.addf %19, %24 : vector<128x64xf32>
    %c2_28 = arith.constant 2 : index
    %c0_29 = arith.constant 0 : index
    %26 = vector.load %arg9[%c2_28, %c0_29] : memref<132x48xf32, #tpu.memory_space<vmem>>, vector<128x48xf32>
    %27 = arith.truncf %26 : vector<128x48xf32> to vector<128x48xbf16>
    %c2_30 = arith.constant 2 : index
    %c0_31 = arith.constant 0 : index
    %c0_32 = arith.constant 0 : index
    %28 = vector.load %arg2[%c2_30, %c0_31, %c0_32] : memref<5x48x64xbf16, #tpu.memory_space<vmem>>, vector<1x48x64xbf16>
    %29 = vector.shape_cast %28 : vector<1x48x64xbf16> to vector<48x64xbf16>
    %cst_33 = arith.constant dense<0.000000e+00> : vector<128x64xf32>
    %30 = tpu.matmul %27, %29, %cst_33 {dimension_numbers = #tpu.dot_dimension_numbers<[1], [0], [0], [1], [0, 0, 1, 1], [], []>} : vector<128x48xbf16>, vector<48x64xbf16>, vector<128x64xf32> -> vector<128x64xf32>
    %31 = arith.addf %25, %30 : vector<128x64xf32>
    %c3 = arith.constant 3 : index
    %c0_34 = arith.constant 0 : index
    %32 = vector.load %arg9[%c3, %c0_34] : memref<132x48xf32, #tpu.memory_space<vmem>>, vector<128x48xf32>
    %33 = arith.truncf %32 : vector<128x48xf32> to vector<128x48xbf16>
    %c3_35 = arith.constant 3 : index
    %c0_36 = arith.constant 0 : index
    %c0_37 = arith.constant 0 : index
    %34 = vector.load %arg2[%c3_35, %c0_36, %c0_37] : memref<5x48x64xbf16, #tpu.memory_space<vmem>>, vector<1x48x64xbf16>
    %35 = vector.shape_cast %34 : vector<1x48x64xbf16> to vector<48x64xbf16>
    %cst_38 = arith.constant dense<0.000000e+00> : vector<128x64xf32>
    %36 = tpu.matmul %33, %35, %cst_38 {dimension_numbers = #tpu.dot_dimension_numbers<[1], [0], [0], [1], [0, 0, 1, 1], [], []>} : vector<128x48xbf16>, vector<48x64xbf16>, vector<128x64xf32> -> vector<128x64xf32>
    %37 = arith.addf %31, %36 : vector<128x64xf32>
    %c4 = arith.constant 4 : index
    %c0_39 = arith.constant 0 : index
    %38 = vector.load %arg9[%c4, %c0_39] : memref<132x48xf32, #tpu.memory_space<vmem>>, vector<128x48xf32>
    %39 = arith.truncf %38 : vector<128x48xf32> to vector<128x48xbf16>
    %c4_40 = arith.constant 4 : index
    %c0_41 = arith.constant 0 : index
    %c0_42 = arith.constant 0 : index
    %40 = vector.load %arg2[%c4_40, %c0_41, %c0_42] : memref<5x48x64xbf16, #tpu.memory_space<vmem>>, vector<1x48x64xbf16>
    %41 = vector.shape_cast %40 : vector<1x48x64xbf16> to vector<48x64xbf16>
    %cst_43 = arith.constant dense<0.000000e+00> : vector<128x64xf32>
    %42 = tpu.matmul %39, %41, %cst_43 {dimension_numbers = #tpu.dot_dimension_numbers<[1], [0], [0], [1], [0, 0, 1, 1], [], []>} : vector<128x48xbf16>, vector<48x64xbf16>, vector<128x64xf32> -> vector<128x64xf32>
    %43 = arith.addf %37, %42 : vector<128x64xf32>
    %c0_44 = arith.constant 0 : index
    %c0_45 = arith.constant 0 : index
    %44 = vector.load %arg3[%c0_44, %c0_45] : memref<1x64xf32, #tpu.memory_space<vmem>>, vector<1x64xf32>
    %45 = vector.broadcast %44 : vector<1x64xf32> to vector<128x64xf32>
    %46 = arith.addf %43, %45 : vector<128x64xf32>
    %47 = vector.extract_strided_slice %46 {offsets = [0, 0], sizes = [32, 64], strides = [1, 1]} : vector<128x64xf32> to vector<32x64xf32>
    %c2_46 = arith.constant 2 : index
    %c0_47 = arith.constant 0 : index
    %48 = vector.load %arg10[%c2_46, %c0_47] : memref<132x64xf32, #tpu.memory_space<vmem>>, vector<32x64xf32>
    tpu.vector_store %arg10[%c2_46, %c0_47], %47 {strides = array<i32>} : memref<132x64xf32, #tpu.memory_space<vmem>>, vector<32x64xf32>,
    %c0_48 = arith.constant 0 : index
    %c0_49 = arith.constant 0 : index
    %49 = vector.load %arg10[%c0_48, %c0_49] : memref<132x64xf32, #tpu.memory_space<vmem>>, vector<128x64xf32>
    %50 = arith.truncf %49 : vector<128x64xf32> to vector<128x64xbf16>
    %c0_50 = arith.constant 0 : index
    %c0_51 = arith.constant 0 : index
    %c0_52 = arith.constant 0 : index
    %51 = vector.load %arg4[%c0_50, %c0_51, %c0_52] : memref<5x64x64xbf16, #tpu.memory_space<vmem>>, vector<1x64x64xbf16>
    %52 = vector.shape_cast %51 : vector<1x64x64xbf16> to vector<64x64xbf16>
    %cst_53 = arith.constant dense<0.000000e+00> : vector<128x64xf32>
    %53 = tpu.matmul %50, %52, %cst_53 {dimension_numbers = #tpu.dot_dimension_numbers<[1], [0], [0], [1], [0, 0, 1, 1], [], []>} : vector<128x64xbf16>, vector<64x64xbf16>, vector<128x64xf32> -> vector<128x64xf32>
    %c1_54 = arith.constant 1 : index
    %c0_55 = arith.constant 0 : index
    %54 = vector.load %arg10[%c1_54, %c0_55] : memref<132x64xf32, #tpu.memory_space<vmem>>, vector<128x64xf32>
    %55 = arith.truncf %54 : vector<128x64xf32> to vector<128x64xbf16>
    %c1_56 = arith.constant 1 : index
    %c0_57 = arith.constant 0 : index
    %c0_58 = arith.constant 0 : index
    %56 = vector.load %arg4[%c1_56, %c0_57, %c0_58] : memref<5x64x64xbf16, #tpu.memory_space<vmem>>, vector<1x64x64xbf16>
    %57 = vector.shape_cast %56 : vector<1x64x64xbf16> to vector<64x64xbf16>
    %cst_59 = arith.constant dense<0.000000e+00> : vector<128x64xf32>
    %58 = tpu.matmul %55, %57, %cst_59 {dimension_numbers = #tpu.dot_dimension_numbers<[1], [0], [0], [1], [0, 0, 1, 1], [], []>} : vector<128x64xbf16>, vector<64x64xbf16>, vector<128x64xf32> -> vector<128x64xf32>
    %59 = arith.addf %53, %58 : vector<128x64xf32>
    %c2_60 = arith.constant 2 : index
    %c0_61 = arith.constant 0 : index
    %60 = vector.load %arg10[%c2_60, %c0_61] : memref<132x64xf32, #tpu.memory_space<vmem>>, vector<128x64xf32>
    %61 = arith.truncf %60 : vector<128x64xf32> to vector<128x64xbf16>
    %c2_62 = arith.constant 2 : index
    %c0_63 = arith.constant 0 : index
    %c0_64 = arith.constant 0 : index
    %62 = vector.load %arg4[%c2_62, %c0_63, %c0_64] : memref<5x64x64xbf16, #tpu.memory_space<vmem>>, vector<1x64x64xbf16>
    %63 = vector.shape_cast %62 : vector<1x64x64xbf16> to vector<64x64xbf16>
    %cst_65 = arith.constant dense<0.000000e+00> : vector<128x64xf32>
    %64 = tpu.matmul %61, %63, %cst_65 {dimension_numbers = #tpu.dot_dimension_numbers<[1], [0], [0], [1], [0, 0, 1, 1], [], []>} : vector<128x64xbf16>, vector<64x64xbf16>, vector<128x64xf32> -> vector<128x64xf32>
    %65 = arith.addf %59, %64 : vector<128x64xf32>
    %c3_66 = arith.constant 3 : index
    %c0_67 = arith.constant 0 : index
    %66 = vector.load %arg10[%c3_66, %c0_67] : memref<132x64xf32, #tpu.memory_space<vmem>>, vector<128x64xf32>
    %67 = arith.truncf %66 : vector<128x64xf32> to vector<128x64xbf16>
    %c3_68 = arith.constant 3 : index
    %c0_69 = arith.constant 0 : index
    %c0_70 = arith.constant 0 : index
    %68 = vector.load %arg4[%c3_68, %c0_69, %c0_70] : memref<5x64x64xbf16, #tpu.memory_space<vmem>>, vector<1x64x64xbf16>
    %69 = vector.shape_cast %68 : vector<1x64x64xbf16> to vector<64x64xbf16>
    %cst_71 = arith.constant dense<0.000000e+00> : vector<128x64xf32>
    %70 = tpu.matmul %67, %69, %cst_71 {dimension_numbers = #tpu.dot_dimension_numbers<[1], [0], [0], [1], [0, 0, 1, 1], [], []>} : vector<128x64xbf16>, vector<64x64xbf16>, vector<128x64xf32> -> vector<128x64xf32>
    %71 = arith.addf %65, %70 : vector<128x64xf32>
    %c4_72 = arith.constant 4 : index
    %c0_73 = arith.constant 0 : index
    %72 = vector.load %arg10[%c4_72, %c0_73] : memref<132x64xf32, #tpu.memory_space<vmem>>, vector<128x64xf32>
    %73 = arith.truncf %72 : vector<128x64xf32> to vector<128x64xbf16>
    %c4_74 = arith.constant 4 : index
    %c0_75 = arith.constant 0 : index
    %c0_76 = arith.constant 0 : index
    %74 = vector.load %arg4[%c4_74, %c0_75, %c0_76] : memref<5x64x64xbf16, #tpu.memory_space<vmem>>, vector<1x64x64xbf16>
    %75 = vector.shape_cast %74 : vector<1x64x64xbf16> to vector<64x64xbf16>
    %cst_77 = arith.constant dense<0.000000e+00> : vector<128x64xf32>
    %76 = tpu.matmul %73, %75, %cst_77 {dimension_numbers = #tpu.dot_dimension_numbers<[1], [0], [0], [1], [0, 0, 1, 1], [], []>} : vector<128x64xbf16>, vector<64x64xbf16>, vector<128x64xf32> -> vector<128x64xf32>
    %77 = arith.addf %71, %76 : vector<128x64xf32>
    %c0_78 = arith.constant 0 : index
    %c0_79 = arith.constant 0 : index
    %78 = vector.load %arg5[%c0_78, %c0_79] : memref<1x64xf32, #tpu.memory_space<vmem>>, vector<1x64xf32>
    %79 = vector.broadcast %78 : vector<1x64xf32> to vector<128x64xf32>
    %80 = arith.addf %77, %79 : vector<128x64xf32>
    %81 = vector.extract_strided_slice %80 {offsets = [0, 0], sizes = [32, 64], strides = [1, 1]} : vector<128x64xf32> to vector<32x64xf32>
    %c2_80 = arith.constant 2 : index
    %c0_81 = arith.constant 0 : index
    %82 = vector.load %arg11[%c2_80, %c0_81] : memref<132x64xf32, #tpu.memory_space<vmem>>, vector<32x64xf32>
    tpu.vector_store %arg11[%c2_80, %c0_81], %81 {strides = array<i32>} : memref<132x64xf32, #tpu.memory_space<vmem>>, vector<32x64xf32>,
    %c0_82 = arith.constant 0 : index
    %c0_83 = arith.constant 0 : index
    %83 = vector.load %arg11[%c0_82, %c0_83] : memref<132x64xf32, #tpu.memory_space<vmem>>, vector<128x64xf32>
    %84 = arith.truncf %83 : vector<128x64xf32> to vector<128x64xbf16>
    %c0_84 = arith.constant 0 : index
    %c0_85 = arith.constant 0 : index
    %c0_86 = arith.constant 0 : index
    %85 = vector.load %arg6[%c0_84, %c0_85, %c0_86] : memref<5x64x64xbf16, #tpu.memory_space<vmem>>, vector<1x64x64xbf16>
    %86 = vector.shape_cast %85 : vector<1x64x64xbf16> to vector<64x64xbf16>
    %cst_87 = arith.constant dense<0.000000e+00> : vector<128x64xf32>
    %87 = tpu.matmul %84, %86, %cst_87 {dimension_numbers = #tpu.dot_dimension_numbers<[1], [0], [0], [1], [0, 0, 1, 1], [], []>} : vector<128x64xbf16>, vector<64x64xbf16>, vector<128x64xf32> -> vector<128x64xf32>
    %c1_88 = arith.constant 1 : index
    %c0_89 = arith.constant 0 : index
    %88 = vector.load %arg11[%c1_88, %c0_89] : memref<132x64xf32, #tpu.memory_space<vmem>>, vector<128x64xf32>
    %89 = arith.truncf %88 : vector<128x64xf32> to vector<128x64xbf16>
    %c1_90 = arith.constant 1 : index
    %c0_91 = arith.constant 0 : index
    %c0_92 = arith.constant 0 : index
    %90 = vector.load %arg6[%c1_90, %c0_91, %c0_92] : memref<5x64x64xbf16, #tpu.memory_space<vmem>>, vector<1x64x64xbf16>
    %91 = vector.shape_cast %90 : vector<1x64x64xbf16> to vector<64x64xbf16>
    %cst_93 = arith.constant dense<0.000000e+00> : vector<128x64xf32>
    %92 = tpu.matmul %89, %91, %cst_93 {dimension_numbers = #tpu.dot_dimension_numbers<[1], [0], [0], [1], [0, 0, 1, 1], [], []>} : vector<128x64xbf16>, vector<64x64xbf16>, vector<128x64xf32> -> vector<128x64xf32>
    %93 = arith.addf %87, %92 : vector<128x64xf32>
    %c2_94 = arith.constant 2 : index
    %c0_95 = arith.constant 0 : index
    %94 = vector.load %arg11[%c2_94, %c0_95] : memref<132x64xf32, #tpu.memory_space<vmem>>, vector<128x64xf32>
    %95 = arith.truncf %94 : vector<128x64xf32> to vector<128x64xbf16>
    %c2_96 = arith.constant 2 : index
    %c0_97 = arith.constant 0 : index
    %c0_98 = arith.constant 0 : index
    %96 = vector.load %arg6[%c2_96, %c0_97, %c0_98] : memref<5x64x64xbf16, #tpu.memory_space<vmem>>, vector<1x64x64xbf16>
    %97 = vector.shape_cast %96 : vector<1x64x64xbf16> to vector<64x64xbf16>
    %cst_99 = arith.constant dense<0.000000e+00> : vector<128x64xf32>
    %98 = tpu.matmul %95, %97, %cst_99 {dimension_numbers = #tpu.dot_dimension_numbers<[1], [0], [0], [1], [0, 0, 1, 1], [], []>} : vector<128x64xbf16>, vector<64x64xbf16>, vector<128x64xf32> -> vector<128x64xf32>
    %99 = arith.addf %93, %98 : vector<128x64xf32>
    %c3_100 = arith.constant 3 : index
    %c0_101 = arith.constant 0 : index
    %100 = vector.load %arg11[%c3_100, %c0_101] : memref<132x64xf32, #tpu.memory_space<vmem>>, vector<128x64xf32>
    %101 = arith.truncf %100 : vector<128x64xf32> to vector<128x64xbf16>
    %c3_102 = arith.constant 3 : index
    %c0_103 = arith.constant 0 : index
    %c0_104 = arith.constant 0 : index
    %102 = vector.load %arg6[%c3_102, %c0_103, %c0_104] : memref<5x64x64xbf16, #tpu.memory_space<vmem>>, vector<1x64x64xbf16>
    %103 = vector.shape_cast %102 : vector<1x64x64xbf16> to vector<64x64xbf16>
    %cst_105 = arith.constant dense<0.000000e+00> : vector<128x64xf32>
    %104 = tpu.matmul %101, %103, %cst_105 {dimension_numbers = #tpu.dot_dimension_numbers<[1], [0], [0], [1], [0, 0, 1, 1], [], []>} : vector<128x64xbf16>, vector<64x64xbf16>, vector<128x64xf32> -> vector<128x64xf32>
    %105 = arith.addf %99, %104 : vector<128x64xf32>
    %c4_106 = arith.constant 4 : index
    %c0_107 = arith.constant 0 : index
    %106 = vector.load %arg11[%c4_106, %c0_107] : memref<132x64xf32, #tpu.memory_space<vmem>>, vector<128x64xf32>
    %107 = arith.truncf %106 : vector<128x64xf32> to vector<128x64xbf16>
    %c4_108 = arith.constant 4 : index
    %c0_109 = arith.constant 0 : index
    %c0_110 = arith.constant 0 : index
    %108 = vector.load %arg6[%c4_108, %c0_109, %c0_110] : memref<5x64x64xbf16, #tpu.memory_space<vmem>>, vector<1x64x64xbf16>
    %109 = vector.shape_cast %108 : vector<1x64x64xbf16> to vector<64x64xbf16>
    %cst_111 = arith.constant dense<0.000000e+00> : vector<128x64xf32>
    %110 = tpu.matmul %107, %109, %cst_111 {dimension_numbers = #tpu.dot_dimension_numbers<[1], [0], [0], [1], [0, 0, 1, 1], [], []>} : vector<128x64xbf16>, vector<64x64xbf16>, vector<128x64xf32> -> vector<128x64xf32>
    %111 = arith.addf %105, %110 : vector<128x64xf32>
    %c0_112 = arith.constant 0 : index
    %c0_113 = arith.constant 0 : index
    %112 = vector.load %arg7[%c0_112, %c0_113] : memref<1x64xf32, #tpu.memory_space<vmem>>, vector<1x64xf32>
    %113 = vector.broadcast %112 : vector<1x64xf32> to vector<128x64xf32>
    %114 = arith.addf %111, %113 : vector<128x64xf32>
    %115 = tpu.transpose %114, [1, 0] : vector<128x64xf32> -> vector<64x128xf32>
    %c0_114 = arith.constant 0 : index
    %c0_115 = arith.constant 0 : index
    %c0_116 = arith.constant 0 : index
    %116 = vector.load %arg8[%c0_114, %c0_115, %c0_116] : memref<1x64x128xf32, #tpu.memory_space<vmem>>, vector<1x64x128xf32>
    %117 = vector.shape_cast %116 : vector<1x64x128xf32> to vector<64x128xf32>
    %118 = vector.shape_cast %115 : vector<64x128xf32> to vector<1x64x128xf32>
    tpu.vector_store %arg8[%c0_114, %c0_115, %c0_116], %118 {strides = array<i32>} : memref<1x64x128xf32, #tpu.memory_space<vmem>>, vector<1x64x128xf32>,
    return
  }
  func.func @transform_0(%arg0: i32) -> (i32, i32, i32) {
    %c0_i32 = arith.constant 0 : i32
    %c0_i32_0 = arith.constant 0 : i32
    %c0_i32_1 = arith.constant 0 : i32
    return %arg0, %c0_i32, %c0_i32_0 : i32, i32, i32
  }
  func.func @transform_1(%arg0: i32) -> (i32, i32, i32) {
    %c0_i32 = arith.constant 0 : i32
    %c0_i32_0 = arith.constant 0 : i32
    %c0_i32_1 = arith.constant 0 : i32
    %c0_i32_2 = arith.constant 0 : i32
    return %c0_i32, %c0_i32_0, %c0_i32_1 : i32, i32, i32
  }
  func.func @transform_2(%arg0: i32) -> (i32, i32) {
    %c0_i32 = arith.constant 0 : i32
    %c0_i32_0 = arith.constant 0 : i32
    %c0_i32_1 = arith.constant 0 : i32
    return %c0_i32, %c0_i32_0 : i32, i32
  }
  func.func @transform_3(%arg0: i32) -> (i32, i32, i32) {
    %c0_i32 = arith.constant 0 : i32
    %c0_i32_0 = arith.constant 0 : i32
    %c0_i32_1 = arith.constant 0 : i32
    %c0_i32_2 = arith.constant 0 : i32
    return %c0_i32, %c0_i32_0, %c0_i32_1 : i32, i32, i32
  }
  func.func @transform_4(%arg0: i32) -> (i32, i32) {
    %c0_i32 = arith.constant 0 : i32
    %c0_i32_0 = arith.constant 0 : i32
    %c0_i32_1 = arith.constant 0 : i32
    return %c0_i32, %c0_i32_0 : i32, i32
  }
  func.func @transform_5(%arg0: i32) -> (i32, i32, i32) {
    %c0_i32 = arith.constant 0 : i32
    %c0_i32_0 = arith.constant 0 : i32
    %c0_i32_1 = arith.constant 0 : i32
    %c0_i32_2 = arith.constant 0 : i32
    return %c0_i32, %c0_i32_0, %c0_i32_1 : i32, i32, i32
  }
  func.func @transform_6(%arg0: i32) -> (i32, i32) {
    %c0_i32 = arith.constant 0 : i32
    %c0_i32_0 = arith.constant 0 : i32
    %c0_i32_1 = arith.constant 0 : i32
    return %c0_i32, %c0_i32_0 : i32, i32
  }
  func.func @transform_7(%arg0: i32) -> (i32, i32, i32) {
    %c0_i32 = arith.constant 0 : i32
    %c0_i32_0 = arith.constant 0 : i32
    %c0_i32_1 = arith.constant 0 : i32
    return %arg0, %c0_i32, %c0_i32_0 : i32, i32, i32
  }
}

module attributes {stable_mosaic.version = 11 : i64} {
  func.func @_convnet_kernel(%arg0: i32, %arg1: memref<1x48x128xf32, #tpu.memory_space<vmem>>, %arg2: memref<5x48x64xbf16, #tpu.memory_space<vmem>>, %arg3: memref<1x64xf32, #tpu.memory_space<vmem>>, %arg4: memref<5x64x64xbf16, #tpu.memory_space<vmem>>, %arg5: memref<1x64xf32, #tpu.memory_space<vmem>>, %arg6: memref<5x64x64xbf16, #tpu.memory_space<vmem>>, %arg7: memref<1x64xf32, #tpu.memory_space<vmem>>, %arg8: memref<1x64x128xf32, #tpu.memory_space<vmem>>, %arg9: memref<132x48xf32, #tpu.memory_space<vmem>>, %arg10: memref<132x64xf32, #tpu.memory_space<vmem>>, %arg11: memref<132x64xf32, #tpu.memory_space<vmem>>) attributes {dimension_semantics = [#tpu.dimension_semantics<parallel>], iteration_bounds = array<i64: 2>, scalar_prefetch = 0 : i64, scratch_operands = 3 : i64, tpu.core_type = #tpu.core_type<tc>, window_params = [{transform_indices = @transform_0, window_bounds = array<i64: 1, 48, 128>}, {pipeline_mode = #tpu.pipeline_mode<synchronous>, transform_indices = @transform_1, window_bounds = array<i64: 5, 48, 64>}, {pipeline_mode = #tpu.pipeline_mode<synchronous>, transform_indices = @transform_2, window_bounds = array<i64: 1, 64>}, {pipeline_mode = #tpu.pipeline_mode<synchronous>, transform_indices = @transform_3, window_bounds = array<i64: 5, 64, 64>}, {pipeline_mode = #tpu.pipeline_mode<synchronous>, transform_indices = @transform_4, window_bounds = array<i64: 1, 64>}, {pipeline_mode = #tpu.pipeline_mode<synchronous>, transform_indices = @transform_5, window_bounds = array<i64: 5, 64, 64>}, {pipeline_mode = #tpu.pipeline_mode<synchronous>, transform_indices = @transform_6, window_bounds = array<i64: 1, 64>}, {transform_indices = @transform_7, window_bounds = array<i64: 1, 64, 128>}]} {
    %cst = arith.constant 0.000000e+00 : f32
    %0 = vector.broadcast %cst : f32 to vector<2x48xf32>
    %c0 = arith.constant 0 : index
    %c0_0 = arith.constant 0 : index
    %1 = vector.load %arg9[%c0, %c0_0] : memref<132x48xf32, #tpu.memory_space<vmem>>, vector<2x48xf32>
    tpu.vector_store %arg9[%c0, %c0_0], %0 {strides = array<i32>} : memref<132x48xf32, #tpu.memory_space<vmem>>, vector<2x48xf32>,
    %c130 = arith.constant 130 : index
    %c0_1 = arith.constant 0 : index
    %2 = vector.load %arg9[%c130, %c0_1] : memref<132x48xf32, #tpu.memory_space<vmem>>, vector<2x48xf32>
    tpu.vector_store %arg9[%c130, %c0_1], %0 {strides = array<i32>} : memref<132x48xf32, #tpu.memory_space<vmem>>, vector<2x48xf32>,
    %cst_2 = arith.constant 0.000000e+00 : f32
    %3 = vector.broadcast %cst_2 : f32 to vector<2x64xf32>
    %c0_3 = arith.constant 0 : index
    %c0_4 = arith.constant 0 : index
    %4 = vector.load %arg10[%c0_3, %c0_4] : memref<132x64xf32, #tpu.memory_space<vmem>>, vector<2x64xf32>
    tpu.vector_store %arg10[%c0_3, %c0_4], %3 {strides = array<i32>} : memref<132x64xf32, #tpu.memory_space<vmem>>, vector<2x64xf32>,
    %cst_5 = arith.constant 0.000000e+00 : f32
    %5 = vector.broadcast %cst_5 : f32 to vector<98x64xf32>
    %c34 = arith.constant 34 : index
    %c0_6 = arith.constant 0 : index
    %6 = vector.load %arg10[%c34, %c0_6] : memref<132x64xf32, #tpu.memory_space<vmem>>, vector<98x64xf32>
    tpu.vector_store %arg10[%c34, %c0_6], %5 {strides = array<i32>} : memref<132x64xf32, #tpu.memory_space<vmem>>, vector<98x64xf32>,
    %cst_7 = arith.constant 0.000000e+00 : f32
    %7 = vector.broadcast %cst_7 : f32 to vector<2x64xf32>
    %c0_8 = arith.constant 0 : index
    %c0_9 = arith.constant 0 : index
    %8 = vector.load %arg11[%c0_8, %c0_9] : memref<132x64xf32, #tpu.memory_space<vmem>>, vector<2x64xf32>
    tpu.vector_store %arg11[%c0_8, %c0_9], %7 {strides = array<i32>} : memref<132x64xf32, #tpu.memory_space<vmem>>, vector<2x64xf32>,
    %cst_10 = arith.constant 0.000000e+00 : f32
    %9 = vector.broadcast %cst_10 : f32 to vector<98x64xf32>
    %c34_11 = arith.constant 34 : index
    %c0_12 = arith.constant 0 : index
    %10 = vector.load %arg11[%c34_11, %c0_12] : memref<132x64xf32, #tpu.memory_space<vmem>>, vector<98x64xf32>
    tpu.vector_store %arg11[%c34_11, %c0_12], %9 {strides = array<i32>} : memref<132x64xf32, #tpu.memory_space<vmem>>, vector<98x64xf32>,
    %c0_13 = arith.constant 0 : index
    %c0_14 = arith.constant 0 : index
    %c0_15 = arith.constant 0 : index
    %11 = vector.load %arg1[%c0_13, %c0_14, %c0_15] : memref<1x48x128xf32, #tpu.memory_space<vmem>>, vector<1x48x128xf32>
    %12 = vector.shape_cast %11 : vector<1x48x128xf32> to vector<48x128xf32>
    %13 = tpu.transpose %12, [1, 0] : vector<48x128xf32> -> vector<128x48xf32>
    %c2 = arith.constant 2 : index
    %c0_16 = arith.constant 0 : index
    %14 = vector.load %arg9[%c2, %c0_16] : memref<132x48xf32, #tpu.memory_space<vmem>>, vector<128x48xf32>
    tpu.vector_store %arg9[%c2, %c0_16], %13 {strides = array<i32>} : memref<132x48xf32, #tpu.memory_space<vmem>>, vector<128x48xf32>,
    %c0_17 = arith.constant 0 : index
    %c0_18 = arith.constant 0 : index
    %15 = vector.load %arg9[%c0_17, %c0_18] : memref<132x48xf32, #tpu.memory_space<vmem>>, vector<128x48xf32>
    %16 = arith.truncf %15 : vector<128x48xf32> to vector<128x48xbf16>
    %c0_19 = arith.constant 0 : index
    %c0_20 = arith.constant 0 : index
    %c0_21 = arith.constant 0 : index
    %17 = vector.load %arg2[%c0_19, %c0_20, %c0_21] : memref<5x48x64xbf16, #tpu.memory_space<vmem>>, vector<1x48x64xbf16>
    %18 = vector.shape_cast %17 : vector<1x48x64xbf16> to vector<48x64xbf16>
    %cst_22 = arith.constant dense<0.000000e+00> : vector<128x64xf32>
    %19 = tpu.matmul %16, %18, %cst_22 {dimension_numbers = #tpu.dot_dimension_numbers<[1], [0], [0], [1], [0, 0, 1, 1], [], []>} : vector<128x48xbf16>, vector<48x64xbf16>, vector<128x64xf32> -> vector<128x64xf32>
    %c1 = arith.constant 1 : index
    %c0_23 = arith.constant 0 : index
    %20 = vector.load %arg9[%c1, %c0_23] : memref<132x48xf32, #tpu.memory_space<vmem>>, vector<128x48xf32>
    %21 = arith.truncf %20 : vector<128x48xf32> to vector<128x48xbf16>
    %c1_24 = arith.constant 1 : index
    %c0_25 = arith.constant 0 : index
    %c0_26 = arith.constant 0 : index
    %22 = vector.load %arg2[%c1_24, %c0_25, %c0_26] : memref<5x48x64xbf16, #tpu.memory_space<vmem>>, vector<1x48x64xbf16>
    %23 = vector.shape_cast %22 : vector<1x48x64xbf16> to vector<48x64xbf16>
    %cst_27 = arith.constant dense<0.000000e+00> : vector<128x64xf32>
    %24 = tpu.matmul %21, %23, %cst_27 {dimension_numbers = #tpu.dot_dimension_numbers<[1], [0], [0], [1], [0, 0, 1, 1], [], []>} : vector<128x48xbf16>, vector<48x64xbf16>, vector<128x64xf32> -> vector<128x64xf32>
    %25 = arith.addf %19, %24 : vector<128x64xf32>
    %c2_28 = arith.constant 2 : index
    %c0_29 = arith.constant 0 : index
    %26 = vector.load %arg9[%c2_28, %c0_29] : memref<132x48xf32, #tpu.memory_space<vmem>>, vector<128x48xf32>
    %27 = arith.truncf %26 : vector<128x48xf32> to vector<128x48xbf16>
    %c2_30 = arith.constant 2 : index
    %c0_31 = arith.constant 0 : index
    %c0_32 = arith.constant 0 : index
    %28 = vector.load %arg2[%c2_30, %c0_31, %c0_32] : memref<5x48x64xbf16, #tpu.memory_space<vmem>>, vector<1x48x64xbf16>
    %29 = vector.shape_cast %28 : vector<1x48x64xbf16> to vector<48x64xbf16>
    %cst_33 = arith.constant dense<0.000000e+00> : vector<128x64xf32>
    %30 = tpu.matmul %27, %29, %cst_33 {dimension_numbers = #tpu.dot_dimension_numbers<[1], [0], [0], [1], [0, 0, 1, 1], [], []>} : vector<128x48xbf16>, vector<48x64xbf16>, vector<128x64xf32> -> vector<128x64xf32>
    %31 = arith.addf %25, %30 : vector<128x64xf32>
    %c3 = arith.constant 3 : index
    %c0_34 = arith.constant 0 : index
    %32 = vector.load %arg9[%c3, %c0_34] : memref<132x48xf32, #tpu.memory_space<vmem>>, vector<128x48xf32>
    %33 = arith.truncf %32 : vector<128x48xf32> to vector<128x48xbf16>
    %c3_35 = arith.constant 3 : index
    %c0_36 = arith.constant 0 : index
    %c0_37 = arith.constant 0 : index
    %34 = vector.load %arg2[%c3_35, %c0_36, %c0_37] : memref<5x48x64xbf16, #tpu.memory_space<vmem>>, vector<1x48x64xbf16>
    %35 = vector.shape_cast %34 : vector<1x48x64xbf16> to vector<48x64xbf16>
    %cst_38 = arith.constant dense<0.000000e+00> : vector<128x64xf32>
    %36 = tpu.matmul %33, %35, %cst_38 {dimension_numbers = #tpu.dot_dimension_numbers<[1], [0], [0], [1], [0, 0, 1, 1], [], []>} : vector<128x48xbf16>, vector<48x64xbf16>, vector<128x64xf32> -> vector<128x64xf32>
    %37 = arith.addf %31, %36 : vector<128x64xf32>
    %c4 = arith.constant 4 : index
    %c0_39 = arith.constant 0 : index
    %38 = vector.load %arg9[%c4, %c0_39] : memref<132x48xf32, #tpu.memory_space<vmem>>, vector<128x48xf32>
    %39 = arith.truncf %38 : vector<128x48xf32> to vector<128x48xbf16>
    %c4_40 = arith.constant 4 : index
    %c0_41 = arith.constant 0 : index
    %c0_42 = arith.constant 0 : index
    %40 = vector.load %arg2[%c4_40, %c0_41, %c0_42] : memref<5x48x64xbf16, #tpu.memory_space<vmem>>, vector<1x48x64xbf16>
    %41 = vector.shape_cast %40 : vector<1x48x64xbf16> to vector<48x64xbf16>
    %cst_43 = arith.constant dense<0.000000e+00> : vector<128x64xf32>
    %42 = tpu.matmul %39, %41, %cst_43 {dimension_numbers = #tpu.dot_dimension_numbers<[1], [0], [0], [1], [0, 0, 1, 1], [], []>} : vector<128x48xbf16>, vector<48x64xbf16>, vector<128x64xf32> -> vector<128x64xf32>
    %43 = arith.addf %37, %42 : vector<128x64xf32>
    %c0_44 = arith.constant 0 : index
    %c0_45 = arith.constant 0 : index
    %44 = vector.load %arg3[%c0_44, %c0_45] : memref<1x64xf32, #tpu.memory_space<vmem>>, vector<1x64xf32>
    %45 = vector.broadcast %44 : vector<1x64xf32> to vector<128x64xf32>
    %46 = arith.addf %43, %45 : vector<128x64xf32>
    %47 = vector.extract_strided_slice %46 {offsets = [0, 0], sizes = [32, 64], strides = [1, 1]} : vector<128x64xf32> to vector<32x64xf32>
    %c2_46 = arith.constant 2 : index
    %c0_47 = arith.constant 0 : index
    %48 = vector.load %arg10[%c2_46, %c0_47] : memref<132x64xf32, #tpu.memory_space<vmem>>, vector<32x64xf32>
    tpu.vector_store %arg10[%c2_46, %c0_47], %47 {strides = array<i32>} : memref<132x64xf32, #tpu.memory_space<vmem>>, vector<32x64xf32>,
    %c0_48 = arith.constant 0 : index
    %c0_49 = arith.constant 0 : index
    %49 = vector.load %arg10[%c0_48, %c0_49] : memref<132x64xf32, #tpu.memory_space<vmem>>, vector<128x64xf32>
    %50 = arith.truncf %49 : vector<128x64xf32> to vector<128x64xbf16>
    %c0_50 = arith.constant 0 : index
    %c0_51 = arith.constant 0 : index
    %c0_52 = arith.constant 0 : index
    %51 = vector.load %arg4[%c0_50, %c0_51, %c0_52] : memref<5x64x64xbf16, #tpu.memory_space<vmem>>, vector<1x64x64xbf16>
    %52 = vector.shape_cast %51 : vector<1x64x64xbf16> to vector<64x64xbf16>
    %cst_53 = arith.constant dense<0.000000e+00> : vector<128x64xf32>
    %53 = tpu.matmul %50, %52, %cst_53 {dimension_numbers = #tpu.dot_dimension_numbers<[1], [0], [0], [1], [0, 0, 1, 1], [], []>} : vector<128x64xbf16>, vector<64x64xbf16>, vector<128x64xf32> -> vector<128x64xf32>
    %c1_54 = arith.constant 1 : index
    %c0_55 = arith.constant 0 : index
    %54 = vector.load %arg10[%c1_54, %c0_55] : memref<132x64xf32, #tpu.memory_space<vmem>>, vector<128x64xf32>
    %55 = arith.truncf %54 : vector<128x64xf32> to vector<128x64xbf16>
    %c1_56 = arith.constant 1 : index
    %c0_57 = arith.constant 0 : index
    %c0_58 = arith.constant 0 : index
    %56 = vector.load %arg4[%c1_56, %c0_57, %c0_58] : memref<5x64x64xbf16, #tpu.memory_space<vmem>>, vector<1x64x64xbf16>
    %57 = vector.shape_cast %56 : vector<1x64x64xbf16> to vector<64x64xbf16>
    %cst_59 = arith.constant dense<0.000000e+00> : vector<128x64xf32>
    %58 = tpu.matmul %55, %57, %cst_59 {dimension_numbers = #tpu.dot_dimension_numbers<[1], [0], [0], [1], [0, 0, 1, 1], [], []>} : vector<128x64xbf16>, vector<64x64xbf16>, vector<128x64xf32> -> vector<128x64xf32>
    %59 = arith.addf %53, %58 : vector<128x64xf32>
    %c2_60 = arith.constant 2 : index
    %c0_61 = arith.constant 0 : index
    %60 = vector.load %arg10[%c2_60, %c0_61] : memref<132x64xf32, #tpu.memory_space<vmem>>, vector<128x64xf32>
    %61 = arith.truncf %60 : vector<128x64xf32> to vector<128x64xbf16>
    %c2_62 = arith.constant 2 : index
    %c0_63 = arith.constant 0 : index
    %c0_64 = arith.constant 0 : index
    %62 = vector.load %arg4[%c2_62, %c0_63, %c0_64] : memref<5x64x64xbf16, #tpu.memory_space<vmem>>, vector<1x64x64xbf16>
    %63 = vector.shape_cast %62 : vector<1x64x64xbf16> to vector<64x64xbf16>
    %cst_65 = arith.constant dense<0.000000e+00> : vector<128x64xf32>
    %64 = tpu.matmul %61, %63, %cst_65 {dimension_numbers = #tpu.dot_dimension_numbers<[1], [0], [0], [1], [0, 0, 1, 1], [], []>} : vector<128x64xbf16>, vector<64x64xbf16>, vector<128x64xf32> -> vector<128x64xf32>
    %65 = arith.addf %59, %64 : vector<128x64xf32>
    %c3_66 = arith.constant 3 : index
    %c0_67 = arith.constant 0 : index
    %66 = vector.load %arg10[%c3_66, %c0_67] : memref<132x64xf32, #tpu.memory_space<vmem>>, vector<128x64xf32>
    %67 = arith.truncf %66 : vector<128x64xf32> to vector<128x64xbf16>
    %c3_68 = arith.constant 3 : index
    %c0_69 = arith.constant 0 : index
    %c0_70 = arith.constant 0 : index
    %68 = vector.load %arg4[%c3_68, %c0_69, %c0_70] : memref<5x64x64xbf16, #tpu.memory_space<vmem>>, vector<1x64x64xbf16>
    %69 = vector.shape_cast %68 : vector<1x64x64xbf16> to vector<64x64xbf16>
    %cst_71 = arith.constant dense<0.000000e+00> : vector<128x64xf32>
    %70 = tpu.matmul %67, %69, %cst_71 {dimension_numbers = #tpu.dot_dimension_numbers<[1], [0], [0], [1], [0, 0, 1, 1], [], []>} : vector<128x64xbf16>, vector<64x64xbf16>, vector<128x64xf32> -> vector<128x64xf32>
    %71 = arith.addf %65, %70 : vector<128x64xf32>
    %c4_72 = arith.constant 4 : index
    %c0_73 = arith.constant 0 : index
    %72 = vector.load %arg10[%c4_72, %c0_73] : memref<132x64xf32, #tpu.memory_space<vmem>>, vector<128x64xf32>
    %73 = arith.truncf %72 : vector<128x64xf32> to vector<128x64xbf16>
    %c4_74 = arith.constant 4 : index
    %c0_75 = arith.constant 0 : index
    %c0_76 = arith.constant 0 : index
    %74 = vector.load %arg4[%c4_74, %c0_75, %c0_76] : memref<5x64x64xbf16, #tpu.memory_space<vmem>>, vector<1x64x64xbf16>
    %75 = vector.shape_cast %74 : vector<1x64x64xbf16> to vector<64x64xbf16>
    %cst_77 = arith.constant dense<0.000000e+00> : vector<128x64xf32>
    %76 = tpu.matmul %73, %75, %cst_77 {dimension_numbers = #tpu.dot_dimension_numbers<[1], [0], [0], [1], [0, 0, 1, 1], [], []>} : vector<128x64xbf16>, vector<64x64xbf16>, vector<128x64xf32> -> vector<128x64xf32>
    %77 = arith.addf %71, %76 : vector<128x64xf32>
    %c0_78 = arith.constant 0 : index
    %c0_79 = arith.constant 0 : index
    %78 = vector.load %arg5[%c0_78, %c0_79] : memref<1x64xf32, #tpu.memory_space<vmem>>, vector<1x64xf32>
    %79 = vector.broadcast %78 : vector<1x64xf32> to vector<128x64xf32>
    %80 = arith.addf %77, %79 : vector<128x64xf32>
    %81 = vector.extract_strided_slice %80 {offsets = [0, 0], sizes = [32, 64], strides = [1, 1]} : vector<128x64xf32> to vector<32x64xf32>
    %c2_80 = arith.constant 2 : index
    %c0_81 = arith.constant 0 : index
    %82 = vector.load %arg11[%c2_80, %c0_81] : memref<132x64xf32, #tpu.memory_space<vmem>>, vector<32x64xf32>
    tpu.vector_store %arg11[%c2_80, %c0_81], %81 {strides = array<i32>} : memref<132x64xf32, #tpu.memory_space<vmem>>, vector<32x64xf32>,
    %c0_82 = arith.constant 0 : index
    %c0_83 = arith.constant 0 : index
    %83 = vector.load %arg11[%c0_82, %c0_83] : memref<132x64xf32, #tpu.memory_space<vmem>>, vector<128x64xf32>
    %84 = arith.truncf %83 : vector<128x64xf32> to vector<128x64xbf16>
    %c0_84 = arith.constant 0 : index
    %c0_85 = arith.constant 0 : index
    %c0_86 = arith.constant 0 : index
    %85 = vector.load %arg6[%c0_84, %c0_85, %c0_86] : memref<5x64x64xbf16, #tpu.memory_space<vmem>>, vector<1x64x64xbf16>
    %86 = vector.shape_cast %85 : vector<1x64x64xbf16> to vector<64x64xbf16>
    %cst_87 = arith.constant dense<0.000000e+00> : vector<128x64xf32>
    %87 = tpu.matmul %84, %86, %cst_87 {dimension_numbers = #tpu.dot_dimension_numbers<[1], [0], [0], [1], [0, 0, 1, 1], [], []>} : vector<128x64xbf16>, vector<64x64xbf16>, vector<128x64xf32> -> vector<128x64xf32>
    %c1_88 = arith.constant 1 : index
    %c0_89 = arith.constant 0 : index
    %88 = vector.load %arg11[%c1_88, %c0_89] : memref<132x64xf32, #tpu.memory_space<vmem>>, vector<128x64xf32>
    %89 = arith.truncf %88 : vector<128x64xf32> to vector<128x64xbf16>
    %c1_90 = arith.constant 1 : index
    %c0_91 = arith.constant 0 : index
    %c0_92 = arith.constant 0 : index
    %90 = vector.load %arg6[%c1_90, %c0_91, %c0_92] : memref<5x64x64xbf16, #tpu.memory_space<vmem>>, vector<1x64x64xbf16>
    %91 = vector.shape_cast %90 : vector<1x64x64xbf16> to vector<64x64xbf16>
    %cst_93 = arith.constant dense<0.000000e+00> : vector<128x64xf32>
    %92 = tpu.matmul %89, %91, %cst_93 {dimension_numbers = #tpu.dot_dimension_numbers<[1], [0], [0], [1], [0, 0, 1, 1], [], []>} : vector<128x64xbf16>, vector<64x64xbf16>, vector<128x64xf32> -> vector<128x64xf32>
    %93 = arith.addf %87, %92 : vector<128x64xf32>
    %c2_94 = arith.constant 2 : index
    %c0_95 = arith.constant 0 : index
    %94 = vector.load %arg11[%c2_94, %c0_95] : memref<132x64xf32, #tpu.memory_space<vmem>>, vector<128x64xf32>
    %95 = arith.truncf %94 : vector<128x64xf32> to vector<128x64xbf16>
    %c2_96 = arith.constant 2 : index
    %c0_97 = arith.constant 0 : index
    %c0_98 = arith.constant 0 : index
    %96 = vector.load %arg6[%c2_96, %c0_97, %c0_98] : memref<5x64x64xbf16, #tpu.memory_space<vmem>>, vector<1x64x64xbf16>
    %97 = vector.shape_cast %96 : vector<1x64x64xbf16> to vector<64x64xbf16>
    %cst_99 = arith.constant dense<0.000000e+00> : vector<128x64xf32>
    %98 = tpu.matmul %95, %97, %cst_99 {dimension_numbers = #tpu.dot_dimension_numbers<[1], [0], [0], [1], [0, 0, 1, 1], [], []>} : vector<128x64xbf16>, vector<64x64xbf16>, vector<128x64xf32> -> vector<128x64xf32>
    %99 = arith.addf %93, %98 : vector<128x64xf32>
    %c3_100 = arith.constant 3 : index
    %c0_101 = arith.constant 0 : index
    %100 = vector.load %arg11[%c3_100, %c0_101] : memref<132x64xf32, #tpu.memory_space<vmem>>, vector<128x64xf32>
    %101 = arith.truncf %100 : vector<128x64xf32> to vector<128x64xbf16>
    %c3_102 = arith.constant 3 : index
    %c0_103 = arith.constant 0 : index
    %c0_104 = arith.constant 0 : index
    %102 = vector.load %arg6[%c3_102, %c0_103, %c0_104] : memref<5x64x64xbf16, #tpu.memory_space<vmem>>, vector<1x64x64xbf16>
    %103 = vector.shape_cast %102 : vector<1x64x64xbf16> to vector<64x64xbf16>
    %cst_105 = arith.constant dense<0.000000e+00> : vector<128x64xf32>
    %104 = tpu.matmul %101, %103, %cst_105 {dimension_numbers = #tpu.dot_dimension_numbers<[1], [0], [0], [1], [0, 0, 1, 1], [], []>} : vector<128x64xbf16>, vector<64x64xbf16>, vector<128x64xf32> -> vector<128x64xf32>
    %105 = arith.addf %99, %104 : vector<128x64xf32>
    %c4_106 = arith.constant 4 : index
    %c0_107 = arith.constant 0 : index
    %106 = vector.load %arg11[%c4_106, %c0_107] : memref<132x64xf32, #tpu.memory_space<vmem>>, vector<128x64xf32>
    %107 = arith.truncf %106 : vector<128x64xf32> to vector<128x64xbf16>
    %c4_108 = arith.constant 4 : index
    %c0_109 = arith.constant 0 : index
    %c0_110 = arith.constant 0 : index
    %108 = vector.load %arg6[%c4_108, %c0_109, %c0_110] : memref<5x64x64xbf16, #tpu.memory_space<vmem>>, vector<1x64x64xbf16>
    %109 = vector.shape_cast %108 : vector<1x64x64xbf16> to vector<64x64xbf16>
    %cst_111 = arith.constant dense<0.000000e+00> : vector<128x64xf32>
    %110 = tpu.matmul %107, %109, %cst_111 {dimension_numbers = #tpu.dot_dimension_numbers<[1], [0], [0], [1], [0, 0, 1, 1], [], []>} : vector<128x64xbf16>, vector<64x64xbf16>, vector<128x64xf32> -> vector<128x64xf32>
    %111 = arith.addf %105, %110 : vector<128x64xf32>
    %c0_112 = arith.constant 0 : index
    %c0_113 = arith.constant 0 : index
    %112 = vector.load %arg7[%c0_112, %c0_113] : memref<1x64xf32, #tpu.memory_space<vmem>>, vector<1x64xf32>
    %113 = vector.broadcast %112 : vector<1x64xf32> to vector<128x64xf32>
    %114 = arith.addf %111, %113 : vector<128x64xf32>
    %115 = tpu.transpose %114, [1, 0] : vector<128x64xf32> -> vector<64x128xf32>
    %c0_114 = arith.constant 0 : index
    %c0_115 = arith.constant 0 : index
    %c0_116 = arith.constant 0 : index
    %116 = vector.load %arg8[%c0_114, %c0_115, %c0_116] : memref<1x64x128xf32, #tpu.memory_space<vmem>>, vector<1x64x128xf32>
    %117 = vector.shape_cast %116 : vector<1x64x128xf32> to vector<64x128xf32>
    %118 = vector.shape_cast %115 : vector<64x128xf32> to vector<1x64x128xf32>
    tpu.vector_store %arg8[%c0_114, %c0_115, %c0_116], %118 {strides = array<i32>} : memref<1x64x128xf32, #tpu.memory_space<vmem>>, vector<1x64x128xf32>,
    return
  }
  func.func @transform_0(%arg0: i32) -> (i32, i32, i32) {
    %c0_i32 = arith.constant 0 : i32
    %c0_i32_0 = arith.constant 0 : i32
    %c0_i32_1 = arith.constant 0 : i32
    return %arg0, %c0_i32, %c0_i32_0 : i32, i32, i32
  }
  func.func @transform_1(%arg0: i32) -> (i32, i32, i32) {
    %c0_i32 = arith.constant 0 : i32
    %c0_i32_0 = arith.constant 0 : i32
    %c0_i32_1 = arith.constant 0 : i32
    %c0_i32_2 = arith.constant 0 : i32
    return %c0_i32, %c0_i32_0, %c0_i32_1 : i32, i32, i32
  }
  func.func @transform_2(%arg0: i32) -> (i32, i32) {
    %c0_i32 = arith.constant 0 : i32
    %c0_i32_0 = arith.constant 0 : i32
    %c0_i32_1 = arith.constant 0 : i32
    return %c0_i32, %c0_i32_0 : i32, i32
  }
  func.func @transform_3(%arg0: i32) -> (i32, i32, i32) {
    %c0_i32 = arith.constant 0 : i32
    %c0_i32_0 = arith.constant 0 : i32
    %c0_i32_1 = arith.constant 0 : i32
    %c0_i32_2 = arith.constant 0 : i32
    return %c0_i32, %c0_i32_0, %c0_i32_1 : i32, i32, i32
  }
  func.func @transform_4(%arg0: i32) -> (i32, i32) {
    %c0_i32 = arith.constant 0 : i32
    %c0_i32_0 = arith.constant 0 : i32
    %c0_i32_1 = arith.constant 0 : i32
    return %c0_i32, %c0_i32_0 : i32, i32
  }
  func.func @transform_5(%arg0: i32) -> (i32, i32, i32) {
    %c0_i32 = arith.constant 0 : i32
    %c0_i32_0 = arith.constant 0 : i32
    %c0_i32_1 = arith.constant 0 : i32
    %c0_i32_2 = arith.constant 0 : i32
    return %c0_i32, %c0_i32_0, %c0_i32_1 : i32, i32, i32
  }
  func.func @transform_6(%arg0: i32) -> (i32, i32) {
    %c0_i32 = arith.constant 0 : i32
    %c0_i32_0 = arith.constant 0 : i32
    %c0_i32_1 = arith.constant 0 : i32
    return %c0_i32, %c0_i32_0 : i32, i32
  }
  func.func @transform_7(%arg0: i32) -> (i32, i32, i32) {
    %c0_i32 = arith.constant 0 : i32
    %c0_i32_0 = arith.constant 0 : i32
    %c0_i32_1 = arith.constant 0 : i32
    return %arg0, %c0_i32, %c0_i32_0 : i32, i32, i32
  }
}

</mosaic_0001>

<bundles_post_ra>
// kernel: tpu_custom_call.1
= control target key start
LH: loop header
LB: loop body
LE: loop exit
PB: predicated region body
PF: predicated region fallthrough
CT: control target
= control target key end

     0   :  { %12 = vsyncpa [#allocation6], 0  ;;  %s4927_s0 = inlined_call_operand.hbm [shape: f32[2,48,128], index: 0, kind: input, shape index: {}]   ;;  %s4928_s1 = inlined_call_operand.hbm [shape: bf16[5,48,64], index: 1, kind: input, shape index: {}]   ;;  %s4929_s2 = inlined_call_operand.vmem [shape: f32[1,64], index: 2, kind: input, shape index: {}]   ;;  %s4930_s3 = inlined_call_operand.hbm [shape: bf16[5,64,64], index: 3, kind: input, shape index: {}]   ;;  %s4931_s4 = inlined_call_operand.vmem [shape: f32[1,64], index: 4, kind: input, shape index: {}]   ;;  %s4932_s5 = inlined_call_operand.hbm [shape: bf16[5,64,64], index: 5, kind: input, shape index: {}]   ;;  %s4933_s6 = inlined_call_operand.vmem [shape: f32[1,64], index: 6, kind: input, shape index: {}]   ;;  %s4934_s7 = inlined_call_operand.hbm [shape: f32[2,64,128], index: 7, kind: output, shape index: {}]  }
   0x1   :  { %14 = vsyncpa [#allocation6 + $0x1], 0 }
   0x2   :  { %15 = vsyncpa [#allocation9], 0 }
   0x3   :  { %16 = vsyncpa [#allocation12], 0 }
   0x4   :  { %17 = vsyncpa [#allocation7], 0 }
   0x5   :  { %19 = vsyncpa [#allocation7 + $0x1], 0  ;;  %s4425_s24 = smov 0   ;;  %s4427_s25 = smov 0  }
   0x6   :  { %s4429_s26 = smov 0   ;;  %s4431_s27 = smov 0  }
   0x7 LB: > { %s4446_s28 = sadd.s32 4294967295, %s4371_s27   ;;  %s3218_s29 = sadd.s32 4294967294, %s4371_s27   ;;  %s4371_s27 = sphi %s4431_s27, %s4960_s27   ;;  %s4367_s26 = sphi %s4429_s26, %s4959_s26   ;;  %s4363_s25 = sphi %s4427_s25, %s4958_s25   ;;  %s4359_s24 = sphi %s4425_s24, %s4957_s24  }
   0x8   : > { %p45_p0 = scmp.ne.s32.totalorder %s4363_s25, %s4359_s24  ;;  %p4935_p1 = scmp.eq.s32.totalorder %s4446_s28, 0 }
   0x9   : > { %p201_p3 = scmp.eq.s32.totalorder %s3218_s29, 1  ;;  %p3219_p5 = scmp.ge.s32.totalorder %s4371_s27, 1 }
   0xa   : > { %p4455_p4 = por %p4935_p1, %p45_p0  ;;  %p208_p7 = scmp.lt.s32.totalorder %s4371_s27, 3 }
   0xb   : > { %p4460_p6 = por %p201_p3, %p45_p0  ;;  %s4373_s10 = smov [#allocation8]  }
   0xc   : > { %s4939_s30 = scalar_select %p4455_p4, 1, 0 }
   0xd   : > { %s4940_s8 = scalar_select %p4460_p6, 1, 0 }
   0xe   : > { %p4465_p8 = pnand %p3219_p5, %p208_p7  ;;  %s220_s11 = sshll.u32 %s4373_s10, 4  ;;  %s4469_s11 = int_to_ptr.vmem [resolvable:$true] %s220_s11 }
   0xf   : > { %4941 = sst [smem:[#allocation18_spill]] %s4940_s8  ;;  %s4374_s13 = smov [#allocation10]  }
  0x10   : > { %s4942_s9 = scalar_select %p4465_p8, 1, 0 }
  0x11   : > { %p4060_p9 = pneg %p4465_p8  ;;  %s236_s14 = sshll.u32 %s4374_s13, 4  ;;  %s4480_s14 = int_to_ptr.vmem [resolvable:$true] %s236_s14 }
  0x12   : > { %s4375_s15 = smov [#allocation11]   ;;  %s4183_s19 = scalar_lea.hbm %s4928_s1, 1920 }
  0x13   : > { %p4476_p11 = pnand %p4060_p9, %p4935_p1  ;;  %s4482_s16 = sshll.u32 %s4375_s15, 4  ;;  %s253_s16 = int_to_ptr.vmem [resolvable:$true] %s4482_s16 }
  0x14   : > { %p4184_p12 = scmp.ne.s32.totalorder %s4928_s1, %s4183_s19  ;;  %p4190_p5 = scmp.lt.u32.totalorder %s4183_s19, %s4928_s1 }
  0x15   : > { %p4492_p13 = pneg %p4476_p11 }
  0x17   : > { %p4186_p0 = pnand %p4492_p13, %p4184_p12 }
  0x19   : > { %p4187_p3 = pneg %p4186_p0 }
  0x1b   : > { %p4192_p7 = pnand %p4190_p5, %p4187_p3 }
  0x1d   : > { %4195 = shalt.err (!%p4192_p7)
}
  0x1e   : > { %s4196_s10 = scalar_lea.vmem %s4469_s11, 1920  ;;  %p4204_p2 = scmp.lt.s32.totalorder %s4469_s11, %s4469_s11 }
  0x1f   : > { %p4197_p9 = scmp.ne.s32.totalorder %s4469_s11, %s4196_s10  ;;  %p4205_p6 = scmp.lt.s32.totalorder %s4196_s10, %s4196_s10 }
  0x21   : > { %p4199_p10 = pnand %p4197_p9, %p4492_p13  ;;  %p4206_p12 = por %p4205_p6, %p4204_p2 }
  0x23   : > { %p4200_p1 = pneg %p4199_p10 }
  0x25   : > { %p4207_p0 = pnand %p4206_p12, %p4200_p1 }
  0x27   : > { %4210 = shalt.err (!%p4207_p0)
}
  0x28   : > { %s4376_s13 = smov 64   ;;  %s4377_s15 = smov 4  }
  0x29   : > { %4063 = dma.hbm_to_vmem [thread:$0]  (!%p4476_p11), %s4928_s1, 1920, %s4469_s11, [#allocation9], %s4376_s13, %s4376_s13, %s4377_s15  }
  0x2a   : > { %s4211_s21 = scalar_lea.hbm %s4930_s3, 2560 }
  0x2b   : > { %p4212_p1 = scmp.ne.s32.totalorder %s4930_s3, %s4211_s21  ;;  %p4218_p10 = scmp.lt.u32.totalorder %s4211_s21, %s4930_s3 }
  0x2d   : > { %p4214_p2 = pnand %p4212_p1, %p4492_p13 }
  0x2f   : > { %p4215_p6 = pneg %p4214_p2 }
  0x31   : > { %p4220_p3 = pnand %p4218_p10, %p4215_p6 }
  0x33   : > { %4223 = shalt.err (!%p4220_p3)
}
  0x34   : > { %s4224_s11 = scalar_lea.vmem %s4480_s14, 2560  ;;  %p4232_p12 = scmp.lt.s32.totalorder %s4480_s14, %s4480_s14 }
  0x35   : > { %p4225_p5 = scmp.ne.s32.totalorder %s4480_s14, %s4224_s11  ;;  %p4233_p0 = scmp.lt.s32.totalorder %s4224_s11, %s4224_s11 }
  0x37   : > { %p4227_p7 = pnand %p4225_p5, %p4492_p13  ;;  %p4234_p1 = por %p4233_p0, %p4232_p12 }
  0x39   : > { %p4228_p9 = pneg %p4227_p7 }
  0x3b   : > { %p4235_p2 = pnand %p4234_p1, %p4228_p9 }
  0x3d   : > { %4238 = shalt.err (!%p4235_p2)
}
  0x3e   : > { %4066 = dma.hbm_to_vmem [thread:$0]  (!%p4476_p11), %s4930_s3, 2560, %s4480_s14, [#allocation9], %s4376_s13, %s4376_s13, %s4377_s15  }
  0x3f   : > { %s4239_s20 = scalar_lea.hbm %s4932_s5, 2560 }
  0x40   : > { %p4240_p6 = scmp.ne.s32.totalorder %s4932_s5, %s4239_s20  ;;  %p4246_p5 = scmp.lt.u32.totalorder %s4239_s20, %s4932_s5 }
  0x42   : > { %p4242_p10 = pnand %p4240_p6, %p4492_p13 }
  0x44   : > { %p4243_p3 = pneg %p4242_p10 }
  0x46   : > { %p4248_p7 = pnand %p4246_p5, %p4243_p3 }
  0x48   : > { %4251 = shalt.err (!%p4248_p7)
}
  0x49   : > { %s4252_s11 = scalar_lea.vmem %s253_s16, 2560  ;;  %p4260_p1 = scmp.lt.s32.totalorder %s253_s16, %s253_s16 }
  0x4a   : > { %p4253_p9 = scmp.ne.s32.totalorder %s253_s16, %s4252_s11  ;;  %p4261_p2 = scmp.lt.s32.totalorder %s4252_s11, %s4252_s11 }
  0x4c   : > { %p4255_p12 = pnand %p4253_p9, %p4492_p13  ;;  %p4262_p4 = por %p4261_p2, %p4260_p1 }
  0x4e   : > { %p4256_p0 = pneg %p4255_p12 }
  0x50   : > { %p4263_p8 = pnand %p4262_p4, %p4256_p0 }
  0x52   : > { %4266 = shalt.err (!%p4263_p8)
}
  0x53   : > { %4069 = dma.hbm_to_vmem [thread:$0]  (!%p4476_p11), %s4932_s5, 2560, %s253_s16, [#allocation12], %s4376_s13, %s4376_s13, %s4377_s15  }
  0x54   : > { %s4565_s22 = sadd.s32 1, %s4371_s27   ;;  %s32_s17 = sadd.s32 1, %s4367_s26 }
  0x55   : > { %s29_s12 = ssub.s32 %s4371_s27, %s4565_s22  ;;  %p39_p8 = scmp.ne.s32.totalorder %s4367_s26, %s4363_s25 }
  0x56   : > { %p30_p4 = scmp.eq.s32.totalorder %s29_s12, 0  ;;  %p40_p13 = scmp.eq.s32.totalorder %s4371_s27, 0 }
  0x57   : > { %p4081_p6 = scmp.lt.s32.totalorder %s4371_s27, 2  ;;  %p4945_p3 = scmp.eq.s32.totalorder %s4446_s28, 1 }
  0x58   : > { %s4575_s18 = scalar_select %p30_p4, %s4367_s26, %s32_s17  }
  0x59   : > { %p41_p10 = por %p40_p13, %p39_p8  ;;  %p4579_p5 = por %p4945_p3, %p39_p8 }
  0x5a   : > { %s269_s20 = sand.u32 1, %s4367_s26   ;;  %s4042_s21 = smul.u32 768, %s4371_s27 }
  0x5b   : > { %s4041_s16 = smul.u32 48, %s269_s20  ;;  %p4590_p11 = pnand %p4081_p6, %p41_p10 }
  0x5c   : > { %s4588_s23 = scalar_lea.hbm %s4927_s0, %s4042_s21  ;;  %s4596_s14 = scalar_lea.sflag [#allocation6], %s269_s20 }
  0x5d   : > { %s273_s10 = scalar_lea.vmem [#allocation5], %s4041_s16  ;;  %s4267_s8 = scalar_lea.hbm %s4588_s23, 768 }
  0x5e   : > { %s280_s11 = sshll.u32 %s273_s10, 4  ;;  %p4268_p7 = scmp.ne.s32.totalorder %s4588_s23, %s4267_s8  ;;  %s4594_s11 = int_to_ptr.vmem [resolvable:$true] %s280_s11 }
  0x5f   : > { %p4269_p9 = pneg %p4590_p11  ;;  %s4272_s21 = scalar_lea.hbm %s4927_s0, 1536 }
  0x60   : > { %p4273_p1 = scmp.lt.u32.totalorder %s4588_s23, %s4927_s0  ;;  %p4274_p2 = scmp.lt.u32.totalorder %s4272_s21, %s4267_s8 }
  0x61   : > { %p4270_p12 = pnand %p4269_p9, %p4268_p7  ;;  %p4276_p8 = scmp.lt.u32.totalorder %s4267_s8, %s4588_s23 }
  0x62   : > { %p4275_p4 = por %p4274_p2, %p4273_p1 }
  0x63   : > { %p4271_p0 = pneg %p4270_p12 }
  0x64   : > { %p4277_p13 = por %p4276_p8, %p4275_p4 }
  0x66   : > { %p4278_p6 = pnand %p4277_p13, %p4271_p0 }
  0x68   : > { %4281 = shalt.err (!%p4278_p6)
}
  0x69   : > { %s4282_s20 = scalar_lea.vmem %s4594_s11, 768  ;;  %s4378_s16 = smov [#allocation5]  }
  0x6a   : > { %p4283_p10 = scmp.ne.s32.totalorder %s4594_s11, %s4282_s20  ;;  %s4287_s10 = sshll.u32 %s4378_s16, 4  ;;  %s4288_s10 = int_to_ptr.vmem [resolvable:$false] %s4287_s10 }
  0x6b   : > { %s4289_s12 = scalar_lea.vmem %s4288_s10, 1536  ;;  %p4290_p12 = scmp.lt.s32.totalorder %s4594_s11, %s4288_s10 }
  0x6c   : > { %p4285_p3 = pnand %p4283_p10, %p4269_p9  ;;  %p4291_p1 = scmp.lt.s32.totalorder %s4289_s12, %s4282_s20 }
  0x6e   : > { %p4286_p7 = pneg %p4285_p3  ;;  %p4292_p2 = por %p4291_p1, %p4290_p12 }
  0x70   : > { %p4293_p4 = pnand %p4292_p2, %p4286_p7 }
  0x72   : > { %4296 = shalt.err (!%p4293_p4)
}
  0x73   : > { %s4379_s8 = smov 128   ;;  %s4380_s17 = smov 8  }
  0x74   : > { %4073 = dma.hbm_to_vmem [thread:$0]  (!%p4590_p11), %s4588_s23, 768, %s4594_s11, %s4596_s14, %s4379_s8, %s4379_s8, %s4380_s17  }
  0x75   : > { %p4948_p9 = scmp.ne.s32.totalorder %s4942_s9, 0 }
  0x76   : > { %s4627_s21 = sand.u32 (!%p4948_p9), 1, %s4363_s25   ;;  %p4949_p0 = scmp.ne.s32.totalorder (!%p4948_p9), %s4939_s30, 0 }
  0x77   : > { %292 = sbr.rel (%p4948_p9) target bundleno = 1443 (0x5a3), region = 48  ;;  %s295_s15 = scalar_lea.sflag (!%p4948_p9), [#allocation6], %s4627_s21 }
  0x78   : > { %s4043_s13 = smul.u32 (!%p4948_p9), 48, %s4627_s21 }
  0x7a   : > { %s298_s20 = scalar_lea.vmem (!%p4948_p9), [#allocation5], %s4043_s13 }
  0x7e   : > { %4342 = dma.done.wait (%p4949_p0), %s295_s15, 768  }
  0x7f   : > { %4344 = vsyncadd (%p4949_p0), %s295_s15, 4294966528  ;;  %p4950_p8 = scmp.eq.s32.totalorder %s4446_s28, 0 }
  0x81   : > { %4346 = dma.done.wait (%p4950_p8), [#allocation9], 4480   ;;  %p4951_p11 = pmov %p4950_p8 }
  0x82   : > { %p4952_p13 = pmov %p4950_p8 }
  0x83   : > { %4348 = vsyncadd (%p4951_p11), [#allocation9], 4294962816 }
  0x84   : > { %4350 = dma.done.wait (%p4952_p13), [#allocation12], 2560   ;;  %p4953_p6 = pmov %p4950_p8 }
  0x85   : > { %v375_v0 = vld [vmem:[%s298_s20] sm:$0xff]  ;;  %v376_v1 = vld [vmem:[%s298_s20 + $0x8] sm:$0xff]  ;;  %vm342_vm0 = vcmask 386048   ;;  %v4381_v2 = vmov 0.0   ;;  %v377_v3 = vld [vmem:[%s298_s20 + $0x10] sm:$0xff]  ;;  %vm413_vm1 = vcmask 392192  }
  0x86   : > { %4352 = vsyncadd (%p4953_p6), [#allocation12], 4294964736  ;;  %381 = vxpose.xlu0.b32.start [1/6] (short) %v375_v0, 128  ;;  %343 = vst.msk [vmem:[#allocation2] sm:$0x3] %vm342_vm0, %v4381_v2  ;;  %v378_v4 = vld [vmem:[%s298_s20 + $0x18] sm:$0xff]  ;;  %v4645_v6 = vld [vmem:[#allocation8 + $0x30] sm:$0xff]  }
  0x87   : > { %344 = vst.msk [vmem:[#allocation2 + $0x82] sm:$0x3] %vm342_vm0, %v4381_v2  ;;  %v4128_v5 = vld [vmem:[#allocation8 + $0x18] sm:$0xff]   ;;  %v379_v7 = vld [vmem:[%s298_s20 + $0x20] sm:$0xff]  ;;  %3633 = vmatprep.subr.bf16.mxu0 %v4645_v6  ;;  %v4132_v11 = vld [vmem:[#allocation8 + $0x28] sm:$0xff]   ;;  %vm347_vm2 = vcmask 523264  }
  0x88   : > { %3589 = vmatprep.subr.bf16.mxu1 %v4128_v5  ;;  %3634 = vmatpush3.bf16.msra.mxu0 %v4645_v6  ;;  %v4130_v8 = vld [vmem:[#allocation8 + $0x20] sm:$0xff]   ;;  %v4649_v9 = vld [vmem:[#allocation8 + $0x38] sm:$0xff]   ;;  %v4134_v13 = vld [vmem:[#allocation8 + $0x48] sm:$0xff]   ;;  %348 = vst.msk [vmem:[#allocation3 + $0x22] sm:$0xff] %vm347_vm2, %v4381_v2  ;;  %vm345_vm3 = vcmask 517120   ;;  %s3229_s16 = sshll.u32 %s4627_s21, 6 }
  0x89   : > { %3590 = vmatpush3.bf16.msra.mxu1 %v4128_v5  ;;  %v380_v10 = vld [vmem:[%s298_s20 + $0x28] sm:$0xff]  ;;  %3635 = vmatprep.subr.bf16.mxu0 %v4649_v9  ;;  %v4653_v12 = vld [vmem:[#allocation8 + $0x40] sm:$0xff]   ;;  %v4135_v33 = vld [vmem:[#allocation8 + $0x50] sm:$0xff]   ;;  %349 = vst.msk [vmem:[#allocation3 + $0x2a] sm:$0xff] %vm347_vm2, %v4381_v2  ;;  %s340_s10 = scalar_lea.vmem [#allocation13], %s3229_s16  ;;  %s3413_s8 = sshll.u32 %s4446_s28, 10 }
  0x8a   : > { %382 = vxpose.xlu0.b32.cont [2/6] (short) %v376_v1, 128  ;;  %3591 = vmatprep.subr.bf16.mxu1 %v4130_v8  ;;  %v4137_v14 = vld [vmem:[#allocation8] sm:$0xff]   ;;  %v4139_v34 = vld [vmem:[#allocation8 + $0x8] sm:$0xff]   ;;  %v4136_v36 = vld [vmem:[#allocation8 + $0x58] sm:$0xff]   ;;  %350 = vst.msk [vmem:[#allocation3 + $0x32] sm:$0xff] %vm347_vm2, %v4381_v2  ;;  %s3116_s12 = sshll.u32 %s340_s10, 4  ;;  %s4883_s15 = scalar_lea.hbm %s4934_s7, %s3413_s8  ;;  %s4878_s12 = int_to_ptr.vmem [resolvable:$true] %s3116_s12 }
  0x8b   : > { %v4141_v37 = vld [vmem:[#allocation8 + $0x10] sm:$0xff]   ;;  %v4138_v45 = vld [vmem:[#allocation8 + $0x60] sm:$0xff]   ;;  %351 = vst.msk [vmem:[#allocation3 + $0x3a] sm:$0xff] %vm347_vm2, %v4381_v2  ;;  %352 = vst.msk [vmem:[#allocation3 + $0x42] sm:$0xff] %vm347_vm2, %v4381_v2  ;;  %s3103_s20 = scalar_lea.sflag [#allocation7], %s4627_s21  ;;  %s4297_s30 = scalar_lea.vmem %s4878_s12, 1024 }
  0x8c   : > { %3636 = vmatpush3.bf16.msra.mxu0 %v4649_v9  ;;  %353 = vst.msk [vmem:[#allocation3 + $0x4a] sm:$0xff] %vm347_vm2, %v4381_v2  ;;  %354 = vst.msk [vmem:[#allocation3 + $0x52] sm:$0xff] %vm347_vm2, %v4381_v2  ;;  %p4298_p10 = scmp.ne.s32.totalorder %s4878_s12, %s4297_s30  ;;  %s4382_s28 = smov [#allocation13]  }
  0x8d   : > { %3592 = vmatpush3.bf16.msra.mxu1 %v4130_v8  ;;  %3637 = vmatprep.subr.bf16.mxu0 %v4653_v12  ;;  %v4142_v8 = vld [vmem:[#allocation8 + $0x70] sm:$0xff]   ;;  %355 = vst.msk [vmem:[#allocation3 + $0x5a] sm:$0xff] %vm347_vm2, %v4381_v2  ;;  %356 = vst.msk [vmem:[#allocation3 + $0x62] sm:$0xff] %vm347_vm2, %v4381_v2  ;;  %s4301_s9 = sshll.u32 %s4382_s28, 4  ;;  %s4302_s9 = int_to_ptr.vmem [resolvable:$false] %s4301_s9 }
  0x8e   : > { %383 = vxpose.xlu0.b32.cont [3/6] (short) %v377_v3, 128  ;;  %3593 = vmatprep.subr.bf16.mxu1 %v4132_v11  ;;  %357 = vst.msk [vmem:[#allocation3 + $0x6a] sm:$0xff] %vm347_vm2, %v4381_v2  ;;  %358 = vst.msk [vmem:[#allocation3 + $0x72] sm:$0xff] %vm347_vm2, %v4381_v2  ;;  %p4299_p3 = pnand %p4298_p10, %p4579_p5  ;;  %s4303_s23 = scalar_lea.vmem %s4302_s9, 2048 }
  0x8f   : > { %359 = vst.msk [vmem:[#allocation3 + $0x7a] sm:$0xff] %vm347_vm2, %v4381_v2  ;;  %362 = vst.msk [vmem:[#allocation4 + $0x22] sm:$0xff] %vm347_vm2, %v4381_v2  ;;  %p4304_p12 = scmp.lt.s32.totalorder %s4878_s12, %s4302_s9  ;;  %p4305_p1 = scmp.lt.s32.totalorder %s4303_s23, %s4297_s30 }
  0x90   : > { %3638 = vmatpush3.bf16.msra.mxu0 %v4653_v12  ;;  %363 = vst.msk [vmem:[#allocation4 + $0x2a] sm:$0xff] %vm347_vm2, %v4381_v2  ;;  %364 = vst.msk [vmem:[#allocation4 + $0x32] sm:$0xff] %vm347_vm2, %v4381_v2  ;;  %p4300_p7 = pneg %p4299_p3 }
  0x91   : > { %3594 = vmatpush3.bf16.msra.mxu1 %v4132_v11  ;;  %3655 = vmatprep.subr.bf16.mxu0 %v4134_v13  ;;  %365 = vst.msk [vmem:[#allocation4 + $0x3a] sm:$0xff] %vm347_vm2, %v4381_v2  ;;  %366 = vst.msk [vmem:[#allocation4 + $0x42] sm:$0xff] %vm347_vm2, %v4381_v2  ;;  %p4306_p2 = por %p4305_p1, %p4304_p12 }
  0x92   : > { %384 = vxpose.xlu0.b32.cont [4/6] (short) %v378_v4, 128  ;;  %3611 = vmatprep.subr.bf16.mxu1 %v4137_v14  ;;  %v4140_v4 = vld [vmem:[#allocation8 + $0x68] sm:$0xff]   ;;  %367 = vst.msk [vmem:[#allocation4 + $0x4a] sm:$0xff] %vm347_vm2, %v4381_v2  ;;  %368 = vst.msk [vmem:[#allocation4 + $0x52] sm:$0xff] %vm347_vm2, %v4381_v2 }
  0x93   : > { %369 = vst.msk [vmem:[#allocation4 + $0x5a] sm:$0xff] %vm347_vm2, %v4381_v2  ;;  %370 = vst.msk [vmem:[#allocation4 + $0x62] sm:$0xff] %vm347_vm2, %v4381_v2  ;;  %p4307_p4 = pnand %p4306_p2, %p4300_p7 }
  0x94   : > { %371 = vst.msk [vmem:[#allocation4 + $0x6a] sm:$0xff] %vm347_vm2, %v4381_v2  ;;  %372 = vst.msk [vmem:[#allocation4 + $0x72] sm:$0xff] %vm347_vm2, %v4381_v2 }
  0x95   : > { %373 = vst.msk [vmem:[#allocation4 + $0x7a] sm:$0xff] %vm347_vm2, %v4381_v2 }
  0x96   : > { %385 = vxpose.xlu0.b32.cont [5/6] (short) %v379_v7, 128  ;;  %346 = vst.msk [vmem:[#allocation3] sm:$0x3] %vm345_vm3, %v4381_v2  ;;  %360 = vst.msk [vmem:[#allocation3 + $0x82] sm:$0x3] %vm345_vm3, %v4381_v2 }
  0x97   : > { %361 = vst.msk [vmem:[#allocation4] sm:$0x3] %vm345_vm3, %v4381_v2  ;;  %374 = vst.msk [vmem:[#allocation4 + $0x82] sm:$0x3] %vm345_vm3, %v4381_v2 }
  0x9a   : > { %386 = vxpose.xlu0.b32.end [6/6] (short) %v380_v10, 128 }
 0x106   : > { %v397_v15 = vpop.trf.xlu0 }
 0x107   : > { %414 = vst.msk [vmem:[#allocation2 + $0x2] sm:$0xff] %vm413_vm1, %v397_v15 }
 0x10a   : > { %v398_v16 = vpop.trf.xlu0 }
 0x10b   : > { %415 = vst.msk [vmem:[#allocation2 + $0xa] sm:$0xff] %vm413_vm1, %v398_v16 }
 0x10e   : > { %v399_v17 = vpop.trf.xlu0  ;;  %v460_v18 = vld [vmem:[#allocation2 + $0x1] sm:$0xff] }
 0x10f   : > { %416 = vst.msk [vmem:[#allocation2 + $0x12] sm:$0xff] %vm413_vm1, %v399_v17  ;;  %v745_v21 = vld [vmem:[#allocation2 + $0x2] sm:$0xff] }
 0x112   : > { %v400_v19 = vpop.trf.xlu0  ;;  %v461_v20 = vld [vmem:[#allocation2 + $0x9] sm:$0xff] }
 0x113   : > { %v746_v22 = vld [vmem:[#allocation2 + $0xa] sm:$0xff]  ;;  %417 = vst.msk [vmem:[#allocation2 + $0x1a] sm:$0xff] %vm413_vm1, %v400_v19  ;;  %v476_v23 = vpack.c.bf16 %v461_v20, %v460_v18 }
 0x114   : > { %v761_v24 = vpack.c.bf16 %v746_v22, %v745_v21  ;;  %v907_v55 = vld [vmem:[#allocation2 + $0x3] sm:$0xff] }
 0x115   : > { %3595 = vmatprep.mubr.msk.bf16.mxu1 %vm413_vm1, %v476_v23 }
 0x116   : > { %3639 = vmatprep.mubr.msk.bf16.mxu0 %vm413_vm1, %v761_v24  ;;  %v401_v25 = vpop.trf.xlu0  ;;  %v462_v26 = vld [vmem:[#allocation2 + $0x11] sm:$0xff] }
 0x117   : > { %418 = vst.msk [vmem:[#allocation2 + $0x22] sm:$0xff] %vm413_vm1, %v401_v25  ;;  %v747_v29 = vld [vmem:[#allocation2 + $0x12] sm:$0xff] }
 0x118   : > { %v908_v48 = vld [vmem:[#allocation2 + $0xb] sm:$0xff] }
 0x119   : > { %v923_v56 = vpack.c.bf16 %v908_v48, %v907_v55  ;;  %v432_v48 = vld [vmem:[#allocation2 + $0x10] sm:$0xff] }
 0x11a   : > { %v402_v27 = vpop.trf.xlu0  ;;  %v463_v28 = vld [vmem:[#allocation2 + $0x19] sm:$0xff] }
 0x11b   : > { %v748_v30 = vld [vmem:[#allocation2 + $0x1a] sm:$0xff]  ;;  %419 = vst.msk [vmem:[#allocation2 + $0x2a] sm:$0xff] %vm413_vm1, %v402_v27  ;;  %v477_v31 = vpack.c.bf16 %v463_v28, %v462_v26 }
 0x11c   : > { %v762_v32 = vpack.c.bf16 %v748_v30, %v747_v29  ;;  %v909_v63 = vld [vmem:[#allocation2 + $0x13] sm:$0xff] }
 0x11d   : > { %3596 = vmatmul.mubr.msk.bf16.vlgmr.msra.gmra.mrb[0].mxu1 %vm413_vm1, %v477_v31 }
 0x11e   : > { %3640 = vmatmul.mubr.msk.bf16.vlgmr.msra.gmra.mrb[0].mxu0 %vm413_vm1, %v762_v32  ;;  %v403_v35 = vpop.trf.xlu0  ;;  %3612 = vmatpush3.bf16.msra.mxu1 %v4137_v14  ;;  %v464_v38 = vld [vmem:[#allocation2 + $0x21] sm:$0xff] }
 0x11f   : > { %3656 = vmatpush3.bf16.msra.mxu0 %v4134_v13  ;;  %420 = vst.msk [vmem:[#allocation2 + $0x32] sm:$0xff] %vm413_vm1, %v403_v35  ;;  %3613 = vmatprep.subr.bf16.mxu1 %v4139_v34  ;;  %v749_v41 = vld [vmem:[#allocation2 + $0x22] sm:$0xff] }
 0x120   : > { %3657 = vmatprep.subr.bf16.mxu0 %v4135_v33  ;;  %v910_v58 = vld [vmem:[#allocation2 + $0x1b] sm:$0xff] }
 0x121   : > { %v924_v1 = vpack.c.bf16 %v910_v58, %v909_v63 }
 0x122   : > { %v404_v39 = vpop.trf.xlu0  ;;  %v465_v40 = vld [vmem:[#allocation2 + $0x29] sm:$0xff]  ;;  %3614 = vmatpush3.bf16.msra.mxu1 %v4139_v34 }
 0x123   : > { %v750_v42 = vld [vmem:[#allocation2 + $0x2a] sm:$0xff]  ;;  %3658 = vmatpush3.bf16.msra.mxu0 %v4135_v33  ;;  %421 = vst.msk [vmem:[#allocation2 + $0x3a] sm:$0xff] %vm413_vm1, %v404_v39  ;;  %v478_v43 = vpack.c.bf16 %v465_v40, %v464_v38  ;;  %3615 = vmatprep.subr.bf16.mxu1 %v4141_v37  ;;  %v430_v40 = vld [vmem:[#allocation2] sm:$0xff] }
 0x124   : > { %v763_v44 = vpack.c.bf16 %v750_v42, %v749_v41  ;;  %3659 = vmatprep.subr.bf16.mxu0 %v4136_v36  ;;  %v911_v3 = vld [vmem:[#allocation2 + $0x23] sm:$0xff]  ;;  %v1070_v34 = vld [vmem:[#allocation2 + $0xc] sm:$0xff] }
 0x125   : > { %3599 = vmatprep.mubr.msk.bf16.mxu1 %vm413_vm1, %v478_v43  ;;  %v431_v33 = vld [vmem:[#allocation2 + $0x8] sm:$0xff] }
 0x126   : > { %3643 = vmatprep.mubr.msk.bf16.mxu0 %vm413_vm1, %v763_v44  ;;  %v405_v46 = vpop.trf.xlu0  ;;  %3616 = vmatpush3.bf16.msra.mxu1 %v4141_v37  ;;  %v466_v47 = vld [vmem:[#allocation2 + $0x31] sm:$0xff]  ;;  %v1069_v41 = vld [vmem:[#allocation2 + $0x4] sm:$0xff]  ;;  %v446_v42 = vpack.c.bf16 %v431_v33, %v430_v40 }
 0x127   : > { %3660 = vmatpush3.bf16.msra.mxu0 %v4136_v36  ;;  %422 = vst.msk [vmem:[#allocation2 + $0x42] sm:$0xff] %vm413_vm1, %v405_v46  ;;  %3939 = vmatprep.subr.bf16.mxu1 %v4645_v6  ;;  %v751_v51 = vld [vmem:[#allocation2 + $0x32] sm:$0xff]  ;;  %v1085_v43 = vpack.c.bf16 %v1070_v34, %v1069_v41  ;;  %v435_v46 = vld [vmem:[#allocation2 + $0x28] sm:$0xff] }
 0x128   : > { %3677 = vmatprep.subr.bf16.mxu0 %v4138_v45  ;;  %v912_v59 = vld [vmem:[#allocation2 + $0x2b] sm:$0xff]  ;;  %v433_v44 = vld [vmem:[#allocation2 + $0x18] sm:$0xff] }
 0x129   : > { %v925_v5 = vpack.c.bf16 %v912_v59, %v911_v3 }
 0x12a   : > { %v406_v49 = vpop.trf.xlu0  ;;  %v467_v50 = vld [vmem:[#allocation2 + $0x39] sm:$0xff] }
 0x12b   : > { %v752_v52 = vld [vmem:[#allocation2 + $0x3a] sm:$0xff]  ;;  %423 = vst.msk [vmem:[#allocation2 + $0x4a] sm:$0xff] %vm413_vm1, %v406_v49  ;;  %v479_v53 = vpack.c.bf16 %v467_v50, %v466_v47  ;;  %v1074_v47 = vld [vmem:[#allocation2 + $0x2c] sm:$0xff]  ;;  %v447_v50 = vpack.c.bf16 %v433_v44, %v432_v48 }
 0x12c   : > { %v764_v54 = vpack.c.bf16 %v752_v52, %v751_v51  ;;  %v913_v16 = vld [vmem:[#allocation2 + $0x33] sm:$0xff]  ;;  %v434_v52 = vld [vmem:[#allocation2 + $0x20] sm:$0xff] }
 0x12d   : > { %3600 = vmatmul.mubr.msk.bf16.gmra.mrb[4].mxu1 %vm413_vm1, %v479_v53  ;;  %v1071_v49 = vld [vmem:[#allocation2 + $0x14] sm:$0xff]  ;;  %v1073_v53 = vld [vmem:[#allocation2 + $0x24] sm:$0xff] }
 0x12e   : > { %3644 = vmatmul.mubr.msk.bf16.gmra.mrb[4].mxu0 %vm413_vm1, %v764_v54  ;;  %v407_v57 = vpop.trf.xlu0  ;;  %v468_v61 = vld [vmem:[#allocation2 + $0x41] sm:$0xff]  ;;  %v448_v54 = vpack.c.bf16 %v435_v46, %v434_v52  ;;  %v1087_v55 = vpack.c.bf16 %v1074_v47, %v1073_v53 }
 0x12f   : > { %3661 = vmatprep.mubr.msk.bf16.mxu0 %vm413_vm1, %v923_v56  ;;  %424 = vst.msk [vmem:[#allocation2 + $0x52] sm:$0xff] %vm413_vm1, %v407_v57  ;;  %v914_v10 = vld [vmem:[#allocation2 + $0x3b] sm:$0xff] }
 0x130   : > { %v926_v18 = vpack.c.bf16 %v914_v10, %v913_v16  ;;  %v437_v56 = vld [vmem:[#allocation2 + $0x38] sm:$0xff] }
 0x131   : > { %v1076_v57 = vld [vmem:[#allocation2 + $0x3c] sm:$0xff] }
 0x132   : > { %v408_v60 = vpop.trf.xlu0  ;;  %v469_v62 = vld [vmem:[#allocation2 + $0x49] sm:$0xff] }
 0x133   : > { %425 = vst.msk [vmem:[#allocation2 + $0x5a] sm:$0xff] %vm413_vm1, %v408_v60  ;;  %v480_v0 = vpack.c.bf16 %v469_v62, %v468_v61  ;;  %v915_v19 = vld [vmem:[#allocation2 + $0x43] sm:$0xff]  ;;  %v436_v60 = vld [vmem:[#allocation2 + $0x30] sm:$0xff] }
 0x134   : > { %v439_v58 = vld [vmem:[#allocation2 + $0x48] sm:$0xff]  ;;  %v1075_v61 = vld [vmem:[#allocation2 + $0x34] sm:$0xff]  ;;  %v449_v62 = vpack.c.bf16 %v437_v56, %v436_v60 }
 0x135   : > { %3603 = vmatprep.mubr.msk.bf16.mxu1 %vm413_vm1, %v480_v0  ;;  %v1088_v63 = vpack.c.bf16 %v1076_v57, %v1075_v61  ;;  %v438_v0 = vld [vmem:[#allocation2 + $0x40] sm:$0xff] }
 0x136   : > { %3662 = vmatmul.mubr.msk.bf16.vlgmr.msra.gmra.mrb[0].mxu0 %vm413_vm1, %v924_v1  ;;  %v409_v7 = vpop.trf.xlu0  ;;  %v916_v11 = vld [vmem:[#allocation2 + $0x4b] sm:$0xff]  ;;  %v450_v3 = vpack.c.bf16 %v439_v58, %v438_v0 }
 0x137   : > { %3678 = vmatpush3.bf16.msra.mxu0 %v4138_v45  ;;  %3665 = vmatprep.mubr.msk.bf16.mxu0 %vm413_vm1, %v925_v5  ;;  %426 = vst.msk [vmem:[#allocation2 + $0x62] sm:$0xff] %vm413_vm1, %v409_v7  ;;  %v470_v14 = vld [vmem:[#allocation2 + $0x51] sm:$0xff]  ;;  %v927_v20 = vpack.c.bf16 %v916_v11, %v915_v19  ;;  %v1072_v45 = vld [vmem:[#allocation2 + $0x1c] sm:$0xff]  ;;  %v1077_v1 = vld [vmem:[#allocation2 + $0x44] sm:$0xff] }
 0x138   : > { %3679 = vmatprep.subr.bf16.mxu0 %v4140_v4  ;;  %v1086_v51 = vpack.c.bf16 %v1072_v45, %v1071_v49  ;;  %v1078_v59 = vld [vmem:[#allocation2 + $0x4c] sm:$0xff] }
 0x139   : > { %v440_v10 = vld [vmem:[#allocation2 + $0x50] sm:$0xff] }
 0x13a   : > { %v410_v13 = vpop.trf.xlu0  ;;  %v471_v15 = vld [vmem:[#allocation2 + $0x59] sm:$0xff] }
 0x13b   : > { %3680 = vmatpush3.bf16.msra.mxu0 %v4140_v4  ;;  %427 = vst.msk [vmem:[#allocation2 + $0x6a] sm:$0xff] %vm413_vm1, %v410_v13  ;;  %v481_v17 = vpack.c.bf16 %v471_v15, %v470_v14  ;;  %v917_v26 = vld [vmem:[#allocation2 + $0x53] sm:$0xff]  ;;  %v1089_v4 = vpack.c.bf16 %v1078_v59, %v1077_v1 }
 0x13c   : > { %3681 = vmatprep.subr.bf16.mxu0 %v4142_v8 }
 0x13d   : > { %3604 = vmatmul.mubr.msk.bf16.gmra.mrb[8].mxu1 %vm413_vm1, %v481_v17 }
 0x13e   : > { %3666 = vmatmul.mubr.msk.bf16.gmra.mrb[8].mxu0 %vm413_vm1, %v926_v18  ;;  %v411_v21 = vpop.trf.xlu0  ;;  %v918_v22 = vld [vmem:[#allocation2 + $0x5b] sm:$0xff] }
 0x13f   : > { %3669 = vmatprep.mubr.msk.bf16.mxu0 %vm413_vm1, %v927_v20  ;;  %3682 = vmatpush3.bf16.msra.mxu0 %v4142_v8  ;;  %428 = vst.msk [vmem:[#allocation2 + $0x72] sm:$0xff] %vm413_vm1, %v411_v21  ;;  %v472_v24 = vld [vmem:[#allocation2 + $0x61] sm:$0xff]  ;;  %v928_v28 = vpack.c.bf16 %v918_v22, %v917_v26  ;;  %v754_v20 = vld [vmem:[#allocation2 + $0x4a] sm:$0xff] }
 0x140   : > { %v1080_v5 = vld [vmem:[#allocation2 + $0x5c] sm:$0xff] }
 0x141   : > { %v442_v14 = vld [vmem:[#allocation2 + $0x60] sm:$0xff] }
 0x142   : > { %v412_v23 = vpop.trf.xlu0  ;;  %v473_v25 = vld [vmem:[#allocation2 + $0x69] sm:$0xff]  ;;  %v756_v26 = vld [vmem:[#allocation2 + $0x5a] sm:$0xff] }
 0x143   : > { %429 = vst.msk [vmem:[#allocation2 + $0x7a] sm:$0xff] %vm413_vm1, %v412_v23  ;;  %v482_v27 = vpack.c.bf16 %v473_v25, %v472_v24  ;;  %v919_v29 = vld [vmem:[#allocation2 + $0x63] sm:$0xff] }
 0x144   : > { %v443_v7 = vld [vmem:[#allocation2 + $0x68] sm:$0xff] }
 0x145   : > { %3607 = vmatprep.mubr.msk.bf16.mxu1 %vm413_vm1, %v482_v27  ;;  %v1081_v15 = vld [vmem:[#allocation2 + $0x64] sm:$0xff]  ;;  %v452_v16 = vpack.c.bf16 %v443_v7, %v442_v14 }
 0x146   : > { %3670 = vmatmul.mubr.msk.bf16.gmra.mrb[12].mxu0 %vm413_vm1, %v928_v28  ;;  %v920_v30 = vld [vmem:[#allocation2 + $0x6b] sm:$0xff]  ;;  %v753_v24 = vld [vmem:[#allocation2 + $0x42] sm:$0xff] }
 0x147   : > { %v929_v31 = vpack.c.bf16 %v920_v30, %v919_v29  ;;  %v474_v32 = vld [vmem:[#allocation2 + $0x71] sm:$0xff]  ;;  %v765_v25 = vpack.c.bf16 %v754_v20, %v753_v24  ;;  %v757_v30 = vld [vmem:[#allocation2 + $0x62] sm:$0xff] }
 0x148   : > { %v1082_v8 = vld [vmem:[#allocation2 + $0x6c] sm:$0xff] }
 0x149   : > { %3673 = vmatprep.mubr.msk.bf16.mxu0 %vm413_vm1, %v929_v31  ;;  %v1091_v17 = vpack.c.bf16 %v1082_v8, %v1081_v15  ;;  %v444_v21 = vld [vmem:[#allocation2 + $0x70] sm:$0xff] }
 0x14a   : > { %v475_v35 = vld [vmem:[#allocation2 + $0x79] sm:$0xff]  ;;  %v758_v27 = vld [vmem:[#allocation2 + $0x6a] sm:$0xff] }
 0x14b   : > { %v921_v36 = vld [vmem:[#allocation2 + $0x73] sm:$0xff]  ;;  %v922_v37 = vld [vmem:[#allocation2 + $0x7b] sm:$0xff]  ;;  %v483_v38 = vpack.c.bf16 %v475_v35, %v474_v32  ;;  %v767_v31 = vpack.c.bf16 %v758_v27, %v757_v30 }
 0x14c   : > { %v930_v39 = vpack.c.bf16 %v922_v37, %v921_v36  ;;  %v1083_v18 = vld [vmem:[#allocation2 + $0x74] sm:$0xff]  ;;  %v1084_v19 = vld [vmem:[#allocation2 + $0x7c] sm:$0xff] }
 0x14d   : > { %3608 = vmatmul.mubr.msk.bf16.gmra.mrb[12].mxu1 %vm413_vm1, %v483_v38  ;;  %v1092_v23 = vpack.c.bf16 %v1084_v19, %v1083_v18  ;;  %v755_v28 = vld [vmem:[#allocation2 + $0x52] sm:$0xff]  ;;  %v760_v32 = vld [vmem:[#allocation2 + $0x7a] sm:$0xff]  ;;  %v4146_v38 = vld [vmem:[#allocation10 + $0x38] sm:$0xff]  }
 0x14e   : > { %3674 = vmatmul.mubr.msk.bf16.gmra.mrb[16].mxu0 %vm413_vm1, %v930_v39  ;;  %3617 = vmatprep.mubr.msk.bf16.mxu1 %vm413_vm1, %v446_v42  ;;  %v766_v29 = vpack.c.bf16 %v756_v26, %v755_v28  ;;  %v759_v33 = vld [vmem:[#allocation2 + $0x72] sm:$0xff]  ;;  %v4145_v37 = vld [vmem:[#allocation10 + $0x30] sm:$0xff]  }
 0x14f   : > { %3683 = vmatprep.mubr.msk.bf16.mxu0 %vm413_vm1, %v1085_v43  ;;  %v768_v34 = vpack.c.bf16 %v760_v32, %v759_v33  ;;  %v4143_v35 = vld [vmem:[#allocation10 + $0x20] sm:$0xff]   ;;  %v4144_v36 = vld [vmem:[#allocation10 + $0x28] sm:$0xff]  }
 0x150   : > { %v4771_v39 = vld [vmem:[#allocation10] sm:$0xff]  }
 0x155   : > { %3618 = vmatmul.mubr.msk.bf16.vlgmr.msra.gmra.mrb[0].mxu1 %vm413_vm1, %v447_v50 }
 0x156   : > { %3684 = vmatmul.mubr.msk.bf16.vlgmr.msra.gmra.mrb[0].mxu0 %vm413_vm1, %v1086_v51  ;;  %3621 = vmatprep.mubr.msk.bf16.mxu1 %vm413_vm1, %v448_v54 }
 0x157   : > { %3687 = vmatprep.mubr.msk.bf16.mxu0 %vm413_vm1, %v1087_v55  ;;  %3942 = vmatpush3.bf16.msra.mxu1 %v4645_v6  ;;  %v441_v6 = vld [vmem:[#allocation2 + $0x58] sm:$0xff] }
 0x158   : > { %3940 = vmatprep.subr.bf16.mxu1 %v4649_v9  ;;  %v451_v11 = vpack.c.bf16 %v441_v6, %v440_v10 }
 0x15b   : > { %3943 = vmatpush3.bf16.msra.mxu1 %v4649_v9  ;;  %v1079_v9 = vld [vmem:[#allocation2 + $0x54] sm:$0xff] }
 0x15c   : > { %3941 = vmatprep.subr.bf16.mxu1 %v4653_v12  ;;  %v1090_v13 = vpack.c.bf16 %v1080_v5, %v1079_v9  ;;  %v3285_v5 = vld [vmem:[%s4929_s2] ss:$0 sm:$0xff] }
 0x15d   : > { %3622 = vmatmul.mubr.msk.bf16.gmra.mrb[16].mxu1 %vm413_vm1, %v449_v62 }
 0x15e   : > { %3688 = vmatmul.mubr.msk.bf16.gmra.mrb[20].mxu0 %vm413_vm1, %v1088_v63  ;;  %3625 = vmatprep.mubr.msk.bf16.mxu1 %vm413_vm1, %v450_v3 }
 0x15f   : > { %3691 = vmatprep.mubr.msk.bf16.mxu0 %vm413_vm1, %v1089_v4  ;;  %3944 = vmatpush3.bf16.msra.mxu1 %v4653_v12  ;;  %v445_v12 = vld [vmem:[#allocation2 + $0x78] sm:$0xff] }
 0x160   : > { %v453_v22 = vpack.c.bf16 %v445_v12, %v444_v21  ;;  %3699 = vmatprep.subr.bf16.mxu1 %v4143_v35 }
 0x165   : > { %3626 = vmatmul.mubr.msk.bf16.gmra.mrb[20].mxu1 %vm413_vm1, %v451_v11 }
 0x166   : > { %3692 = vmatmul.mubr.msk.bf16.gmra.mrb[24].mxu0 %vm413_vm1, %v1090_v13  ;;  %3629 = vmatprep.mubr.msk.bf16.mxu1 %vm413_vm1, %v452_v16 }
 0x167   : > { %3695 = vmatprep.mubr.msk.bf16.mxu0 %vm413_vm1, %v1091_v17 }
 0x16d   : > { %3630 = vmatmul.mubr.msk.bf16.gmra.mrb[24].mxu1 %vm413_vm1, %v453_v22 }
 0x16e   : > { %3696 = vmatmul.mubr.msk.bf16.gmra.mrb[28].mxu0 %vm413_vm1, %v1092_v23  ;;  %3647 = vmatprep.mubr.msk.bf16.mxu1 %vm413_vm1, %v765_v25 }
 0x175   : > { %3648 = vmatmul.mubr.msk.bf16.vlgmr.msra.gmra.mrb[28].mxu1 %vm413_vm1, %v766_v29 }
 0x176   : > { %3651 = vmatprep.mubr.msk.bf16.mxu1 %vm413_vm1, %v767_v31  ;;  %3700 = vmatpush3.bf16.msra.mxu1 %v4143_v35  ;;  %v1283_v31 = vld [vmem:[#allocation3 + $0x29] sm:$0xff] }
 0x177   : > { %3701 = vmatprep.subr.bf16.mxu1 %v4144_v36 }
 0x17a   : > { %3702 = vmatpush3.bf16.msra.mxu1 %v4144_v36 }
 0x17b   : > { %3703 = vmatprep.subr.bf16.mxu1 %v4145_v37 }
 0x17d   : > { %3652 = vmatmul.mubr.msk.bf16.gmra.mrb[32].mxu1 %vm413_vm1, %v768_v34 }
 0x17e   : > { %3704 = vmatpush3.bf16.msra.mxu1 %v4145_v37 }
 0x17f   : > { %3705 = vmatprep.subr.bf16.mxu1 %v4146_v38 }
 0x182   : > { %3706 = vmatpush3.bf16.msra.mxu1 %v4146_v38 }
 0x183   : > { %3723 = vmatprep.subr.bf16.mxu1 %v4771_v39 }
 0x200   : > { %v3601_v40 = vpop.f32.mrb[4].mxu1 }
 0x201   : > { %v3645_v41 = vpop.f32.mrb[4].mxu0  ;;  %v583_v42 = vpop.f32.mrb[5].mxu1 }
 0x202   : > { %v868_v43 = vpop.f32.mrb[5].mxu0  ;;  %v3602_v44 = vpop.f32.mrb[6].mxu1  ;;  %v4148_v42 = vld [vmem:[#allocation10 + $0x8] sm:$0xff]  }
 0x203   : > { %v3646_v45 = vpop.f32.mrb[6].mxu0  ;;  %v585_v46 = vpop.f32.mrb[7].mxu1 }
 0x204   : > { %v870_v2 = vpop.f32.mrb[7].mxu0 }
 0x210   : > { %v3605_v47 = vpop.f32.mrb[8].mxu1 }
 0x211   : > { %v3667_v48 = vpop.f32.mrb[8].mxu0  ;;  %v595_v49 = vpop.f32.mrb[9].mxu1  ;;  %v1284_v47 = vld [vmem:[#allocation3 + $0x31] sm:$0xff] }
 0x212   : > { %v1030_v50 = vpop.f32.mrb[9].mxu0  ;;  %v3606_v51 = vpop.f32.mrb[10].mxu1  ;;  %v1285_v48 = vld [vmem:[#allocation3 + $0x39] sm:$0xff]  ;;  %v1286_v49 = vld [vmem:[#allocation3 + $0x41] sm:$0xff] }
 0x213   : > { %v3668_v52 = vpop.f32.mrb[10].mxu0  ;;  %v597_v53 = vpop.f32.mrb[11].mxu1  ;;  %v1287_v50 = vld [vmem:[#allocation3 + $0x49] sm:$0xff]  ;;  %v4149_v51 = vld [vmem:[#allocation10 + $0x10] sm:$0xff]  }
 0x214   : > { %v1032_v54 = vpop.f32.mrb[11].mxu0  ;;  %v1297_v52 = vpack.c.bf16 %v1285_v48, %v1284_v47  ;;  %v1581_v48 = vld [vmem:[#allocation3 + $0x22] sm:$0xff] }
 0x219   : > { %v3671_v55 = vpop.f32.mrb[12].mxu0 }
 0x21a   : > { %v1042_v56 = vpop.f32.mrb[13].mxu0  ;;  %v1298_v55 = vpack.c.bf16 %v1287_v50, %v1286_v49  ;;  %v1582_v49 = vld [vmem:[#allocation3 + $0x2a] sm:$0xff] }
 0x21b   : > { %v3672_v57 = vpop.f32.mrb[14].mxu0 }
 0x21c   : > { %v1044_v58 = vpop.f32.mrb[15].mxu0 }
 0x21d   : > { %v4150_v58 = vld [vmem:[#allocation10 + $0x18] sm:$0xff]  }
 0x220   : > { %v3609_v59 = vpop.f32.mrb[12].mxu1 }
 0x221   : > { %v3675_v60 = vpop.f32.mrb[16].mxu0  ;;  %v607_v61 = vpop.f32.mrb[13].mxu1 }
 0x222   : > { %v1054_v62 = vpop.f32.mrb[17].mxu0  ;;  %v3610_v63 = vpop.f32.mrb[14].mxu1 }
 0x223   : > { %v3676_v0 = vpop.f32.mrb[18].mxu0  ;;  %v609_v1 = vpop.f32.mrb[15].mxu1  ;;  %v1288_v62 = vld [vmem:[#allocation3 + $0x51] sm:$0xff]  ;;  %v1289_v63 = vld [vmem:[#allocation3 + $0x59] sm:$0xff] }
 0x224   : > { %v1056_v3 = vpop.f32.mrb[19].mxu0  ;;  %v1290_v0 = vld [vmem:[#allocation3 + $0x61] sm:$0xff]  ;;  %v1291_v1 = vld [vmem:[#allocation3 + $0x69] sm:$0xff] }
 0x225   : > { %v4151_v3 = vld [vmem:[#allocation10 + $0x40] sm:$0xff]  }
 0x228   : > { %v3619_v4 = vpop.f32.mrb[0].mxu1 }
 0x229   : > { %v3685_v6 = vpop.f32.mrb[0].mxu0  ;;  %v694_v8 = vpop.f32.mrb[1].mxu1 }
 0x22a   : > { %v3945_v7 = vadd.f32 %v3685_v6, %v3619_v4  ;;  %v1176_v10 = vpop.f32.mrb[1].mxu0  ;;  %v3620_v11 = vpop.f32.mrb[2].mxu1  ;;  %v1299_v4 = vpack.c.bf16 %v1289_v63, %v1288_v62  ;;  %v1587_v62 = vld [vmem:[#allocation3 + $0x52] sm:$0xff]  ;;  %v1588_v63 = vld [vmem:[#allocation3 + $0x5a] sm:$0xff] }
 0x22b   : > { %v3946_v9 = vadd.f32 %v1176_v10, %v694_v8  ;;  %v3686_v13 = vpop.f32.mrb[2].mxu0  ;;  %v697_v16 = vpop.f32.mrb[3].mxu1 }
 0x22c   : > { %v1240_v14 = vadd.f32 %v3945_v7, %v3285_v5  ;;  %v3947_v15 = vadd.f32 %v3686_v13, %v3620_v11  ;;  %v1179_v17 = vpop.f32.mrb[3].mxu0  ;;  %v1293_v11 = vld [vmem:[#allocation3 + $0x79] sm:$0xff] }
 0x22d   : > { %v1238_v12 = vadd.f32 %v3946_v9, %v3285_v5  ;;  %v3948_v18 = vadd.f32 %v1179_v17, %v697_v16  ;;  %v1292_v9 = vld [vmem:[#allocation3 + $0x71] sm:$0xff] }
 0x22e   : > { %1244 = vst.msk [vmem:[#allocation3 + $0x12] sm:$0xff] %vm347_vm2, %v1240_v14  ;;  %v1241_v19 = vadd.f32 %v3947_v15, %v3285_v5  ;;  %v1301_v13 = vpack.c.bf16 %v1293_v11, %v1292_v9 }
 0x22f   : > { %1242 = vst.msk [vmem:[#allocation3 + $0x2] sm:$0xff] %vm347_vm2, %v1238_v12  ;;  %v1239_v20 = vadd.f32 %v3948_v18, %v3285_v5  ;;  %v1300_v5 = vpack.c.bf16 %v1291_v1, %v1290_v0  ;;  %v1589_v0 = vld [vmem:[#allocation3 + $0x62] sm:$0xff]  ;;  %v1590_v1 = vld [vmem:[#allocation3 + $0x6a] sm:$0xff] }
 0x230   : > { %1245 = vst.msk [vmem:[#allocation3 + $0x1a] sm:$0xff] %vm347_vm2, %v1241_v19  ;;  %v3623_v21 = vpop.f32.mrb[16].mxu1 }
 0x231   : > { %1243 = vst.msk [vmem:[#allocation3 + $0xa] sm:$0xff] %vm347_vm2, %v1239_v20  ;;  %v3689_v22 = vpop.f32.mrb[20].mxu0  ;;  %v710_v23 = vpop.f32.mrb[17].mxu1 }
 0x232   : > { %v1192_v24 = vpop.f32.mrb[21].mxu0  ;;  %v3624_v25 = vpop.f32.mrb[18].mxu1  ;;  %v1251_v23 = vld [vmem:[#allocation3 + $0x28] sm:$0xff] }
 0x233   : > { %v3690_v26 = vpop.f32.mrb[22].mxu0  ;;  %v712_v27 = vpop.f32.mrb[19].mxu1  ;;  %v4152_v25 = vld [vmem:[#allocation10 + $0x48] sm:$0xff]  }
 0x234   : > { %v1194_v28 = vpop.f32.mrb[23].mxu0  ;;  %v1252_v27 = vld [vmem:[#allocation3 + $0x30] sm:$0xff] }
 0x235   : > { %v1253_v28 = vld [vmem:[#allocation3 + $0x38] sm:$0xff] }
 0x236   : > { %v1278_v29 = vld [vmem:[#allocation3 + $0x1] sm:$0xff] }
 0x237   : > { %v1281_v30 = vld [vmem:[#allocation3 + $0x19] sm:$0xff]  ;;  %v1282_v34 = vld [vmem:[#allocation3 + $0x21] sm:$0xff] }
 0x238   : > { %v1279_v32 = vld [vmem:[#allocation3 + $0x9] sm:$0xff]  ;;  %v1280_v33 = vld [vmem:[#allocation3 + $0x11] sm:$0xff]  ;;  %v3627_v35 = vpop.f32.mrb[20].mxu1  ;;  %v1296_v45 = vpack.c.bf16 %v1283_v31, %v1282_v34  ;;  %v1246_v17 = vld [vmem:[#allocation3] sm:$0xff] }
 0x239   : > { %v3693_v36 = vpop.f32.mrb[24].mxu0  ;;  %v1294_v37 = vpack.c.bf16 %v1279_v32, %v1278_v29  ;;  %v1295_v38 = vpack.c.bf16 %v1281_v30, %v1280_v33  ;;  %v722_v40 = vpop.f32.mrb[21].mxu1  ;;  %v1247_v14 = vld [vmem:[#allocation3 + $0x8] sm:$0xff]  ;;  %v1248_v20 = vld [vmem:[#allocation3 + $0x10] sm:$0xff]  ;;  %v1249_v21 = vld [vmem:[#allocation3 + $0x18] sm:$0xff]  ;;  %v1265_v32 = vpack.c.bf16 %v1253_v28, %v1252_v27 }
 0x23a   : > { %v1204_v41 = vpop.f32.mrb[25].mxu0  ;;  %v3628_v43 = vpop.f32.mrb[22].mxu1  ;;  %v1262_v18 = vpack.c.bf16 %v1247_v14, %v1246_v17  ;;  %v1250_v22 = vld [vmem:[#allocation3 + $0x20] sm:$0xff]  ;;  %v1263_v24 = vpack.c.bf16 %v1249_v21, %v1248_v20  ;;  %v1255_v30 = vld [vmem:[#allocation3 + $0x48] sm:$0xff]  ;;  %v4153_v31 = vld [vmem:[#allocation10 + $0x50] sm:$0xff]  }
 0x23b   : > { %v3694_v44 = vpop.f32.mrb[26].mxu0  ;;  %3707 = vmatprep.mubr.msk.bf16.mxu1 %vm347_vm2, %v1294_v37  ;;  %v724_v46 = vpop.f32.mrb[23].mxu1  ;;  %v1264_v26 = vpack.c.bf16 %v1251_v23, %v1250_v22  ;;  %v1254_v29 = vld [vmem:[#allocation3 + $0x40] sm:$0xff]  ;;  %v1256_v35 = vld [vmem:[#allocation3 + $0x50] sm:$0xff]  ;;  %v1257_v36 = vld [vmem:[#allocation3 + $0x58] sm:$0xff] }
 0x23c   : > { %v1206_v2 = vpop.f32.mrb[27].mxu0  ;;  %3708 = vmatmul.mubr.msk.bf16.vlgmr.msra.gmra.mrb[36].mxu1 %vm347_vm2, %v1295_v38  ;;  %v1266_v33 = vpack.c.bf16 %v1255_v30, %v1254_v29  ;;  %v4154_v34 = vld [vmem:[#allocation10 + $0x58] sm:$0xff]   ;;  %v1259_v38 = vld [vmem:[#allocation3 + $0x68] sm:$0xff]  ;;  %v1267_v41 = vpack.c.bf16 %v1257_v36, %v1256_v35  ;;  %v1260_v43 = vld [vmem:[#allocation3 + $0x70] sm:$0xff] }
 0x23d   : > { %3724 = vmatpush3.bf16.msra.mxu1 %v4771_v39  ;;  %3711 = vmatprep.mubr.msk.bf16.mxu1 %vm347_vm2, %v1296_v45  ;;  %v1258_v37 = vld [vmem:[#allocation3 + $0x60] sm:$0xff]  ;;  %v4155_v40 = vld [vmem:[#allocation10 + $0x60] sm:$0xff]   ;;  %v1261_v44 = vld [vmem:[#allocation3 + $0x78] sm:$0xff] }
 0x23e   : > { %3725 = vmatprep.subr.bf16.mxu1 %v4148_v42  ;;  %v1269_v45 = vpack.c.bf16 %v1261_v44, %v1260_v43  ;;  %v1578_v46 = vld [vmem:[#allocation3 + $0xa] sm:$0xff]  ;;  %v1577_v2 = vld [vmem:[#allocation3 + $0x2] sm:$0xff]  ;;  %v1580_v50 = vld [vmem:[#allocation3 + $0x1a] sm:$0xff] }
 0x23f   : > { %v1593_v47 = vpack.c.bf16 %v1578_v46, %v1577_v2  ;;  %v1748_v9 = vld [vmem:[#allocation3 + $0xb] sm:$0xff]  ;;  %v1754_v20 = vld [vmem:[#allocation3 + $0x3b] sm:$0xff]  ;;  %v1755_v21 = vld [vmem:[#allocation3 + $0x43] sm:$0xff] }
 0x240   : > { %v3631_v53 = vpop.f32.mrb[24].mxu1  ;;  %v1752_v14 = vld [vmem:[#allocation3 + $0x2b] sm:$0xff]  ;;  %v4161_v23 = vld [vmem:[#allocation10 + $0x90] sm:$0xff]   ;;  %v1759_v29 = vld [vmem:[#allocation3 + $0x63] sm:$0xff] }
 0x241   : > { %v3697_v54 = vpop.f32.mrb[28].mxu0  ;;  %3726 = vmatpush3.bf16.msra.mxu1 %v4148_v42  ;;  %v734_v56 = vpop.f32.mrb[25].mxu1  ;;  %v1268_v42 = vpack.c.bf16 %v1259_v38, %v1258_v37  ;;  %v1756_v22 = vld [vmem:[#allocation3 + $0x4b] sm:$0xff]  ;;  %v1757_v27 = vld [vmem:[#allocation3 + $0x53] sm:$0xff]  ;;  %v1758_v28 = vld [vmem:[#allocation3 + $0x5b] sm:$0xff] }
 0x242   : > { %v1216_v57 = vpop.f32.mrb[29].mxu0  ;;  %3727 = vmatprep.subr.bf16.mxu1 %v4149_v51  ;;  %v3632_v59 = vpop.f32.mrb[26].mxu1  ;;  %v4156_v54 = vld [vmem:[#allocation10 + $0x68] sm:$0xff]   ;;  %v1584_v56 = vld [vmem:[#allocation3 + $0x3a] sm:$0xff]  ;;  %v1917_v36 = vld [vmem:[#allocation3 + $0x4] sm:$0xff] }
 0x243   : > { %v3698_v60 = vpop.f32.mrb[30].mxu0  ;;  %v736_v39 = vpop.f32.mrb[27].mxu1  ;;  %v1585_v57 = vld [vmem:[#allocation3 + $0x42] sm:$0xff]  ;;  %v4157_v59 = vld [vmem:[#allocation10 + $0x70] sm:$0xff]   ;;  %v1760_v30 = vld [vmem:[#allocation3 + $0x6b] sm:$0xff] }
 0x244   : > { %v1218_v61 = vpop.f32.mrb[31].mxu0  ;;  %3712 = vmatmul.mubr.msk.bf16.gmra.mrb[40].mxu1 %vm347_vm2, %v1297_v52  ;;  %v1595_v52 = vpack.c.bf16 %v1582_v49, %v1581_v48  ;;  %v1918_v37 = vld [vmem:[#allocation3 + $0xc] sm:$0xff]  ;;  %v4166_v46 = vld [vmem:[#allocation11 + $0x38] sm:$0xff]  }
 0x245   : > { %3715 = vmatprep.mubr.msk.bf16.mxu1 %vm347_vm2, %v1298_v55  ;;  %3728 = vmatpush3.bf16.msra.mxu1 %v4149_v51  ;;  %v1579_v51 = vld [vmem:[#allocation3 + $0x12] sm:$0xff]  ;;  %v4158_v61 = vld [vmem:[#allocation10 + $0x78] sm:$0xff]   ;;  %v1933_v38 = vpack.c.bf16 %v1918_v37, %v1917_v36  ;;  %v4163_v43 = vld [vmem:[#allocation11 + $0x20] sm:$0xff]  }
 0x246   : > { %3729 = vmatprep.subr.bf16.mxu1 %v4150_v58  ;;  %v1594_v53 = vpack.c.bf16 %v1580_v50, %v1579_v51  ;;  %v1583_v55 = vld [vmem:[#allocation3 + $0x32] sm:$0xff]  ;;  %3819 = vmatprep.subr.bf16.mxu0 %v4163_v43  ;;  %v4816_v51 = vld [vmem:[#allocation11] sm:$0xff]  }
 0x247   : > { %v1596_v60 = vpack.c.bf16 %v1584_v56, %v1583_v55  ;;  %3820 = vmatpush3.bf16.msra.mxu0 %v4163_v43  ;;  %v4164_v44 = vld [vmem:[#allocation11 + $0x28] sm:$0xff]  }
 0x248   : > { %v3649_v6 = vpop.f32.mrb[28].mxu1  ;;  %3821 = vmatprep.subr.bf16.mxu0 %v4164_v44  ;;  %v2139_v43 = vld [vmem:[#allocation4 + $0x29] sm:$0xff] }
 0x249   : > { %3730 = vmatpush3.bf16.msra.mxu1 %v4150_v58  ;;  %v880_v7 = vpop.f32.mrb[29].mxu1  ;;  %v1586_v58 = vld [vmem:[#allocation3 + $0x4a] sm:$0xff]  ;;  %v1599_v6 = vpack.c.bf16 %v1590_v1, %v1589_v0 }
 0x24a   : > { %3747 = vmatprep.subr.bf16.mxu1 %v4151_v3  ;;  %v3650_v8 = vpop.f32.mrb[30].mxu1  ;;  %v1597_v39 = vpack.c.bf16 %v1586_v58, %v1585_v57  ;;  %v1592_v7 = vld [vmem:[#allocation3 + $0x7a] sm:$0xff] }
 0x24b   : > { %v882_v10 = vpop.f32.mrb[31].mxu1  ;;  %3822 = vmatpush3.bf16.msra.mxu0 %v4164_v44 }
 0x24c   : > { %3716 = vmatmul.mubr.msk.bf16.gmra.mrb[44].mxu1 %vm347_vm2, %v1299_v4  ;;  %v1598_v4 = vpack.c.bf16 %v1588_v63, %v1587_v62  ;;  %v1747_v10 = vld [vmem:[#allocation3 + $0x3] sm:$0xff] }
 0x24d   : > { %3719 = vmatprep.mubr.msk.bf16.mxu1 %vm347_vm2, %v1300_v5  ;;  %v1591_v5 = vld [vmem:[#allocation3 + $0x72] sm:$0xff]  ;;  %v1763_v11 = vpack.c.bf16 %v1748_v9, %v1747_v10 }
 0x24e   : > { %v1600_v8 = vpack.c.bf16 %v1592_v7, %v1591_v5 }
 0x250   : > { %v3653_v15 = vpop.f32.mrb[32].mxu1 }
 0x251   : > { %v892_v16 = vpop.f32.mrb[33].mxu1  ;;  %v1749_v15 = vld [vmem:[#allocation3 + $0x13] sm:$0xff] }
 0x252   : > { %v3654_v12 = vpop.f32.mrb[34].mxu1  ;;  %v1750_v16 = vld [vmem:[#allocation3 + $0x1b] sm:$0xff] }
 0x253   : > { %v894_v19 = vpop.f32.mrb[35].mxu1  ;;  %v1764_v12 = vpack.c.bf16 %v1750_v16, %v1749_v15 }
 0x254   : > { %3720 = vmatmul.mubr.msk.bf16.gmra.mrb[48].mxu1 %vm347_vm2, %v1301_v13  ;;  %v1751_v13 = vld [vmem:[#allocation3 + $0x23] sm:$0xff]  ;;  %v1753_v19 = vld [vmem:[#allocation3 + $0x33] sm:$0xff] }
 0x255   : > { %3731 = vmatprep.mubr.msk.bf16.mxu1 %vm347_vm2, %v1262_v18  ;;  %v1765_v17 = vpack.c.bf16 %v1752_v14, %v1751_v13  ;;  %v4160_v18 = vld [vmem:[#allocation10 + $0x88] sm:$0xff]  }
 0x25c   : > { %3732 = vmatmul.mubr.msk.bf16.vlgmr.msra.gmra.mrb[36].mxu1 %vm347_vm2, %v1263_v24  ;;  %v1766_v24 = vpack.c.bf16 %v1754_v20, %v1753_v19 }
 0x25d   : > { %3748 = vmatpush3.bf16.msra.mxu1 %v4151_v3  ;;  %3735 = vmatprep.mubr.msk.bf16.mxu1 %vm347_vm2, %v1264_v26  ;;  %v4159_v3 = vld [vmem:[#allocation10 + $0x80] sm:$0xff]   ;;  %v4162_v26 = vld [vmem:[#allocation10 + $0x98] sm:$0xff]  }
 0x25e   : > { %3749 = vmatprep.subr.bf16.mxu1 %v4152_v25 }
 0x261   : > { %3750 = vmatpush3.bf16.msra.mxu1 %v4152_v25  ;;  %v1767_v25 = vpack.c.bf16 %v1756_v22, %v1755_v21 }
 0x262   : > { %3751 = vmatprep.subr.bf16.mxu1 %v4153_v31 }
 0x264   : > { %3736 = vmatmul.mubr.msk.bf16.gmra.mrb[52].mxu1 %vm347_vm2, %v1265_v32  ;;  %v1769_v32 = vpack.c.bf16 %v1760_v30, %v1759_v29 }
 0x265   : > { %3739 = vmatprep.mubr.msk.bf16.mxu1 %vm347_vm2, %v1266_v33  ;;  %3752 = vmatpush3.bf16.msra.mxu1 %v4153_v31  ;;  %v1768_v31 = vpack.c.bf16 %v1758_v28, %v1757_v27  ;;  %v1761_v33 = vld [vmem:[#allocation3 + $0x73] sm:$0xff] }
 0x266   : > { %3753 = vmatprep.subr.bf16.mxu1 %v4154_v34 }
 0x269   : > { %3754 = vmatpush3.bf16.msra.mxu1 %v4154_v34  ;;  %v1762_v34 = vld [vmem:[#allocation3 + $0x7b] sm:$0xff] }
 0x26a   : > { %3771 = vmatprep.subr.bf16.mxu1 %v4155_v40  ;;  %v1770_v35 = vpack.c.bf16 %v1762_v34, %v1761_v33 }
 0x26c   : > { %3740 = vmatmul.mubr.msk.bf16.gmra.mrb[56].mxu1 %vm347_vm2, %v1267_v41  ;;  %v1920_v41 = vld [vmem:[#allocation3 + $0x1c] sm:$0xff] }
 0x26d   : > { %3743 = vmatprep.mubr.msk.bf16.mxu1 %vm347_vm2, %v1268_v42 }
 0x274   : > { %3744 = vmatmul.mubr.msk.bf16.gmra.mrb[60].mxu1 %vm347_vm2, %v1269_v45  ;;  %v4165_v45 = vld [vmem:[#allocation11 + $0x30] sm:$0xff]  }
 0x275   : > { %3755 = vmatprep.mubr.msk.bf16.mxu1 %vm347_vm2, %v1593_v47  ;;  %3823 = vmatprep.subr.bf16.mxu0 %v4165_v45 }
 0x276   : > { %3824 = vmatpush3.bf16.msra.mxu0 %v4165_v45 }
 0x277   : > { %3825 = vmatprep.subr.bf16.mxu0 %v4166_v46 }
 0x27a   : > { %3826 = vmatpush3.bf16.msra.mxu0 %v4166_v46 }
 0x27b   : > { %3843 = vmatprep.subr.bf16.mxu0 %v4816_v51 }
 0x27c   : > { %3756 = vmatmul.mubr.msk.bf16.vlgmr.msra.gmra.mrb[36].mxu1 %vm347_vm2, %v1594_v53 }
 0x27d   : > { %3772 = vmatpush3.bf16.msra.mxu1 %v4155_v40  ;;  %3759 = vmatprep.mubr.msk.bf16.mxu1 %vm347_vm2, %v1595_v52  ;;  %v1919_v40 = vld [vmem:[#allocation3 + $0x14] sm:$0xff] }
 0x27e   : > { %3773 = vmatprep.subr.bf16.mxu1 %v4156_v54  ;;  %v1934_v42 = vpack.c.bf16 %v1920_v41, %v1919_v40 }
 0x281   : > { %3774 = vmatpush3.bf16.msra.mxu1 %v4156_v54 }
 0x282   : > { %3775 = vmatprep.subr.bf16.mxu1 %v4157_v59 }
 0x284   : > { %3760 = vmatmul.mubr.msk.bf16.gmra.mrb[64].mxu1 %vm347_vm2, %v1596_v60 }
 0x285   : > { %3763 = vmatprep.mubr.msk.bf16.mxu1 %vm347_vm2, %v1597_v39  ;;  %3776 = vmatpush3.bf16.msra.mxu1 %v4157_v59 }
 0x286   : > { %3777 = vmatprep.subr.bf16.mxu1 %v4158_v61 }
 0x289   : > { %3778 = vmatpush3.bf16.msra.mxu1 %v4158_v61 }
 0x28a   : > { %3795 = vmatprep.subr.bf16.mxu1 %v4159_v3 }
 0x28c   : > { %3764 = vmatmul.mubr.msk.bf16.gmra.mrb[68].mxu1 %vm347_vm2, %v1598_v4 }
 0x28d   : > { %3767 = vmatprep.mubr.msk.bf16.mxu1 %vm347_vm2, %v1599_v6 }
 0x294   : > { %3768 = vmatmul.mubr.msk.bf16.gmra.mrb[72].mxu1 %vm347_vm2, %v1600_v8 }
 0x295   : > { %3779 = vmatprep.mubr.msk.bf16.mxu1 %vm347_vm2, %v1763_v11 }
 0x29c   : > { %3780 = vmatmul.mubr.msk.bf16.vlgmr.msra.gmra.mrb[36].mxu1 %vm347_vm2, %v1764_v12 }
 0x29d   : > { %3796 = vmatpush3.bf16.msra.mxu1 %v4159_v3  ;;  %3783 = vmatprep.mubr.msk.bf16.mxu1 %vm347_vm2, %v1765_v17 }
 0x29e   : > { %3797 = vmatprep.subr.bf16.mxu1 %v4160_v18 }
 0x2a1   : > { %3798 = vmatpush3.bf16.msra.mxu1 %v4160_v18 }
 0x2a2   : > { %3799 = vmatprep.subr.bf16.mxu1 %v4161_v23 }
 0x2a4   : > { %3784 = vmatmul.mubr.msk.bf16.gmra.mrb[76].mxu1 %vm347_vm2, %v1766_v24 }
 0x2a5   : > { %3787 = vmatprep.mubr.msk.bf16.mxu1 %vm347_vm2, %v1767_v25  ;;  %3800 = vmatpush3.bf16.msra.mxu1 %v4161_v23 }
 0x2a6   : > { %3801 = vmatprep.subr.bf16.mxu1 %v4162_v26 }
 0x2a9   : > { %3802 = vmatpush3.bf16.msra.mxu1 %v4162_v26 }
 0x2ac   : > { %3788 = vmatmul.mubr.msk.bf16.gmra.mrb[80].mxu1 %vm347_vm2, %v1768_v31  ;;  %v3346_v31 = vld [vmem:[%s4931_s4] ss:$0 sm:$0xff] }
 0x2ad   : > { %3791 = vmatprep.mubr.msk.bf16.mxu1 %vm347_vm2, %v1769_v32 }
 0x2b4   : > { %3792 = vmatmul.mubr.msk.bf16.gmra.mrb[84].mxu1 %vm347_vm2, %v1770_v35 }
 0x2b5   : > { %3803 = vmatprep.mubr.msk.bf16.mxu1 %vm347_vm2, %v1933_v38 }
 0x2bc   : > { %3804 = vmatmul.mubr.msk.bf16.vlgmr.msra.gmra.mrb[36].mxu1 %vm347_vm2, %v1934_v42 }
 0x317   : > { %v3713_v2 = vpop.f32.mrb[40].mxu1 }
 0x318   : > { %v1409_v47 = vpop.f32.mrb[41].mxu1 }
 0x319   : > { %v3714_v48 = vpop.f32.mrb[42].mxu1 }
 0x31a   : > { %v1411_v49 = vpop.f32.mrb[43].mxu1  ;;  %v4168_v48 = vld [vmem:[#allocation11 + $0x8] sm:$0xff]  }
 0x31f   : > { %v3717_v50 = vpop.f32.mrb[44].mxu1 }
 0x320   : > { %v1421_v52 = vpop.f32.mrb[45].mxu1  ;;  %v2140_v50 = vld [vmem:[#allocation4 + $0x31] sm:$0xff] }
 0x321   : > { %v3718_v53 = vpop.f32.mrb[46].mxu1  ;;  %v2141_v52 = vld [vmem:[#allocation4 + $0x39] sm:$0xff] }
 0x322   : > { %v1423_v54 = vpop.f32.mrb[47].mxu1  ;;  %v2142_v53 = vld [vmem:[#allocation4 + $0x41] sm:$0xff] }
 0x323   : > { %v2143_v54 = vld [vmem:[#allocation4 + $0x49] sm:$0xff] }
 0x327   : > { %v3721_v55 = vpop.f32.mrb[48].mxu1 }
 0x328   : > { %v1433_v56 = vpop.f32.mrb[49].mxu1  ;;  %v4169_v55 = vld [vmem:[#allocation11 + $0x10] sm:$0xff]  }
 0x329   : > { %v3722_v57 = vpop.f32.mrb[50].mxu1  ;;  %v2153_v56 = vpack.c.bf16 %v2141_v52, %v2140_v50 }
 0x32a   : > { %v1435_v58 = vpop.f32.mrb[51].mxu1  ;;  %v2154_v57 = vpack.c.bf16 %v2143_v54, %v2142_v53  ;;  %v2461_v54 = vld [vmem:[#allocation4 + $0x22] sm:$0xff] }
 0x32b   : > { %v4170_v58 = vld [vmem:[#allocation11 + $0x18] sm:$0xff]  }
 0x337   : > { %v3737_v59 = vpop.f32.mrb[52].mxu1 }
 0x338   : > { %v1542_v60 = vpop.f32.mrb[53].mxu1  ;;  %v2144_v59 = vld [vmem:[#allocation4 + $0x51] sm:$0xff] }
 0x339   : > { %v3738_v39 = vpop.f32.mrb[54].mxu1  ;;  %v2145_v60 = vld [vmem:[#allocation4 + $0x59] sm:$0xff] }
 0x33a   : > { %v1544_v61 = vpop.f32.mrb[55].mxu1  ;;  %v2147_v39 = vld [vmem:[#allocation4 + $0x69] sm:$0xff] }
 0x33b   : > { %v4171_v61 = vld [vmem:[#allocation11 + $0x40] sm:$0xff]  }
 0x33f   : > { %v3741_v62 = vpop.f32.mrb[56].mxu1 }
 0x340   : > { %v1554_v63 = vpop.f32.mrb[57].mxu1  ;;  %v2155_v62 = vpack.c.bf16 %v2145_v60, %v2144_v59  ;;  %v4176_v60 = vld [vmem:[#allocation11 + $0x68] sm:$0xff]  }
 0x341   : > { %v3742_v0 = vpop.f32.mrb[58].mxu1 }
 0x342   : > { %v1556_v1 = vpop.f32.mrb[59].mxu1  ;;  %v2148_v0 = vld [vmem:[#allocation4 + $0x71] sm:$0xff] }
 0x343   : > { %v2149_v1 = vld [vmem:[#allocation4 + $0x79] sm:$0xff] }
 0x347   : > { %v3745_v3 = vpop.f32.mrb[60].mxu1 }
 0x348   : > { %v1566_v4 = vpop.f32.mrb[61].mxu1  ;;  %v2157_v3 = vpack.c.bf16 %v2149_v1, %v2148_v0 }
 0x349   : > { %v3746_v6 = vpop.f32.mrb[62].mxu1 }
 0x34a   : > { %v1568_v5 = vpop.f32.mrb[63].mxu1 }
 0x357   : > { %v3761_v7 = vpop.f32.mrb[64].mxu1 }
 0x358   : > { %v1708_v8 = vpop.f32.mrb[65].mxu1  ;;  %v1921_v7 = vld [vmem:[#allocation3 + $0x24] sm:$0xff] }
 0x359   : > { %v3762_v10 = vpop.f32.mrb[66].mxu1  ;;  %v1922_v8 = vld [vmem:[#allocation3 + $0x2c] sm:$0xff] }
 0x35a   : > { %v1710_v9 = vpop.f32.mrb[67].mxu1  ;;  %v1923_v10 = vld [vmem:[#allocation3 + $0x34] sm:$0xff] }
 0x35b   : > { %v1935_v9 = vpack.c.bf16 %v1922_v8, %v1921_v7  ;;  %v2470_v7 = vld [vmem:[#allocation4 + $0x6a] sm:$0xff]  ;;  %v4179_v8 = vld [vmem:[#allocation11 + $0x80] sm:$0xff]  }
 0x35d   : > { %3807 = vmatprep.mubr.msk.bf16.mxu1 %vm347_vm2, %v1935_v9 }
 0x35f   : > { %v3765_v11 = vpop.f32.mrb[68].mxu1 }
 0x360   : > { %v1720_v13 = vpop.f32.mrb[69].mxu1  ;;  %v1924_v11 = vld [vmem:[#allocation3 + $0x3c] sm:$0xff] }
 0x361   : > { %v3766_v14 = vpop.f32.mrb[70].mxu1  ;;  %v1925_v13 = vld [vmem:[#allocation3 + $0x44] sm:$0xff] }
 0x362   : > { %v1722_v15 = vpop.f32.mrb[71].mxu1  ;;  %v1926_v14 = vld [vmem:[#allocation3 + $0x4c] sm:$0xff] }
 0x363   : > { %v1936_v15 = vpack.c.bf16 %v1924_v11, %v1923_v10  ;;  %v2471_v11 = vld [vmem:[#allocation4 + $0x72] sm:$0xff] }
 0x365   : > { %3808 = vmatmul.mubr.msk.bf16.gmra.mrb[88].mxu1 %vm347_vm2, %v1936_v15 }
 0x367   : > { %v3769_v16 = vpop.f32.mrb[72].mxu1 }
 0x368   : > { %v1732_v17 = vpop.f32.mrb[73].mxu1  ;;  %v1937_v16 = vpack.c.bf16 %v1926_v14, %v1925_v13  ;;  %v2472_v13 = vld [vmem:[#allocation4 + $0x7a] sm:$0xff] }
 0x369   : > { %v3770_v12 = vpop.f32.mrb[74].mxu1  ;;  %v2480_v14 = vpack.c.bf16 %v2472_v13, %v2471_v11 }
 0x36a   : > { %v1734_v18 = vpop.f32.mrb[75].mxu1  ;;  %3811 = vmatprep.mubr.msk.bf16.mxu1 %vm347_vm2, %v1937_v16 }
 0x377   : > { %v3785_v19 = vpop.f32.mrb[76].mxu1 }
 0x378   : > { %v1878_v20 = vpop.f32.mrb[77].mxu1  ;;  %v2107_v19 = vld [vmem:[#allocation4 + $0x28] sm:$0xff] }
 0x379   : > { %v3786_v21 = vpop.f32.mrb[78].mxu1  ;;  %v1927_v20 = vld [vmem:[#allocation3 + $0x54] sm:$0xff] }
 0x37a   : > { %v1880_v22 = vpop.f32.mrb[79].mxu1  ;;  %v1928_v21 = vld [vmem:[#allocation3 + $0x5c] sm:$0xff] }
 0x37f   : > { %v3789_v23 = vpop.f32.mrb[80].mxu1 }
 0x380   : > { %v1890_v24 = vpop.f32.mrb[81].mxu1  ;;  %v4172_v23 = vld [vmem:[#allocation11 + $0x48] sm:$0xff]  }
 0x381   : > { %v3790_v25 = vpop.f32.mrb[82].mxu1  ;;  %v1929_v24 = vld [vmem:[#allocation3 + $0x64] sm:$0xff] }
 0x382   : > { %v1892_v26 = vpop.f32.mrb[83].mxu1  ;;  %v1930_v25 = vld [vmem:[#allocation3 + $0x6c] sm:$0xff] }
 0x387   : > { %v3793_v27 = vpop.f32.mrb[84].mxu1 }
 0x388   : > { %v1902_v28 = vpop.f32.mrb[85].mxu1  ;;  %v1938_v27 = vpack.c.bf16 %v1928_v21, %v1927_v20 }
 0x389   : > { %v3794_v29 = vpop.f32.mrb[86].mxu1  ;;  %v2108_v28 = vld [vmem:[#allocation4 + $0x30] sm:$0xff] }
 0x38a   : > { %v1904_v30 = vpop.f32.mrb[87].mxu1  ;;  %v2109_v29 = vld [vmem:[#allocation4 + $0x38] sm:$0xff]  ;;  %3812 = vmatmul.mubr.msk.bf16.gmra.mrb[92].mxu1 %vm347_vm2, %v1938_v27  ;;  %v2660_v27 = vld [vmem:[#allocation4 + $0x4b] sm:$0xff] }
 0x38b   : > { %v1939_v30 = vpack.c.bf16 %v1930_v25, %v1929_v24  ;;  %v2657_v24 = vld [vmem:[#allocation4 + $0x33] sm:$0xff]  ;;  %v2658_v25 = vld [vmem:[#allocation4 + $0x3b] sm:$0xff] }
 0x38d   : > { %3815 = vmatprep.mubr.msk.bf16.mxu1 %vm347_vm2, %v1939_v30 }
 0x38f   : > { %v3805_v32 = vpop.f32.mrb[36].mxu1 }
 0x390   : > { %v2096_v33 = vadd.f32 %v3805_v32, %v3346_v31  ;;  %v2032_v34 = vpop.f32.mrb[37].mxu1  ;;  %v2111_v32 = vld [vmem:[#allocation4 + $0x48] sm:$0xff] }
 0x391   : > { %v2094_v35 = vadd.f32 %v3346_v31, %v2032_v34  ;;  %v3806_v36 = vpop.f32.mrb[38].mxu1  ;;  %v2121_v34 = vpack.c.bf16 %v2109_v29, %v2108_v28  ;;  %v4181_v28 = vld [vmem:[#allocation11 + $0x90] sm:$0xff]   ;;  %v2670_v29 = vpack.c.bf16 %v2658_v25, %v2657_v24 }
 0x392   : > { %2100 = vst.msk [vmem:[#allocation4 + $0x12] sm:$0xff] %vm347_vm2, %v2096_v33  ;;  %v2097_v37 = vadd.f32 %v3806_v36, %v3346_v31  ;;  %v2035_v38 = vpop.f32.mrb[39].mxu1  ;;  %v4173_v33 = vld [vmem:[#allocation11 + $0x50] sm:$0xff]  }
 0x393   : > { %2098 = vst.msk [vmem:[#allocation4 + $0x2] sm:$0xff] %vm347_vm2, %v2094_v35  ;;  %v2095_v40 = vadd.f32 %v3346_v31, %v2035_v38  ;;  %v2110_v31 = vld [vmem:[#allocation4 + $0x40] sm:$0xff]  ;;  %v1931_v36 = vld [vmem:[#allocation3 + $0x74] sm:$0xff]  ;;  %v4174_v38 = vld [vmem:[#allocation11 + $0x58] sm:$0xff]  }
 0x394   : > { %2101 = vst.msk [vmem:[#allocation4 + $0x1a] sm:$0xff] %vm347_vm2, %v2097_v37  ;;  %v2122_v35 = vpack.c.bf16 %v2111_v32, %v2110_v31  ;;  %v1932_v37 = vld [vmem:[#allocation3 + $0x7c] sm:$0xff] }
 0x395   : > { %2099 = vst.msk [vmem:[#allocation4 + $0xa] sm:$0xff] %vm347_vm2, %v2095_v40  ;;  %v1940_v40 = vpack.c.bf16 %v1932_v37, %v1931_v36  ;;  %v4182_v31 = vld [vmem:[#allocation11 + $0x98] sm:$0xff]  }
 0x396   : > { %v2661_v32 = vld [vmem:[#allocation4 + $0x53] sm:$0xff] }
 0x397   : > { %3816 = vmatmul.mubr.msk.bf16.gmra.mrb[96].mxu1 %vm347_vm2, %v1940_v40  ;;  %v2666_v40 = vld [vmem:[#allocation4 + $0x7b] sm:$0xff] }
 0x39a   : > { %v2134_v41 = vld [vmem:[#allocation4 + $0x1] sm:$0xff] }
 0x39b   : > { %v2137_v42 = vld [vmem:[#allocation4 + $0x19] sm:$0xff]  ;;  %v2138_v46 = vld [vmem:[#allocation4 + $0x21] sm:$0xff] }
 0x39c   : > { %v2135_v44 = vld [vmem:[#allocation4 + $0x9] sm:$0xff]  ;;  %v2136_v45 = vld [vmem:[#allocation4 + $0x11] sm:$0xff]  ;;  %v2152_v49 = vpack.c.bf16 %v2139_v43, %v2138_v46  ;;  %v2102_v6 = vld [vmem:[#allocation4] sm:$0xff] }
 0x39d   : > { %v2150_v2 = vpack.c.bf16 %v2135_v44, %v2134_v41  ;;  %v2151_v47 = vpack.c.bf16 %v2137_v42, %v2136_v45  ;;  %v2103_v4 = vld [vmem:[#allocation4 + $0x8] sm:$0xff]  ;;  %v2104_v17 = vld [vmem:[#allocation4 + $0x10] sm:$0xff]  ;;  %v2105_v12 = vld [vmem:[#allocation4 + $0x18] sm:$0xff] }
 0x39e   : > { %v2118_v5 = vpack.c.bf16 %v2103_v4, %v2102_v6  ;;  %v2106_v18 = vld [vmem:[#allocation4 + $0x20] sm:$0xff]  ;;  %v2119_v22 = vpack.c.bf16 %v2105_v12, %v2104_v17  ;;  %v2112_v41 = vld [vmem:[#allocation4 + $0x50] sm:$0xff]  ;;  %v2113_v42 = vld [vmem:[#allocation4 + $0x58] sm:$0xff] }
 0x39f   : > { %3827 = vmatprep.mubr.msk.bf16.mxu0 %vm347_vm2, %v2150_v2  ;;  %v2120_v26 = vpack.c.bf16 %v2107_v19, %v2106_v18  ;;  %v2114_v43 = vld [vmem:[#allocation4 + $0x60] sm:$0xff]  ;;  %v2115_v44 = vld [vmem:[#allocation4 + $0x68] sm:$0xff]  ;;  %v2123_v46 = vpack.c.bf16 %v2113_v42, %v2112_v41  ;;  %v2467_v4 = vld [vmem:[#allocation4 + $0x52] sm:$0xff] }
 0x3a0   : > { %3828 = vmatmul.mubr.msk.bf16.vlgmr.msra.gmra.mrb[32].mxu0 %vm347_vm2, %v2151_v47  ;;  %v4175_v45 = vld [vmem:[#allocation11 + $0x60] sm:$0xff]   ;;  %v2124_v2 = vpack.c.bf16 %v2115_v44, %v2114_v43  ;;  %v2116_v47 = vld [vmem:[#allocation4 + $0x70] sm:$0xff] }
 0x3a1   : > { %3844 = vmatpush3.bf16.msra.mxu0 %v4816_v51  ;;  %3831 = vmatprep.mubr.msk.bf16.mxu0 %vm347_vm2, %v2152_v49  ;;  %v2146_v51 = vld [vmem:[#allocation4 + $0x61] sm:$0xff]  ;;  %v2458_v50 = vld [vmem:[#allocation4 + $0xa] sm:$0xff]  ;;  %v2653_v19 = vld [vmem:[#allocation4 + $0x13] sm:$0xff] }
 0x3a2   : > { %3845 = vmatprep.subr.bf16.mxu0 %v4168_v48  ;;  %v2156_v63 = vpack.c.bf16 %v2147_v39, %v2146_v51  ;;  %v2457_v52 = vld [vmem:[#allocation4 + $0x2] sm:$0xff]  ;;  %v2463_v51 = vld [vmem:[#allocation4 + $0x32] sm:$0xff]  ;;  %v2464_v39 = vld [vmem:[#allocation4 + $0x3a] sm:$0xff] }
 0x3a3   : > { %v2473_v53 = vpack.c.bf16 %v2458_v50, %v2457_v52  ;;  %v2476_v0 = vpack.c.bf16 %v2464_v39, %v2463_v51  ;;  %v2468_v6 = vld [vmem:[#allocation4 + $0x5a] sm:$0xff]  ;;  %v2651_v15 = vld [vmem:[#allocation4 + $0x3] sm:$0xff]  ;;  %v2652_v16 = vld [vmem:[#allocation4 + $0xb] sm:$0xff] }
 0x3a4   : > { %v2478_v10 = vpack.c.bf16 %v2468_v6, %v2467_v4  ;;  %v2667_v17 = vpack.c.bf16 %v2652_v16, %v2651_v15  ;;  %v2655_v12 = vld [vmem:[#allocation4 + $0x23] sm:$0xff]  ;;  %v2656_v18 = vld [vmem:[#allocation4 + $0x2b] sm:$0xff]  ;;  %v2654_v20 = vld [vmem:[#allocation4 + $0x1b] sm:$0xff] }
 0x3a5   : > { %3846 = vmatpush3.bf16.msra.mxu0 %v4168_v48  ;;  %v2117_v48 = vld [vmem:[#allocation4 + $0x78] sm:$0xff]  ;;  %v2669_v21 = vpack.c.bf16 %v2656_v18, %v2655_v12  ;;  %v2845_v42 = vld [vmem:[#allocation4 + $0x4] sm:$0xff]  ;;  %v2846_v43 = vld [vmem:[#allocation4 + $0xc] sm:$0xff] }
 0x3a6   : > { %3847 = vmatprep.subr.bf16.mxu0 %v4169_v55  ;;  %v2125_v49 = vpack.c.bf16 %v2117_v48, %v2116_v47  ;;  %v2861_v44 = vpack.c.bf16 %v2846_v43, %v2845_v42  ;;  %v2848_v47 = vld [vmem:[#allocation4 + $0x1c] sm:$0xff]  ;;  %v2851_v50 = vld [vmem:[#allocation4 + $0x34] sm:$0xff] }
 0x3a7   : > { %v2852_v52 = vld [vmem:[#allocation4 + $0x3c] sm:$0xff] }
 0x3a8   : > { %3832 = vmatmul.mubr.msk.bf16.gmra.mrb[36].mxu0 %vm347_vm2, %v2153_v56  ;;  %v2460_v56 = vld [vmem:[#allocation4 + $0x1a] sm:$0xff] }
 0x3a9   : > { %3835 = vmatprep.mubr.msk.bf16.mxu0 %vm347_vm2, %v2154_v57  ;;  %3848 = vmatpush3.bf16.msra.mxu0 %v4169_v55  ;;  %v2462_v55 = vld [vmem:[#allocation4 + $0x2a] sm:$0xff]  ;;  %v2459_v57 = vld [vmem:[#allocation4 + $0x12] sm:$0xff] }
 0x3aa   : > { %3849 = vmatprep.subr.bf16.mxu0 %v4170_v58  ;;  %v2474_v59 = vpack.c.bf16 %v2460_v56, %v2459_v57  ;;  %v2855_v57 = vld [vmem:[#allocation4 + $0x54] sm:$0xff] }
 0x3ad   : > { %3850 = vmatpush3.bf16.msra.mxu0 %v4170_v58  ;;  %v2475_v58 = vpack.c.bf16 %v2462_v55, %v2461_v54  ;;  %v2854_v54 = vld [vmem:[#allocation4 + $0x4c] sm:$0xff]  ;;  %v2864_v55 = vpack.c.bf16 %v2852_v52, %v2851_v50 }
 0x3ae   : > { %3867 = vmatprep.subr.bf16.mxu0 %v4171_v61 }
 0x3b0   : > { %3836 = vmatmul.mubr.msk.bf16.gmra.mrb[40].mxu0 %vm347_vm2, %v2155_v62  ;;  %v2466_v62 = vld [vmem:[#allocation4 + $0x4a] sm:$0xff] }
 0x3b1   : > { %3839 = vmatprep.mubr.msk.bf16.mxu0 %vm347_vm2, %v2156_v63  ;;  %v4177_v63 = vld [vmem:[#allocation11 + $0x70] sm:$0xff]  }
 0x3b8   : > { %3840 = vmatmul.mubr.msk.bf16.gmra.mrb[44].mxu0 %vm347_vm2, %v2157_v3  ;;  %v4178_v3 = vld [vmem:[#allocation11 + $0x78] sm:$0xff]  }
 0x3b9   : > { %3851 = vmatprep.mubr.msk.bf16.mxu0 %vm347_vm2, %v2118_v5  ;;  %v2469_v5 = vld [vmem:[#allocation4 + $0x62] sm:$0xff] }
 0x3ba   : > { %v2479_v9 = vpack.c.bf16 %v2470_v7, %v2469_v5 }
 0x3c0   : > { %3852 = vmatmul.mubr.msk.bf16.vlgmr.msra.gmra.mrb[32].mxu0 %vm347_vm2, %v2119_v22  ;;  %v2668_v22 = vpack.c.bf16 %v2654_v20, %v2653_v19 }
 0x3c1   : > { %3868 = vmatpush3.bf16.msra.mxu0 %v4171_v61  ;;  %3855 = vmatprep.mubr.msk.bf16.mxu0 %vm347_vm2, %v2120_v26  ;;  %v2465_v61 = vld [vmem:[#allocation4 + $0x42] sm:$0xff] }
 0x3c2   : > { %3869 = vmatprep.subr.bf16.mxu0 %v4172_v23  ;;  %v2477_v1 = vpack.c.bf16 %v2466_v62, %v2465_v61  ;;  %v2659_v26 = vld [vmem:[#allocation4 + $0x43] sm:$0xff]  ;;  %v2859_v61 = vld [vmem:[#allocation4 + $0x74] sm:$0xff] }
 0x3c3   : > { %v2671_v30 = vpack.c.bf16 %v2660_v27, %v2659_v26  ;;  %v2860_v62 = vld [vmem:[#allocation4 + $0x7c] sm:$0xff] }
 0x3c5   : > { %3870 = vmatpush3.bf16.msra.mxu0 %v4172_v23  ;;  %v4180_v23 = vld [vmem:[#allocation11 + $0x88] sm:$0xff]  }
 0x3c6   : > { %3871 = vmatprep.subr.bf16.mxu0 %v4173_v33 }
 0x3c8   : > { %3856 = vmatmul.mubr.msk.bf16.gmra.mrb[36].mxu0 %vm347_vm2, %v2121_v34  ;;  %v2663_v34 = vld [vmem:[#allocation4 + $0x63] sm:$0xff] }
 0x3c9   : > { %3859 = vmatprep.mubr.msk.bf16.mxu0 %vm347_vm2, %v2122_v35  ;;  %3872 = vmatpush3.bf16.msra.mxu0 %v4173_v33  ;;  %v2662_v33 = vld [vmem:[#allocation4 + $0x5b] sm:$0xff]  ;;  %v2664_v35 = vld [vmem:[#allocation4 + $0x6b] sm:$0xff] }
 0x3ca   : > { %3873 = vmatprep.subr.bf16.mxu0 %v4174_v38  ;;  %v2672_v36 = vpack.c.bf16 %v2662_v33, %v2661_v32  ;;  %v2673_v37 = vpack.c.bf16 %v2664_v35, %v2663_v34 }
 0x3cd   : > { %3874 = vmatpush3.bf16.msra.mxu0 %v4174_v38  ;;  %v2665_v38 = vld [vmem:[#allocation4 + $0x73] sm:$0xff] }
 0x3ce   : > { %3891 = vmatprep.subr.bf16.mxu0 %v4175_v45  ;;  %v2674_v41 = vpack.c.bf16 %v2666_v40, %v2665_v38 }
 0x3d0   : > { %3860 = vmatmul.mubr.msk.bf16.gmra.mrb[40].mxu0 %vm347_vm2, %v2123_v46  ;;  %v2850_v46 = vld [vmem:[#allocation4 + $0x2c] sm:$0xff] }
 0x3d1   : > { %3863 = vmatprep.mubr.msk.bf16.mxu0 %vm347_vm2, %v2124_v2  ;;  %v2847_v2 = vld [vmem:[#allocation4 + $0x14] sm:$0xff] }
 0x3d8   : > { %3864 = vmatmul.mubr.msk.bf16.gmra.mrb[44].mxu0 %vm347_vm2, %v2125_v49  ;;  %v2862_v49 = vpack.c.bf16 %v2848_v47, %v2847_v2 }
 0x3d9   : > { %3875 = vmatprep.mubr.msk.bf16.mxu0 %vm347_vm2, %v2473_v53  ;;  %v2853_v53 = vld [vmem:[#allocation4 + $0x44] sm:$0xff] }
 0x3da   : > { %v2865_v56 = vpack.c.bf16 %v2854_v54, %v2853_v53 }
 0x3e0   : > { %3876 = vmatmul.mubr.msk.bf16.vlgmr.msra.gmra.mrb[32].mxu0 %vm347_vm2, %v2474_v59  ;;  %v2857_v59 = vld [vmem:[#allocation4 + $0x64] sm:$0xff] }
 0x3e1   : > { %3892 = vmatpush3.bf16.msra.mxu0 %v4175_v45  ;;  %3879 = vmatprep.mubr.msk.bf16.mxu0 %vm347_vm2, %v2475_v58  ;;  %v2849_v45 = vld [vmem:[#allocation4 + $0x24] sm:$0xff]  ;;  %v2856_v58 = vld [vmem:[#allocation4 + $0x5c] sm:$0xff] }
 0x3e2   : > { %3893 = vmatprep.subr.bf16.mxu0 %v4176_v60  ;;  %v2863_v48 = vpack.c.bf16 %v2850_v46, %v2849_v45  ;;  %v2866_v51 = vpack.c.bf16 %v2856_v58, %v2855_v57 }
 0x3e5   : > { %3894 = vmatpush3.bf16.msra.mxu0 %v4176_v60  ;;  %v2858_v60 = vld [vmem:[#allocation4 + $0x6c] sm:$0xff] }
 0x3e6   : > { %3895 = vmatprep.subr.bf16.mxu0 %v4177_v63  ;;  %v2867_v39 = vpack.c.bf16 %v2858_v60, %v2857_v59 }
 0x3e8   : > { %3880 = vmatmul.mubr.msk.bf16.gmra.mrb[36].mxu0 %vm347_vm2, %v2476_v0 }
 0x3e9   : > { %3883 = vmatprep.mubr.msk.bf16.mxu0 %vm347_vm2, %v2477_v1  ;;  %3896 = vmatpush3.bf16.msra.mxu0 %v4177_v63  ;;  %v2868_v63 = vpack.c.bf16 %v2860_v62, %v2859_v61 }
 0x3ea   : > { %3897 = vmatprep.subr.bf16.mxu0 %v4178_v3 }
 0x3ed   : > { %3898 = vmatpush3.bf16.msra.mxu0 %v4178_v3 }
 0x3ee   : > { %3915 = vmatprep.subr.bf16.mxu0 %v4179_v8 }
 0x3f0   : > { %3884 = vmatmul.mubr.msk.bf16.gmra.mrb[40].mxu0 %vm347_vm2, %v2478_v10 }
 0x3f1   : > { %3887 = vmatprep.mubr.msk.bf16.mxu0 %vm347_vm2, %v2479_v9 }
 0x3f8   : > { %3888 = vmatmul.mubr.msk.bf16.gmra.mrb[44].mxu0 %vm347_vm2, %v2480_v14  ;;  %v3407_v14 = vld [vmem:[%s4933_s6] ss:$0 sm:$0xff] }
 0x3f9   : > { %3899 = vmatprep.mubr.msk.bf16.mxu0 %vm347_vm2, %v2667_v17 }
 0x400   : > { %3900 = vmatmul.mubr.msk.bf16.vlgmr.msra.gmra.mrb[32].mxu0 %vm347_vm2, %v2668_v22 }
 0x401   : > { %3916 = vmatpush3.bf16.msra.mxu0 %v4179_v8  ;;  %3903 = vmatprep.mubr.msk.bf16.mxu0 %vm347_vm2, %v2669_v21 }
 0x402   : > { %3917 = vmatprep.subr.bf16.mxu0 %v4180_v23 }
 0x405   : > { %3918 = vmatpush3.bf16.msra.mxu0 %v4180_v23 }
 0x406   : > { %3919 = vmatprep.subr.bf16.mxu0 %v4181_v28 }
 0x408   : > { %3904 = vmatmul.mubr.msk.bf16.gmra.mrb[36].mxu0 %vm347_vm2, %v2670_v29 }
 0x409   : > { %3907 = vmatprep.mubr.msk.bf16.mxu0 %vm347_vm2, %v2671_v30  ;;  %3920 = vmatpush3.bf16.msra.mxu0 %v4181_v28 }
 0x40a   : > { %3921 = vmatprep.subr.bf16.mxu0 %v4182_v31 }
 0x40d   : > { %3922 = vmatpush3.bf16.msra.mxu0 %v4182_v31 }
 0x410   : > { %3908 = vmatmul.mubr.msk.bf16.gmra.mrb[40].mxu0 %vm347_vm2, %v2672_v36 }
 0x411   : > { %3911 = vmatprep.mubr.msk.bf16.mxu0 %vm347_vm2, %v2673_v37 }
 0x418   : > { %3912 = vmatmul.mubr.msk.bf16.gmra.mrb[44].mxu0 %vm347_vm2, %v2674_v41 }
 0x419   : > { %3923 = vmatprep.mubr.msk.bf16.mxu0 %vm347_vm2, %v2861_v44 }
 0x420   : > { %3924 = vmatmul.mubr.msk.bf16.vlgmr.msra.gmra.mrb[32].mxu0 %vm347_vm2, %v2862_v49 }
 0x421   : > { %3927 = vmatprep.mubr.msk.bf16.mxu0 %vm347_vm2, %v2863_v48 }
 0x428   : > { %3928 = vmatmul.mubr.msk.bf16.gmra.mrb[36].mxu0 %vm347_vm2, %v2864_v55 }
 0x429   : > { %3931 = vmatprep.mubr.msk.bf16.mxu0 %vm347_vm2, %v2865_v56 }
 0x430   : > { %3932 = vmatmul.mubr.msk.bf16.gmra.mrb[40].mxu0 %vm347_vm2, %v2866_v51 }
 0x431   : > { %3935 = vmatprep.mubr.msk.bf16.mxu0 %vm347_vm2, %v2867_v39 }
 0x438   : > { %3936 = vmatmul.mubr.msk.bf16.gmra.mrb[44].mxu0 %vm347_vm2, %v2868_v63  ;;  %v3809_v0 = vpop.f32.mrb[88].mxu1 }
 0x439   : > { %v2048_v1 = vpop.f32.mrb[89].mxu1 }
 0x43a   : > { %v3810_v3 = vpop.f32.mrb[90].mxu1 }
 0x43b   : > { %v2050_v4 = vpop.f32.mrb[91].mxu1 }
 0x45d   : > { %v3813_v6 = vpop.f32.mrb[92].mxu1 }
 0x45e   : > { %v2060_v5 = vpop.f32.mrb[93].mxu1 }
 0x45f   : > { %v3814_v7 = vpop.f32.mrb[94].mxu1 }
 0x460   : > { %v2062_v8 = vpop.f32.mrb[95].mxu1 }
 0x46a   : > { %v3817_v10 = vpop.f32.mrb[96].mxu1 }
 0x46b   : > { %v2072_v9 = vpop.f32.mrb[97].mxu1 }
 0x46c   : > { %v3818_v11 = vpop.f32.mrb[98].mxu1 }
 0x46d   : > { %v2074_v13 = vpop.f32.mrb[99].mxu1 }
 0x4f3   : > { %v3925_v15 = vpop.f32.mrb[32].mxu0 }
 0x4f4   : > { %v2960_v16 = vpop.f32.mrb[33].mxu0  ;;  %v3048_v22 = vadd.f32 %v3925_v15, %v3407_v14 }
 0x4f5   : > { %v3926_v17 = vpop.f32.mrb[34].mxu0  ;;  %v3046_v12 = vadd.f32 %v3407_v14, %v2960_v16 }
 0x4f6   : > { %v2963_v18 = vpop.f32.mrb[35].mxu0  ;;  %v3049_v25 = vadd.f32 %v3926_v17, %v3407_v14 }
 0x4f7   : > { %3062 = vxpose.xlu1.b32.start [1/16] (narrow) %v3046_v12, 64  ;;  %v3047_v19 = vadd.f32 %v3407_v14, %v2963_v18 }
 0x4fb   : > { %3063 = vxpose.xlu1.b32.cont [2/16] (narrow) %v3047_v19, 64  ;;  %v3929_v20 = vpop.f32.mrb[36].mxu0 }
 0x4fc   : > { %v2976_v21 = vpop.f32.mrb[37].mxu0  ;;  %v3052_v34 = vadd.f32 %v3929_v20, %v3407_v14 }
 0x4fd   : > { %v3930_v23 = vpop.f32.mrb[38].mxu0  ;;  %v3050_v28 = vadd.f32 %v3407_v14, %v2976_v21 }
 0x4fe   : > { %v2979_v24 = vpop.f32.mrb[39].mxu0  ;;  %v3053_v37 = vadd.f32 %v3930_v23, %v3407_v14 }
 0x4ff   : > { %3064 = vxpose.xlu1.b32.cont [3/16] (narrow) %v3048_v22, 64  ;;  %v3051_v31 = vadd.f32 %v3407_v14, %v2979_v24 }
 0x503   : > { %3065 = vxpose.xlu1.b32.cont [4/16] (narrow) %v3049_v25, 64  ;;  %v3933_v26 = vpop.f32.mrb[40].mxu0 }
 0x504   : > { %v2992_v27 = vpop.f32.mrb[41].mxu0  ;;  %v3056_v41 = vadd.f32 %v3933_v26, %v3407_v14 }
 0x505   : > { %v3934_v29 = vpop.f32.mrb[42].mxu0  ;;  %v3054_v38 = vadd.f32 %v3407_v14, %v2992_v27 }
 0x506   : > { %v2995_v30 = vpop.f32.mrb[43].mxu0  ;;  %v3057_v42 = vadd.f32 %v3934_v29, %v3407_v14 }
 0x507   : > { %3066 = vxpose.xlu1.b32.cont [5/16] (narrow) %v3050_v28, 64  ;;  %v3055_v40 = vadd.f32 %v3407_v14, %v2995_v30 }
 0x50b   : > { %3067 = vxpose.xlu1.b32.cont [6/16] (narrow) %v3051_v31, 64  ;;  %v3937_v32 = vpop.f32.mrb[44].mxu0 }
 0x50c   : > { %v3008_v33 = vpop.f32.mrb[45].mxu0  ;;  %v3060_v45 = vadd.f32 %v3937_v32, %v3407_v14 }
 0x50d   : > { %v3938_v35 = vpop.f32.mrb[46].mxu0  ;;  %v3058_v43 = vadd.f32 %v3407_v14, %v3008_v33 }
 0x50e   : > { %v3011_v36 = vpop.f32.mrb[47].mxu0  ;;  %v3061_v46 = vadd.f32 %v3938_v35, %v3407_v14 }
 0x50f   : > { %3068 = vxpose.xlu1.b32.cont [7/16] (narrow) %v3052_v34, 64  ;;  %v3059_v44 = vadd.f32 %v3407_v14, %v3011_v36 }
 0x513   : > { %3069 = vxpose.xlu1.b32.cont [8/16] (narrow) %v3053_v37, 64 }
 0x517   : > { %3070 = vxpose.xlu1.b32.cont [9/16] (narrow) %v3054_v38, 64 }
 0x51b   : > { %3071 = vxpose.xlu1.b32.cont [10/16] (narrow) %v3055_v40, 64 }
 0x51f   : > { %3072 = vxpose.xlu1.b32.cont [11/16] (narrow) %v3056_v41, 64 }
 0x523   : > { %3073 = vxpose.xlu1.b32.cont [12/16] (narrow) %v3057_v42, 64 }
 0x527   : > { %3074 = vxpose.xlu1.b32.cont [13/16] (narrow) %v3058_v43, 64 }
 0x52b   : > { %3075 = vxpose.xlu1.b32.cont [14/16] (narrow) %v3059_v44, 64 }
 0x52f   : > { %3076 = vxpose.xlu1.b32.cont [15/16] (narrow) %v3060_v45, 64 }
 0x533   : > { %3077 = vxpose.xlu1.b32.end [16/16] (narrow) %v3061_v46, 64 }
 0x577   : > { %v3078_v2 = vpop.trf.xlu1 }
 0x578   : > { %3094 = vst [vmem:[%s340_s10] sm:$0xff] %v3078_v2 }
 0x57b   : > { %v3079_v47 = vpop.trf.xlu1 }
 0x57c   : > { %3095 = vst [vmem:[%s340_s10 + $0x8] sm:$0xff] %v3079_v47 }
 0x57f   : > { %v3080_v48 = vpop.trf.xlu1 }
 0x580   : > { %3096 = vst [vmem:[%s340_s10 + $0x10] sm:$0xff] %v3080_v48 }
 0x583   : > { %v3081_v49 = vpop.trf.xlu1 }
 0x584   : > { %3097 = vst [vmem:[%s340_s10 + $0x18] sm:$0xff] %v3081_v49 }
 0x587   : > { %v3082_v50 = vpop.trf.xlu1 }
 0x588   : > { %3098 = vst [vmem:[%s340_s10 + $0x20] sm:$0xff] %v3082_v50 }
 0x58b   : > { %v3083_v52 = vpop.trf.xlu1 }
 0x58c   : > { %3099 = vst [vmem:[%s340_s10 + $0x28] sm:$0xff] %v3083_v52 }
 0x58f   : > { %v3084_v53 = vpop.trf.xlu1 }
 0x590   : > { %3100 = vst [vmem:[%s340_s10 + $0x30] sm:$0xff] %v3084_v53 }
 0x593   : > { %v3085_v54 = vpop.trf.xlu1 }
 0x594   : > { %3101 = vst [vmem:[%s340_s10 + $0x38] sm:$0xff] %v3085_v54 }
 0x595   : > { %4310 = shalt.err (!%p4307_p4)
}
 0x596   : > { %s4311_s29 = scalar_lea.hbm %s4883_s15, 1024  ;;  %s4315_s16 = scalar_lea.hbm %s4934_s7, 2048 }
 0x597   : > { %p4312_p9 = scmp.ne.s32.totalorder %s4883_s15, %s4311_s29  ;;  %p4316_p11 = scmp.lt.u32.totalorder %s4883_s15, %s4934_s7 }
 0x598   : > { %p4317_p13 = scmp.lt.u32.totalorder %s4315_s16, %s4311_s29  ;;  %p4319_p10 = scmp.lt.u32.totalorder %s4311_s29, %s4883_s15 }
 0x599   : > { %p4313_p0 = pnand %p4312_p9, %p4579_p5 }
 0x59a   : > { %p4318_p6 = por %p4317_p13, %p4316_p11 }
 0x59b   : > { %p4314_p8 = pneg %p4313_p0 }
 0x59c   : > { %p4320_p3 = por %p4319_p10, %p4318_p6 }
 0x59e   : > { %p4321_p7 = pnand %p4320_p3, %p4314_p8 }
 0x5a0   : > { %4324 = shalt.err (!%p4321_p7)
}
 0x5a1   : > { %s4383_s17 = smov 128   ;;  %s4384_s13 = smov 8  }
 0x5a2   : > { %4058 = dma.vmem_to_hbm [thread:$0]  (%p4579_p5), %s4878_s12, 1024, %s4883_s15, %s3103_s20, %s4383_s17, %s4383_s17, %s4384_s13  }
 0x5a3 PF: > { %s4954_s30 = sld [smem:[#allocation18_spill]]  ;;  %s3131_s28 = sand.u32 1, %s4359_s24  }
 0x5a4   : > { %p4956_p1 = scmp.ge.s32.totalorder %s4371_s27, 2  ;;  %s3132_s9 = scalar_lea.sflag [#allocation7], %s3131_s28 }
 0x5a9   : > { %p4955_p12 = scmp.ne.s32.totalorder %s4954_s30, 0 }
 0x5ab   : > { %p4075_p2 = pnand %p4956_p1, %p4955_p12 }
 0x5ad   : > { %4354 = dma.done.wait (!%p4075_p2), %s3132_s9, 1024  }
 0x5ae   : > { %4356 = vsyncadd (!%p4075_p2), %s3132_s9, 4294966272  ;;  %p22_p4 = scmp.ge.s32.totalorder %s4565_s22, 4   ;;  %s4957_s24 = smov %s4363_s25 }
 0x5af   : > { %s4958_s25 = smov %s4367_s26  ;;  %s4959_s26 = smov %s4575_s18 }
 0x5b0   : > { %s4960_s27 = smov %s4565_s22  ;;  %24 = sbr.rel (!%p22_p4) target bundleno = 7 (0x7), region = 117 }
 0x5b7   :  { %3137 = vsyncpa [#allocation6], 1 }
 0x5b8   :  { %3139 = vsyncpa [#allocation6 + $0x1], 1 }
 0x5b9   :  { %3140 = vsyncpa [#allocation9], 1 }
 0x5ba   :  { %3141 = vsyncpa [#allocation12], 1 }
 0x5bb   :  { %3142 = vsyncpa [#allocation7], 1 }
 0x5bc   :  { %3144 = vsyncpa [#allocation7 + $0x1], 1 }

// kernel: tpu_custom_call.1
= control target key start
LH: loop header
LB: loop body
LE: loop exit
PB: predicated region body
PF: predicated region fallthrough
CT: control target
= control target key end

     0   :  { %12 = vsyncpa [#allocation6], 0  ;;  %s4927_s0 = inlined_call_operand.hbm [shape: f32[2,48,128], index: 0, kind: input, shape index: {}]   ;;  %s4928_s1 = inlined_call_operand.hbm [shape: bf16[5,48,64], index: 1, kind: input, shape index: {}]   ;;  %s4929_s2 = inlined_call_operand.vmem [shape: f32[1,64], index: 2, kind: input, shape index: {}]   ;;  %s4930_s3 = inlined_call_operand.hbm [shape: bf16[5,64,64], index: 3, kind: input, shape index: {}]   ;;  %s4931_s4 = inlined_call_operand.vmem [shape: f32[1,64], index: 4, kind: input, shape index: {}]   ;;  %s4932_s5 = inlined_call_operand.hbm [shape: bf16[5,64,64], index: 5, kind: input, shape index: {}]   ;;  %s4933_s6 = inlined_call_operand.vmem [shape: f32[1,64], index: 6, kind: input, shape index: {}]   ;;  %s4934_s7 = inlined_call_operand.hbm [shape: f32[2,64,128], index: 7, kind: output, shape index: {}]  }
   0x1   :  { %14 = vsyncpa [#allocation6 + $0x1], 0 }
   0x2   :  { %15 = vsyncpa [#allocation9], 0 }
   0x3   :  { %16 = vsyncpa [#allocation12], 0 }
   0x4   :  { %17 = vsyncpa [#allocation7], 0 }
   0x5   :  { %19 = vsyncpa [#allocation7 + $0x1], 0  ;;  %s4425_s24 = smov 0   ;;  %s4427_s25 = smov 0  }
   0x6   :  { %s4429_s26 = smov 0   ;;  %s4431_s27 = smov 0  }
   0x7 LB: > { %s4446_s28 = sadd.s32 4294967295, %s4371_s27   ;;  %s3218_s29 = sadd.s32 4294967294, %s4371_s27   ;;  %s4371_s27 = sphi %s4431_s27, %s4960_s27   ;;  %s4367_s26 = sphi %s4429_s26, %s4959_s26   ;;  %s4363_s25 = sphi %s4427_s25, %s4958_s25   ;;  %s4359_s24 = sphi %s4425_s24, %s4957_s24  }
   0x8   : > { %p45_p0 = scmp.ne.s32.totalorder %s4363_s25, %s4359_s24  ;;  %p4935_p1 = scmp.eq.s32.totalorder %s4446_s28, 0 }
   0x9   : > { %p201_p3 = scmp.eq.s32.totalorder %s3218_s29, 1  ;;  %p3219_p5 = scmp.ge.s32.totalorder %s4371_s27, 1 }
   0xa   : > { %p4455_p4 = por %p4935_p1, %p45_p0  ;;  %p208_p7 = scmp.lt.s32.totalorder %s4371_s27, 3 }
   0xb   : > { %p4460_p6 = por %p201_p3, %p45_p0  ;;  %s4373_s10 = smov [#allocation8]  }
   0xc   : > { %s4939_s30 = scalar_select %p4455_p4, 1, 0 }
   0xd   : > { %s4940_s8 = scalar_select %p4460_p6, 1, 0 }
   0xe   : > { %p4465_p8 = pnand %p3219_p5, %p208_p7  ;;  %s220_s11 = sshll.u32 %s4373_s10, 4  ;;  %s4469_s11 = int_to_ptr.vmem [resolvable:$true] %s220_s11 }
   0xf   : > { %4941 = sst [smem:[#allocation18_spill]] %s4940_s8  ;;  %s4374_s13 = smov [#allocation10]  }
  0x10   : > { %s4942_s9 = scalar_select %p4465_p8, 1, 0 }
  0x11   : > { %p4060_p9 = pneg %p4465_p8  ;;  %s236_s14 = sshll.u32 %s4374_s13, 4  ;;  %s4480_s14 = int_to_ptr.vmem [resolvable:$true] %s236_s14 }
  0x12   : > { %s4375_s15 = smov [#allocation11]   ;;  %s4183_s19 = scalar_lea.hbm %s4928_s1, 1920 }
  0x13   : > { %p4476_p11 = pnand %p4060_p9, %p4935_p1  ;;  %s4482_s16 = sshll.u32 %s4375_s15, 4  ;;  %s253_s16 = int_to_ptr.vmem [resolvable:$true] %s4482_s16 }
  0x14   : > { %p4184_p12 = scmp.ne.s32.totalorder %s4928_s1, %s4183_s19  ;;  %p4190_p5 = scmp.lt.u32.totalorder %s4183_s19, %s4928_s1 }
  0x15   : > { %p4492_p13 = pneg %p4476_p11 }
  0x17   : > { %p4186_p0 = pnand %p4492_p13, %p4184_p12 }
  0x19   : > { %p4187_p3 = pneg %p4186_p0 }
  0x1b   : > { %p4192_p7 = pnand %p4190_p5, %p4187_p3 }
  0x1d   : > { %4195 = shalt.err (!%p4192_p7)
}
  0x1e   : > { %s4196_s10 = scalar_lea.vmem %s4469_s11, 1920  ;;  %p4204_p2 = scmp.lt.s32.totalorder %s4469_s11, %s4469_s11 }
  0x1f   : > { %p4197_p9 = scmp.ne.s32.totalorder %s4469_s11, %s4196_s10  ;;  %p4205_p6 = scmp.lt.s32.totalorder %s4196_s10, %s4196_s10 }
  0x21   : > { %p4199_p10 = pnand %p4197_p9, %p4492_p13  ;;  %p4206_p12 = por %p4205_p6, %p4204_p2 }
  0x23   : > { %p4200_p1 = pneg %p4199_p10 }
  0x25   : > { %p4207_p0 = pnand %p4206_p12, %p4200_p1 }
  0x27   : > { %4210 = shalt.err (!%p4207_p0)
}
  0x28   : > { %s4376_s13 = smov 64   ;;  %s4377_s15 = smov 4  }
  0x29   : > { %4063 = dma.hbm_to_vmem [thread:$0]  (!%p4476_p11), %s4928_s1, 1920, %s4469_s11, [#allocation9], %s4376_s13, %s4376_s13, %s4377_s15  }
  0x2a   : > { %s4211_s21 = scalar_lea.hbm %s4930_s3, 2560 }
  0x2b   : > { %p4212_p1 = scmp.ne.s32.totalorder %s4930_s3, %s4211_s21  ;;  %p4218_p10 = scmp.lt.u32.totalorder %s4211_s21, %s4930_s3 }
  0x2d   : > { %p4214_p2 = pnand %p4212_p1, %p4492_p13 }
  0x2f   : > { %p4215_p6 = pneg %p4214_p2 }
  0x31   : > { %p4220_p3 = pnand %p4218_p10, %p4215_p6 }
  0x33   : > { %4223 = shalt.err (!%p4220_p3)
}
  0x34   : > { %s4224_s11 = scalar_lea.vmem %s4480_s14, 2560  ;;  %p4232_p12 = scmp.lt.s32.totalorder %s4480_s14, %s4480_s14 }
  0x35   : > { %p4225_p5 = scmp.ne.s32.totalorder %s4480_s14, %s4224_s11  ;;  %p4233_p0 = scmp.lt.s32.totalorder %s4224_s11, %s4224_s11 }
  0x37   : > { %p4227_p7 = pnand %p4225_p5, %p4492_p13  ;;  %p4234_p1 = por %p4233_p0, %p4232_p12 }
  0x39   : > { %p4228_p9 = pneg %p4227_p7 }
  0x3b   : > { %p4235_p2 = pnand %p4234_p1, %p4228_p9 }
  0x3d   : > { %4238 = shalt.err (!%p4235_p2)
}
  0x3e   : > { %4066 = dma.hbm_to_vmem [thread:$0]  (!%p4476_p11), %s4930_s3, 2560, %s4480_s14, [#allocation9], %s4376_s13, %s4376_s13, %s4377_s15  }
  0x3f   : > { %s4239_s20 = scalar_lea.hbm %s4932_s5, 2560 }
  0x40   : > { %p4240_p6 = scmp.ne.s32.totalorder %s4932_s5, %s4239_s20  ;;  %p4246_p5 = scmp.lt.u32.totalorder %s4239_s20, %s4932_s5 }
  0x42   : > { %p4242_p10 = pnand %p4240_p6, %p4492_p13 }
  0x44   : > { %p4243_p3 = pneg %p4242_p10 }
  0x46   : > { %p4248_p7 = pnand %p4246_p5, %p4243_p3 }
  0x48   : > { %4251 = shalt.err (!%p4248_p7)
}
  0x49   : > { %s4252_s11 = scalar_lea.vmem %s253_s16, 2560  ;;  %p4260_p1 = scmp.lt.s32.totalorder %s253_s16, %s253_s16 }
  0x4a   : > { %p4253_p9 = scmp.ne.s32.totalorder %s253_s16, %s4252_s11  ;;  %p4261_p2 = scmp.lt.s32.totalorder %s4252_s11, %s4252_s11 }
  0x4c   : > { %p4255_p12 = pnand %p4253_p9, %p4492_p13  ;;  %p4262_p4 = por %p4261_p2, %p4260_p1 }
  0x4e   : > { %p4256_p0 = pneg %p4255_p12 }
  0x50   : > { %p4263_p8 = pnand %p4262_p4, %p4256_p0 }
  0x52   : > { %4266 = shalt.err (!%p4263_p8)
}
  0x53   : > { %4069 = dma.hbm_to_vmem [thread:$0]  (!%p4476_p11), %s4932_s5, 2560, %s253_s16, [#allocation12], %s4376_s13, %s4376_s13, %s4377_s15  }
  0x54   : > { %s4565_s22 = sadd.s32 1, %s4371_s27   ;;  %s32_s17 = sadd.s32 1, %s4367_s26 }
  0x55   : > { %s29_s12 = ssub.s32 %s4371_s27, %s4565_s22  ;;  %p39_p8 = scmp.ne.s32.totalorder %s4367_s26, %s4363_s25 }
  0x56   : > { %p30_p4 = scmp.eq.s32.totalorder %s29_s12, 0  ;;  %p40_p13 = scmp.eq.s32.totalorder %s4371_s27, 0 }
  0x57   : > { %p4081_p6 = scmp.lt.s32.totalorder %s4371_s27, 2  ;;  %p4945_p3 = scmp.eq.s32.totalorder %s4446_s28, 1 }
  0x58   : > { %s4575_s18 = scalar_select %p30_p4, %s4367_s26, %s32_s17  }
  0x59   : > { %p41_p10 = por %p40_p13, %p39_p8  ;;  %p4579_p5 = por %p4945_p3, %p39_p8 }
  0x5a   : > { %s269_s20 = sand.u32 1, %s4367_s26   ;;  %s4042_s21 = smul.u32 768, %s4371_s27 }
  0x5b   : > { %s4041_s16 = smul.u32 48, %s269_s20  ;;  %p4590_p11 = pnand %p4081_p6, %p41_p10 }
  0x5c   : > { %s4588_s23 = scalar_lea.hbm %s4927_s0, %s4042_s21  ;;  %s4596_s14 = scalar_lea.sflag [#allocation6], %s269_s20 }
  0x5d   : > { %s273_s10 = scalar_lea.vmem [#allocation5], %s4041_s16  ;;  %s4267_s8 = scalar_lea.hbm %s4588_s23, 768 }
  0x5e   : > { %s280_s11 = sshll.u32 %s273_s10, 4  ;;  %p4268_p7 = scmp.ne.s32.totalorder %s4588_s23, %s4267_s8  ;;  %s4594_s11 = int_to_ptr.vmem [resolvable:$true] %s280_s11 }
  0x5f   : > { %p4269_p9 = pneg %p4590_p11  ;;  %s4272_s21 = scalar_lea.hbm %s4927_s0, 1536 }
  0x60   : > { %p4273_p1 = scmp.lt.u32.totalorder %s4588_s23, %s4927_s0  ;;  %p4274_p2 = scmp.lt.u32.totalorder %s4272_s21, %s4267_s8 }
  0x61   : > { %p4270_p12 = pnand %p4269_p9, %p4268_p7  ;;  %p4276_p8 = scmp.lt.u32.totalorder %s4267_s8, %s4588_s23 }
  0x62   : > { %p4275_p4 = por %p4274_p2, %p4273_p1 }
  0x63   : > { %p4271_p0 = pneg %p4270_p12 }
  0x64   : > { %p4277_p13 = por %p4276_p8, %p4275_p4 }
  0x66   : > { %p4278_p6 = pnand %p4277_p13, %p4271_p0 }
  0x68   : > { %4281 = shalt.err (!%p4278_p6)
}
  0x69   : > { %s4282_s20 = scalar_lea.vmem %s4594_s11, 768  ;;  %s4378_s16 = smov [#allocation5]  }
  0x6a   : > { %p4283_p10 = scmp.ne.s32.totalorder %s4594_s11, %s4282_s20  ;;  %s4287_s10 = sshll.u32 %s4378_s16, 4  ;;  %s4288_s10 = int_to_ptr.vmem [resolvable:$false] %s4287_s10 }
  0x6b   : > { %s4289_s12 = scalar_lea.vmem %s4288_s10, 1536  ;;  %p4290_p12 = scmp.lt.s32.totalorder %s4594_s11, %s4288_s10 }
  0x6c   : > { %p4285_p3 = pnand %p4283_p10, %p4269_p9  ;;  %p4291_p1 = scmp.lt.s32.totalorder %s4289_s12, %s4282_s20 }
  0x6e   : > { %p4286_p7 = pneg %p4285_p3  ;;  %p4292_p2 = por %p4291_p1, %p4290_p12 }
  0x70   : > { %p4293_p4 = pnand %p4292_p2, %p4286_p7 }
  0x72   : > { %4296 = shalt.err (!%p4293_p4)
}
  0x73   : > { %s4379_s8 = smov 128   ;;  %s4380_s17 = smov 8  }
  0x74   : > { %4073 = dma.hbm_to_vmem [thread:$0]  (!%p4590_p11), %s4588_s23, 768, %s4594_s11, %s4596_s14, %s4379_s8, %s4379_s8, %s4380_s17  }
  0x75   : > { %p4948_p9 = scmp.ne.s32.totalorder %s4942_s9, 0 }
  0x76   : > { %s4627_s21 = sand.u32 (!%p4948_p9), 1, %s4363_s25   ;;  %p4949_p0 = scmp.ne.s32.totalorder (!%p4948_p9), %s4939_s30, 0 }
  0x77   : > { %292 = sbr.rel (%p4948_p9) target bundleno = 1443 (0x5a3), region = 48  ;;  %s295_s15 = scalar_lea.sflag (!%p4948_p9), [#allocation6], %s4627_s21 }
  0x78   : > { %s4043_s13 = smul.u32 (!%p4948_p9), 48, %s4627_s21 }
  0x7a   : > { %s298_s20 = scalar_lea.vmem (!%p4948_p9), [#allocation5], %s4043_s13 }
  0x7e   : > { %4342 = dma.done.wait (%p4949_p0), %s295_s15, 768  }
  0x7f   : > { %4344 = vsyncadd (%p4949_p0), %s295_s15, 4294966528  ;;  %p4950_p8 = scmp.eq.s32.totalorder %s4446_s28, 0 }
  0x81   : > { %4346 = dma.done.wait (%p4950_p8), [#allocation9], 4480   ;;  %p4951_p11 = pmov %p4950_p8 }
  0x82   : > { %p4952_p13 = pmov %p4950_p8 }
  0x83   : > { %4348 = vsyncadd (%p4951_p11), [#allocation9], 4294962816 }
  0x84   : > { %4350 = dma.done.wait (%p4952_p13), [#allocation12], 2560   ;;  %p4953_p6 = pmov %p4950_p8 }
  0x85   : > { %v375_v0 = vld [vmem:[%s298_s20] sm:$0xff]  ;;  %v376_v1 = vld [vmem:[%s298_s20 + $0x8] sm:$0xff]  ;;  %vm342_vm0 = vcmask 386048   ;;  %v4381_v2 = vmov 0.0   ;;  %v377_v3 = vld [vmem:[%s298_s20 + $0x10] sm:$0xff]  ;;  %vm413_vm1 = vcmask 392192  }
  0x86   : > { %4352 = vsyncadd (%p4953_p6), [#allocation12], 4294964736  ;;  %381 = vxpose.xlu0.b32.start [1/6] (short) %v375_v0, 128  ;;  %343 = vst.msk [vmem:[#allocation2] sm:$0x3] %vm342_vm0, %v4381_v2  ;;  %v378_v4 = vld [vmem:[%s298_s20 + $0x18] sm:$0xff]  ;;  %v4645_v6 = vld [vmem:[#allocation8 + $0x30] sm:$0xff]  }
  0x87   : > { %344 = vst.msk [vmem:[#allocation2 + $0x82] sm:$0x3] %vm342_vm0, %v4381_v2  ;;  %v4128_v5 = vld [vmem:[#allocation8 + $0x18] sm:$0xff]   ;;  %v379_v7 = vld [vmem:[%s298_s20 + $0x20] sm:$0xff]  ;;  %3633 = vmatprep.subr.bf16.mxu0 %v4645_v6  ;;  %v4132_v11 = vld [vmem:[#allocation8 + $0x28] sm:$0xff]   ;;  %vm347_vm2 = vcmask 523264  }
  0x88   : > { %3589 = vmatprep.subr.bf16.mxu1 %v4128_v5  ;;  %3634 = vmatpush3.bf16.msra.mxu0 %v4645_v6  ;;  %v4130_v8 = vld [vmem:[#allocation8 + $0x20] sm:$0xff]   ;;  %v4649_v9 = vld [vmem:[#allocation8 + $0x38] sm:$0xff]   ;;  %v4134_v13 = vld [vmem:[#allocation8 + $0x48] sm:$0xff]   ;;  %348 = vst.msk [vmem:[#allocation3 + $0x22] sm:$0xff] %vm347_vm2, %v4381_v2  ;;  %vm345_vm3 = vcmask 517120   ;;  %s3229_s16 = sshll.u32 %s4627_s21, 6 }
  0x89   : > { %3590 = vmatpush3.bf16.msra.mxu1 %v4128_v5  ;;  %v380_v10 = vld [vmem:[%s298_s20 + $0x28] sm:$0xff]  ;;  %3635 = vmatprep.subr.bf16.mxu0 %v4649_v9  ;;  %v4653_v12 = vld [vmem:[#allocation8 + $0x40] sm:$0xff]   ;;  %v4135_v33 = vld [vmem:[#allocation8 + $0x50] sm:$0xff]   ;;  %349 = vst.msk [vmem:[#allocation3 + $0x2a] sm:$0xff] %vm347_vm2, %v4381_v2  ;;  %s340_s10 = scalar_lea.vmem [#allocation13], %s3229_s16  ;;  %s3413_s8 = sshll.u32 %s4446_s28, 10 }
  0x8a   : > { %382 = vxpose.xlu0.b32.cont [2/6] (short) %v376_v1, 128  ;;  %3591 = vmatprep.subr.bf16.mxu1 %v4130_v8  ;;  %v4137_v14 = vld [vmem:[#allocation8] sm:$0xff]   ;;  %v4139_v34 = vld [vmem:[#allocation8 + $0x8] sm:$0xff]   ;;  %v4136_v36 = vld [vmem:[#allocation8 + $0x58] sm:$0xff]   ;;  %350 = vst.msk [vmem:[#allocation3 + $0x32] sm:$0xff] %vm347_vm2, %v4381_v2  ;;  %s3116_s12 = sshll.u32 %s340_s10, 4  ;;  %s4883_s15 = scalar_lea.hbm %s4934_s7, %s3413_s8  ;;  %s4878_s12 = int_to_ptr.vmem [resolvable:$true] %s3116_s12 }
  0x8b   : > { %v4141_v37 = vld [vmem:[#allocation8 + $0x10] sm:$0xff]   ;;  %v4138_v45 = vld [vmem:[#allocation8 + $0x60] sm:$0xff]   ;;  %351 = vst.msk [vmem:[#allocation3 + $0x3a] sm:$0xff] %vm347_vm2, %v4381_v2  ;;  %352 = vst.msk [vmem:[#allocation3 + $0x42] sm:$0xff] %vm347_vm2, %v4381_v2  ;;  %s3103_s20 = scalar_lea.sflag [#allocation7], %s4627_s21  ;;  %s4297_s30 = scalar_lea.vmem %s4878_s12, 1024 }
  0x8c   : > { %3636 = vmatpush3.bf16.msra.mxu0 %v4649_v9  ;;  %353 = vst.msk [vmem:[#allocation3 + $0x4a] sm:$0xff] %vm347_vm2, %v4381_v2  ;;  %354 = vst.msk [vmem:[#allocation3 + $0x52] sm:$0xff] %vm347_vm2, %v4381_v2  ;;  %p4298_p10 = scmp.ne.s32.totalorder %s4878_s12, %s4297_s30  ;;  %s4382_s28 = smov [#allocation13]  }
  0x8d   : > { %3592 = vmatpush3.bf16.msra.mxu1 %v4130_v8  ;;  %3637 = vmatprep.subr.bf16.mxu0 %v4653_v12  ;;  %v4142_v8 = vld [vmem:[#allocation8 + $0x70] sm:$0xff]   ;;  %355 = vst.msk [vmem:[#allocation3 + $0x5a] sm:$0xff] %vm347_vm2, %v4381_v2  ;;  %356 = vst.msk [vmem:[#allocation3 + $0x62] sm:$0xff] %vm347_vm2, %v4381_v2  ;;  %s4301_s9 = sshll.u32 %s4382_s28, 4  ;;  %s4302_s9 = int_to_ptr.vmem [resolvable:$false] %s4301_s9 }
  0x8e   : > { %383 = vxpose.xlu0.b32.cont [3/6] (short) %v377_v3, 128  ;;  %3593 = vmatprep.subr.bf16.mxu1 %v4132_v11  ;;  %357 = vst.msk [vmem:[#allocation3 + $0x6a] sm:$0xff] %vm347_vm2, %v4381_v2  ;;  %358 = vst.msk [vmem:[#allocation3 + $0x72] sm:$0xff] %vm347_vm2, %v4381_v2  ;;  %p4299_p3 = pnand %p4298_p10, %p4579_p5  ;;  %s4303_s23 = scalar_lea.vmem %s4302_s9, 2048 }
  0x8f   : > { %359 = vst.msk [vmem:[#allocation3 + $0x7a] sm:$0xff] %vm347_vm2, %v4381_v2  ;;  %362 = vst.msk [vmem:[#allocation4 + $0x22] sm:$0xff] %vm347_vm2, %v4381_v2  ;;  %p4304_p12 = scmp.lt.s32.totalorder %s4878_s12, %s4302_s9  ;;  %p4305_p1 = scmp.lt.s32.totalorder %s4303_s23, %s4297_s30 }
  0x90   : > { %3638 = vmatpush3.bf16.msra.mxu0 %v4653_v12  ;;  %363 = vst.msk [vmem:[#allocation4 + $0x2a] sm:$0xff] %vm347_vm2, %v4381_v2  ;;  %364 = vst.msk [vmem:[#allocation4 + $0x32] sm:$0xff] %vm347_vm2, %v4381_v2  ;;  %p4300_p7 = pneg %p4299_p3 }
  0x91   : > { %3594 = vmatpush3.bf16.msra.mxu1 %v4132_v11  ;;  %3655 = vmatprep.subr.bf16.mxu0 %v4134_v13  ;;  %365 = vst.msk [vmem:[#allocation4 + $0x3a] sm:$0xff] %vm347_vm2, %v4381_v2  ;;  %366 = vst.msk [vmem:[#allocation4 + $0x42] sm:$0xff] %vm347_vm2, %v4381_v2  ;;  %p4306_p2 = por %p4305_p1, %p4304_p12 }
  0x92   : > { %384 = vxpose.xlu0.b32.cont [4/6] (short) %v378_v4, 128  ;;  %3611 = vmatprep.subr.bf16.mxu1 %v4137_v14  ;;  %v4140_v4 = vld [vmem:[#allocation8 + $0x68] sm:$0xff]   ;;  %367 = vst.msk [vmem:[#allocation4 + $0x4a] sm:$0xff] %vm347_vm2, %v4381_v2  ;;  %368 = vst.msk [vmem:[#allocation4 + $0x52] sm:$0xff] %vm347_vm2, %v4381_v2 }
  0x93   : > { %369 = vst.msk [vmem:[#allocation4 + $0x5a] sm:$0xff] %vm347_vm2, %v4381_v2  ;;  %370 = vst.msk [vmem:[#allocation4 + $0x62] sm:$0xff] %vm347_vm2, %v4381_v2  ;;  %p4307_p4 = pnand %p4306_p2, %p4300_p7 }
  0x94   : > { %371 = vst.msk [vmem:[#allocation4 + $0x6a] sm:$0xff] %vm347_vm2, %v4381_v2  ;;  %372 = vst.msk [vmem:[#allocation4 + $0x72] sm:$0xff] %vm347_vm2, %v4381_v2 }
  0x95   : > { %373 = vst.msk [vmem:[#allocation4 + $0x7a] sm:$0xff] %vm347_vm2, %v4381_v2 }
  0x96   : > { %385 = vxpose.xlu0.b32.cont [5/6] (short) %v379_v7, 128  ;;  %346 = vst.msk [vmem:[#allocation3] sm:$0x3] %vm345_vm3, %v4381_v2  ;;  %360 = vst.msk [vmem:[#allocation3 + $0x82] sm:$0x3] %vm345_vm3, %v4381_v2 }
  0x97   : > { %361 = vst.msk [vmem:[#allocation4] sm:$0x3] %vm345_vm3, %v4381_v2  ;;  %374 = vst.msk [vmem:[#allocation4 + $0x82] sm:$0x3] %vm345_vm3, %v4381_v2 }
  0x9a   : > { %386 = vxpose.xlu0.b32.end [6/6] (short) %v380_v10, 128 }
 0x106   : > { %v397_v15 = vpop.trf.xlu0 }
 0x107   : > { %414 = vst.msk [vmem:[#allocation2 + $0x2] sm:$0xff] %vm413_vm1, %v397_v15 }
 0x10a   : > { %v398_v16 = vpop.trf.xlu0 }
 0x10b   : > { %415 = vst.msk [vmem:[#allocation2 + $0xa] sm:$0xff] %vm413_vm1, %v398_v16 }
 0x10e   : > { %v399_v17 = vpop.trf.xlu0  ;;  %v460_v18 = vld [vmem:[#allocation2 + $0x1] sm:$0xff] }
 0x10f   : > { %416 = vst.msk [vmem:[#allocation2 + $0x12] sm:$0xff] %vm413_vm1, %v399_v17  ;;  %v745_v21 = vld [vmem:[#allocation2 + $0x2] sm:$0xff] }
 0x112   : > { %v400_v19 = vpop.trf.xlu0  ;;  %v461_v20 = vld [vmem:[#allocation2 + $0x9] sm:$0xff] }
 0x113   : > { %v746_v22 = vld [vmem:[#allocation2 + $0xa] sm:$0xff]  ;;  %417 = vst.msk [vmem:[#allocation2 + $0x1a] sm:$0xff] %vm413_vm1, %v400_v19  ;;  %v476_v23 = vpack.c.bf16 %v461_v20, %v460_v18 }
 0x114   : > { %v761_v24 = vpack.c.bf16 %v746_v22, %v745_v21  ;;  %v907_v55 = vld [vmem:[#allocation2 + $0x3] sm:$0xff] }
 0x115   : > { %3595 = vmatprep.mubr.msk.bf16.mxu1 %vm413_vm1, %v476_v23 }
 0x116   : > { %3639 = vmatprep.mubr.msk.bf16.mxu0 %vm413_vm1, %v761_v24  ;;  %v401_v25 = vpop.trf.xlu0  ;;  %v462_v26 = vld [vmem:[#allocation2 + $0x11] sm:$0xff] }
 0x117   : > { %418 = vst.msk [vmem:[#allocation2 + $0x22] sm:$0xff] %vm413_vm1, %v401_v25  ;;  %v747_v29 = vld [vmem:[#allocation2 + $0x12] sm:$0xff] }
 0x118   : > { %v908_v48 = vld [vmem:[#allocation2 + $0xb] sm:$0xff] }
 0x119   : > { %v923_v56 = vpack.c.bf16 %v908_v48, %v907_v55  ;;  %v432_v48 = vld [vmem:[#allocation2 + $0x10] sm:$0xff] }
 0x11a   : > { %v402_v27 = vpop.trf.xlu0  ;;  %v463_v28 = vld [vmem:[#allocation2 + $0x19] sm:$0xff] }
 0x11b   : > { %v748_v30 = vld [vmem:[#allocation2 + $0x1a] sm:$0xff]  ;;  %419 = vst.msk [vmem:[#allocation2 + $0x2a] sm:$0xff] %vm413_vm1, %v402_v27  ;;  %v477_v31 = vpack.c.bf16 %v463_v28, %v462_v26 }
 0x11c   : > { %v762_v32 = vpack.c.bf16 %v748_v30, %v747_v29  ;;  %v909_v63 = vld [vmem:[#allocation2 + $0x13] sm:$0xff] }
 0x11d   : > { %3596 = vmatmul.mubr.msk.bf16.vlgmr.msra.gmra.mrb[0].mxu1 %vm413_vm1, %v477_v31 }
 0x11e   : > { %3640 = vmatmul.mubr.msk.bf16.vlgmr.msra.gmra.mrb[0].mxu0 %vm413_vm1, %v762_v32  ;;  %v403_v35 = vpop.trf.xlu0  ;;  %3612 = vmatpush3.bf16.msra.mxu1 %v4137_v14  ;;  %v464_v38 = vld [vmem:[#allocation2 + $0x21] sm:$0xff] }
 0x11f   : > { %3656 = vmatpush3.bf16.msra.mxu0 %v4134_v13  ;;  %420 = vst.msk [vmem:[#allocation2 + $0x32] sm:$0xff] %vm413_vm1, %v403_v35  ;;  %3613 = vmatprep.subr.bf16.mxu1 %v4139_v34  ;;  %v749_v41 = vld [vmem:[#allocation2 + $0x22] sm:$0xff] }
 0x120   : > { %3657 = vmatprep.subr.bf16.mxu0 %v4135_v33  ;;  %v910_v58 = vld [vmem:[#allocation2 + $0x1b] sm:$0xff] }
 0x121   : > { %v924_v1 = vpack.c.bf16 %v910_v58, %v909_v63 }
 0x122   : > { %v404_v39 = vpop.trf.xlu0  ;;  %v465_v40 = vld [vmem:[#allocation2 + $0x29] sm:$0xff]  ;;  %3614 = vmatpush3.bf16.msra.mxu1 %v4139_v34 }
 0x123   : > { %v750_v42 = vld [vmem:[#allocation2 + $0x2a] sm:$0xff]  ;;  %3658 = vmatpush3.bf16.msra.mxu0 %v4135_v33  ;;  %421 = vst.msk [vmem:[#allocation2 + $0x3a] sm:$0xff] %vm413_vm1, %v404_v39  ;;  %v478_v43 = vpack.c.bf16 %v465_v40, %v464_v38  ;;  %3615 = vmatprep.subr.bf16.mxu1 %v4141_v37  ;;  %v430_v40 = vld [vmem:[#allocation2] sm:$0xff] }
 0x124   : > { %v763_v44 = vpack.c.bf16 %v750_v42, %v749_v41  ;;  %3659 = vmatprep.subr.bf16.mxu0 %v4136_v36  ;;  %v911_v3 = vld [vmem:[#allocation2 + $0x23] sm:$0xff]  ;;  %v1070_v34 = vld [vmem:[#allocation2 + $0xc] sm:$0xff] }
 0x125   : > { %3599 = vmatprep.mubr.msk.bf16.mxu1 %vm413_vm1, %v478_v43  ;;  %v431_v33 = vld [vmem:[#allocation2 + $0x8] sm:$0xff] }
 0x126   : > { %3643 = vmatprep.mubr.msk.bf16.mxu0 %vm413_vm1, %v763_v44  ;;  %v405_v46 = vpop.trf.xlu0  ;;  %3616 = vmatpush3.bf16.msra.mxu1 %v4141_v37  ;;  %v466_v47 = vld [vmem:[#allocation2 + $0x31] sm:$0xff]  ;;  %v1069_v41 = vld [vmem:[#allocation2 + $0x4] sm:$0xff]  ;;  %v446_v42 = vpack.c.bf16 %v431_v33, %v430_v40 }
 0x127   : > { %3660 = vmatpush3.bf16.msra.mxu0 %v4136_v36  ;;  %422 = vst.msk [vmem:[#allocation2 + $0x42] sm:$0xff] %vm413_vm1, %v405_v46  ;;  %3939 = vmatprep.subr.bf16.mxu1 %v4645_v6  ;;  %v751_v51 = vld [vmem:[#allocation2 + $0x32] sm:$0xff]  ;;  %v1085_v43 = vpack.c.bf16 %v1070_v34, %v1069_v41  ;;  %v435_v46 = vld [vmem:[#allocation2 + $0x28] sm:$0xff] }
 0x128   : > { %3677 = vmatprep.subr.bf16.mxu0 %v4138_v45  ;;  %v912_v59 = vld [vmem:[#allocation2 + $0x2b] sm:$0xff]  ;;  %v433_v44 = vld [vmem:[#allocation2 + $0x18] sm:$0xff] }
 0x129   : > { %v925_v5 = vpack.c.bf16 %v912_v59, %v911_v3 }
 0x12a   : > { %v406_v49 = vpop.trf.xlu0  ;;  %v467_v50 = vld [vmem:[#allocation2 + $0x39] sm:$0xff] }
 0x12b   : > { %v752_v52 = vld [vmem:[#allocation2 + $0x3a] sm:$0xff]  ;;  %423 = vst.msk [vmem:[#allocation2 + $0x4a] sm:$0xff] %vm413_vm1, %v406_v49  ;;  %v479_v53 = vpack.c.bf16 %v467_v50, %v466_v47  ;;  %v1074_v47 = vld [vmem:[#allocation2 + $0x2c] sm:$0xff]  ;;  %v447_v50 = vpack.c.bf16 %v433_v44, %v432_v48 }
 0x12c   : > { %v764_v54 = vpack.c.bf16 %v752_v52, %v751_v51  ;;  %v913_v16 = vld [vmem:[#allocation2 + $0x33] sm:$0xff]  ;;  %v434_v52 = vld [vmem:[#allocation2 + $0x20] sm:$0xff] }
 0x12d   : > { %3600 = vmatmul.mubr.msk.bf16.gmra.mrb[4].mxu1 %vm413_vm1, %v479_v53  ;;  %v1071_v49 = vld [vmem:[#allocation2 + $0x14] sm:$0xff]  ;;  %v1073_v53 = vld [vmem:[#allocation2 + $0x24] sm:$0xff] }
 0x12e   : > { %3644 = vmatmul.mubr.msk.bf16.gmra.mrb[4].mxu0 %vm413_vm1, %v764_v54  ;;  %v407_v57 = vpop.trf.xlu0  ;;  %v468_v61 = vld [vmem:[#allocation2 + $0x41] sm:$0xff]  ;;  %v448_v54 = vpack.c.bf16 %v435_v46, %v434_v52  ;;  %v1087_v55 = vpack.c.bf16 %v1074_v47, %v1073_v53 }
 0x12f   : > { %3661 = vmatprep.mubr.msk.bf16.mxu0 %vm413_vm1, %v923_v56  ;;  %424 = vst.msk [vmem:[#allocation2 + $0x52] sm:$0xff] %vm413_vm1, %v407_v57  ;;  %v914_v10 = vld [vmem:[#allocation2 + $0x3b] sm:$0xff] }
 0x130   : > { %v926_v18 = vpack.c.bf16 %v914_v10, %v913_v16  ;;  %v437_v56 = vld [vmem:[#allocation2 + $0x38] sm:$0xff] }
 0x131   : > { %v1076_v57 = vld [vmem:[#allocation2 + $0x3c] sm:$0xff] }
 0x132   : > { %v408_v60 = vpop.trf.xlu0  ;;  %v469_v62 = vld [vmem:[#allocation2 + $0x49] sm:$0xff] }
 0x133   : > { %425 = vst.msk [vmem:[#allocation2 + $0x5a] sm:$0xff] %vm413_vm1, %v408_v60  ;;  %v480_v0 = vpack.c.bf16 %v469_v62, %v468_v61  ;;  %v915_v19 = vld [vmem:[#allocation2 + $0x43] sm:$0xff]  ;;  %v436_v60 = vld [vmem:[#allocation2 + $0x30] sm:$0xff] }
 0x134   : > { %v439_v58 = vld [vmem:[#allocation2 + $0x48] sm:$0xff]  ;;  %v1075_v61 = vld [vmem:[#allocation2 + $0x34] sm:$0xff]  ;;  %v449_v62 = vpack.c.bf16 %v437_v56, %v436_v60 }
 0x135   : > { %3603 = vmatprep.mubr.msk.bf16.mxu1 %vm413_vm1, %v480_v0  ;;  %v1088_v63 = vpack.c.bf16 %v1076_v57, %v1075_v61  ;;  %v438_v0 = vld [vmem:[#allocation2 + $0x40] sm:$0xff] }
 0x136   : > { %3662 = vmatmul.mubr.msk.bf16.vlgmr.msra.gmra.mrb[0].mxu0 %vm413_vm1, %v924_v1  ;;  %v409_v7 = vpop.trf.xlu0  ;;  %v916_v11 = vld [vmem:[#allocation2 + $0x4b] sm:$0xff]  ;;  %v450_v3 = vpack.c.bf16 %v439_v58, %v438_v0 }
 0x137   : > { %3678 = vmatpush3.bf16.msra.mxu0 %v4138_v45  ;;  %3665 = vmatprep.mubr.msk.bf16.mxu0 %vm413_vm1, %v925_v5  ;;  %426 = vst.msk [vmem:[#allocation2 + $0x62] sm:$0xff] %vm413_vm1, %v409_v7  ;;  %v470_v14 = vld [vmem:[#allocation2 + $0x51] sm:$0xff]  ;;  %v927_v20 = vpack.c.bf16 %v916_v11, %v915_v19  ;;  %v1072_v45 = vld [vmem:[#allocation2 + $0x1c] sm:$0xff]  ;;  %v1077_v1 = vld [vmem:[#allocation2 + $0x44] sm:$0xff] }
 0x138   : > { %3679 = vmatprep.subr.bf16.mxu0 %v4140_v4  ;;  %v1086_v51 = vpack.c.bf16 %v1072_v45, %v1071_v49  ;;  %v1078_v59 = vld [vmem:[#allocation2 + $0x4c] sm:$0xff] }
 0x139   : > { %v440_v10 = vld [vmem:[#allocation2 + $0x50] sm:$0xff] }
 0x13a   : > { %v410_v13 = vpop.trf.xlu0  ;;  %v471_v15 = vld [vmem:[#allocation2 + $0x59] sm:$0xff] }
 0x13b   : > { %3680 = vmatpush3.bf16.msra.mxu0 %v4140_v4  ;;  %427 = vst.msk [vmem:[#allocation2 + $0x6a] sm:$0xff] %vm413_vm1, %v410_v13  ;;  %v481_v17 = vpack.c.bf16 %v471_v15, %v470_v14  ;;  %v917_v26 = vld [vmem:[#allocation2 + $0x53] sm:$0xff]  ;;  %v1089_v4 = vpack.c.bf16 %v1078_v59, %v1077_v1 }
 0x13c   : > { %3681 = vmatprep.subr.bf16.mxu0 %v4142_v8 }
 0x13d   : > { %3604 = vmatmul.mubr.msk.bf16.gmra.mrb[8].mxu1 %vm413_vm1, %v481_v17 }
 0x13e   : > { %3666 = vmatmul.mubr.msk.bf16.gmra.mrb[8].mxu0 %vm413_vm1, %v926_v18  ;;  %v411_v21 = vpop.trf.xlu0  ;;  %v918_v22 = vld [vmem:[#allocation2 + $0x5b] sm:$0xff] }
 0x13f   : > { %3669 = vmatprep.mubr.msk.bf16.mxu0 %vm413_vm1, %v927_v20  ;;  %3682 = vmatpush3.bf16.msra.mxu0 %v4142_v8  ;;  %428 = vst.msk [vmem:[#allocation2 + $0x72] sm:$0xff] %vm413_vm1, %v411_v21  ;;  %v472_v24 = vld [vmem:[#allocation2 + $0x61] sm:$0xff]  ;;  %v928_v28 = vpack.c.bf16 %v918_v22, %v917_v26  ;;  %v754_v20 = vld [vmem:[#allocation2 + $0x4a] sm:$0xff] }
 0x140   : > { %v1080_v5 = vld [vmem:[#allocation2 + $0x5c] sm:$0xff] }
 0x141   : > { %v442_v14 = vld [vmem:[#allocation2 + $0x60] sm:$0xff] }
 0x142   : > { %v412_v23 = vpop.trf.xlu0  ;;  %v473_v25 = vld [vmem:[#allocation2 + $0x69] sm:$0xff]  ;;  %v756_v26 = vld [vmem:[#allocation2 + $0x5a] sm:$0xff] }
 0x143   : > { %429 = vst.msk [vmem:[#allocation2 + $0x7a] sm:$0xff] %vm413_vm1, %v412_v23  ;;  %v482_v27 = vpack.c.bf16 %v473_v25, %v472_v24  ;;  %v919_v29 = vld [vmem:[#allocation2 + $0x63] sm:$0xff] }
 0x144   : > { %v443_v7 = vld [vmem:[#allocation2 + $0x68] sm:$0xff] }
 0x145   : > { %3607 = vmatprep.mubr.msk.bf16.mxu1 %vm413_vm1, %v482_v27  ;;  %v1081_v15 = vld [vmem:[#allocation2 + $0x64] sm:$0xff]  ;;  %v452_v16 = vpack.c.bf16 %v443_v7, %v442_v14 }
 0x146   : > { %3670 = vmatmul.mubr.msk.bf16.gmra.mrb[12].mxu0 %vm413_vm1, %v928_v28  ;;  %v920_v30 = vld [vmem:[#allocation2 + $0x6b] sm:$0xff]  ;;  %v753_v24 = vld [vmem:[#allocation2 + $0x42] sm:$0xff] }
 0x147   : > { %v929_v31 = vpack.c.bf16 %v920_v30, %v919_v29  ;;  %v474_v32 = vld [vmem:[#allocation2 + $0x71] sm:$0xff]  ;;  %v765_v25 = vpack.c.bf16 %v754_v20, %v753_v24  ;;  %v757_v30 = vld [vmem:[#allocation2 + $0x62] sm:$0xff] }
 0x148   : > { %v1082_v8 = vld [vmem:[#allocation2 + $0x6c] sm:$0xff] }
 0x149   : > { %3673 = vmatprep.mubr.msk.bf16.mxu0 %vm413_vm1, %v929_v31  ;;  %v1091_v17 = vpack.c.bf16 %v1082_v8, %v1081_v15  ;;  %v444_v21 = vld [vmem:[#allocation2 + $0x70] sm:$0xff] }
 0x14a   : > { %v475_v35 = vld [vmem:[#allocation2 + $0x79] sm:$0xff]  ;;  %v758_v27 = vld [vmem:[#allocation2 + $0x6a] sm:$0xff] }
 0x14b   : > { %v921_v36 = vld [vmem:[#allocation2 + $0x73] sm:$0xff]  ;;  %v922_v37 = vld [vmem:[#allocation2 + $0x7b] sm:$0xff]  ;;  %v483_v38 = vpack.c.bf16 %v475_v35, %v474_v32  ;;  %v767_v31 = vpack.c.bf16 %v758_v27, %v757_v30 }
 0x14c   : > { %v930_v39 = vpack.c.bf16 %v922_v37, %v921_v36  ;;  %v1083_v18 = vld [vmem:[#allocation2 + $0x74] sm:$0xff]  ;;  %v1084_v19 = vld [vmem:[#allocation2 + $0x7c] sm:$0xff] }
 0x14d   : > { %3608 = vmatmul.mubr.msk.bf16.gmra.mrb[12].mxu1 %vm413_vm1, %v483_v38  ;;  %v1092_v23 = vpack.c.bf16 %v1084_v19, %v1083_v18  ;;  %v755_v28 = vld [vmem:[#allocation2 + $0x52] sm:$0xff]  ;;  %v760_v32 = vld [vmem:[#allocation2 + $0x7a] sm:$0xff]  ;;  %v4146_v38 = vld [vmem:[#allocation10 + $0x38] sm:$0xff]  }
 0x14e   : > { %3674 = vmatmul.mubr.msk.bf16.gmra.mrb[16].mxu0 %vm413_vm1, %v930_v39  ;;  %3617 = vmatprep.mubr.msk.bf16.mxu1 %vm413_vm1, %v446_v42  ;;  %v766_v29 = vpack.c.bf16 %v756_v26, %v755_v28  ;;  %v759_v33 = vld [vmem:[#allocation2 + $0x72] sm:$0xff]  ;;  %v4145_v37 = vld [vmem:[#allocation10 + $0x30] sm:$0xff]  }
 0x14f   : > { %3683 = vmatprep.mubr.msk.bf16.mxu0 %vm413_vm1, %v1085_v43  ;;  %v768_v34 = vpack.c.bf16 %v760_v32, %v759_v33  ;;  %v4143_v35 = vld [vmem:[#allocation10 + $0x20] sm:$0xff]   ;;  %v4144_v36 = vld [vmem:[#allocation10 + $0x28] sm:$0xff]  }
 0x150   : > { %v4771_v39 = vld [vmem:[#allocation10] sm:$0xff]  }
 0x155   : > { %3618 = vmatmul.mubr.msk.bf16.vlgmr.msra.gmra.mrb[0].mxu1 %vm413_vm1, %v447_v50 }
 0x156   : > { %3684 = vmatmul.mubr.msk.bf16.vlgmr.msra.gmra.mrb[0].mxu0 %vm413_vm1, %v1086_v51  ;;  %3621 = vmatprep.mubr.msk.bf16.mxu1 %vm413_vm1, %v448_v54 }
 0x157   : > { %3687 = vmatprep.mubr.msk.bf16.mxu0 %vm413_vm1, %v1087_v55  ;;  %3942 = vmatpush3.bf16.msra.mxu1 %v4645_v6  ;;  %v441_v6 = vld [vmem:[#allocation2 + $0x58] sm:$0xff] }
 0x158   : > { %3940 = vmatprep.subr.bf16.mxu1 %v4649_v9  ;;  %v451_v11 = vpack.c.bf16 %v441_v6, %v440_v10 }
 0x15b   : > { %3943 = vmatpush3.bf16.msra.mxu1 %v4649_v9  ;;  %v1079_v9 = vld [vmem:[#allocation2 + $0x54] sm:$0xff] }
 0x15c   : > { %3941 = vmatprep.subr.bf16.mxu1 %v4653_v12  ;;  %v1090_v13 = vpack.c.bf16 %v1080_v5, %v1079_v9  ;;  %v3285_v5 = vld [vmem:[%s4929_s2] ss:$0 sm:$0xff] }
 0x15d   : > { %3622 = vmatmul.mubr.msk.bf16.gmra.mrb[16].mxu1 %vm413_vm1, %v449_v62 }
 0x15e   : > { %3688 = vmatmul.mubr.msk.bf16.gmra.mrb[20].mxu0 %vm413_vm1, %v1088_v63  ;;  %3625 = vmatprep.mubr.msk.bf16.mxu1 %vm413_vm1, %v450_v3 }
 0x15f   : > { %3691 = vmatprep.mubr.msk.bf16.mxu0 %vm413_vm1, %v1089_v4  ;;  %3944 = vmatpush3.bf16.msra.mxu1 %v4653_v12  ;;  %v445_v12 = vld [vmem:[#allocation2 + $0x78] sm:$0xff] }
 0x160   : > { %v453_v22 = vpack.c.bf16 %v445_v12, %v444_v21  ;;  %3699 = vmatprep.subr.bf16.mxu1 %v4143_v35 }
 0x165   : > { %3626 = vmatmul.mubr.msk.bf16.gmra.mrb[20].mxu1 %vm413_vm1, %v451_v11 }
 0x166   : > { %3692 = vmatmul.mubr.msk.bf16.gmra.mrb[24].mxu0 %vm413_vm1, %v1090_v13  ;;  %3629 = vmatprep.mubr.msk.bf16.mxu1 %vm413_vm1, %v452_v16 }
 0x167   : > { %3695 = vmatprep.mubr.msk.bf16.mxu0 %vm413_vm1, %v1091_v17 }
 0x16d   : > { %3630 = vmatmul.mubr.msk.bf16.gmra.mrb[24].mxu1 %vm413_vm1, %v453_v22 }
 0x16e   : > { %3696 = vmatmul.mubr.msk.bf16.gmra.mrb[28].mxu0 %vm413_vm1, %v1092_v23  ;;  %3647 = vmatprep.mubr.msk.bf16.mxu1 %vm413_vm1, %v765_v25 }
 0x175   : > { %3648 = vmatmul.mubr.msk.bf16.vlgmr.msra.gmra.mrb[28].mxu1 %vm413_vm1, %v766_v29 }
 0x176   : > { %3651 = vmatprep.mubr.msk.bf16.mxu1 %vm413_vm1, %v767_v31  ;;  %3700 = vmatpush3.bf16.msra.mxu1 %v4143_v35  ;;  %v1283_v31 = vld [vmem:[#allocation3 + $0x29] sm:$0xff] }
 0x177   : > { %3701 = vmatprep.subr.bf16.mxu1 %v4144_v36 }
 0x17a   : > { %3702 = vmatpush3.bf16.msra.mxu1 %v4144_v36 }
 0x17b   : > { %3703 = vmatprep.subr.bf16.mxu1 %v4145_v37 }
 0x17d   : > { %3652 = vmatmul.mubr.msk.bf16.gmra.mrb[32].mxu1 %vm413_vm1, %v768_v34 }
 0x17e   : > { %3704 = vmatpush3.bf16.msra.mxu1 %v4145_v37 }
 0x17f   : > { %3705 = vmatprep.subr.bf16.mxu1 %v4146_v38 }
 0x182   : > { %3706 = vmatpush3.bf16.msra.mxu1 %v4146_v38 }
 0x183   : > { %3723 = vmatprep.subr.bf16.mxu1 %v4771_v39 }
 0x200   : > { %v3601_v40 = vpop.f32.mrb[4].mxu1 }
 0x201   : > { %v3645_v41 = vpop.f32.mrb[4].mxu0  ;;  %v583_v42 = vpop.f32.mrb[5].mxu1 }
 0x202   : > { %v868_v43 = vpop.f32.mrb[5].mxu0  ;;  %v3602_v44 = vpop.f32.mrb[6].mxu1  ;;  %v4148_v42 = vld [vmem:[#allocation10 + $0x8] sm:$0xff]  }
 0x203   : > { %v3646_v45 = vpop.f32.mrb[6].mxu0  ;;  %v585_v46 = vpop.f32.mrb[7].mxu1 }
 0x204   : > { %v870_v2 = vpop.f32.mrb[7].mxu0 }
 0x210   : > { %v3605_v47 = vpop.f32.mrb[8].mxu1 }
 0x211   : > { %v3667_v48 = vpop.f32.mrb[8].mxu0  ;;  %v595_v49 = vpop.f32.mrb[9].mxu1  ;;  %v1284_v47 = vld [vmem:[#allocation3 + $0x31] sm:$0xff] }
 0x212   : > { %v1030_v50 = vpop.f32.mrb[9].mxu0  ;;  %v3606_v51 = vpop.f32.mrb[10].mxu1  ;;  %v1285_v48 = vld [vmem:[#allocation3 + $0x39] sm:$0xff]  ;;  %v1286_v49 = vld [vmem:[#allocation3 + $0x41] sm:$0xff] }
 0x213   : > { %v3668_v52 = vpop.f32.mrb[10].mxu0  ;;  %v597_v53 = vpop.f32.mrb[11].mxu1  ;;  %v1287_v50 = vld [vmem:[#allocation3 + $0x49] sm:$0xff]  ;;  %v4149_v51 = vld [vmem:[#allocation10 + $0x10] sm:$0xff]  }
 0x214   : > { %v1032_v54 = vpop.f32.mrb[11].mxu0  ;;  %v1297_v52 = vpack.c.bf16 %v1285_v48, %v1284_v47  ;;  %v1581_v48 = vld [vmem:[#allocation3 + $0x22] sm:$0xff] }
 0x219   : > { %v3671_v55 = vpop.f32.mrb[12].mxu0 }
 0x21a   : > { %v1042_v56 = vpop.f32.mrb[13].mxu0  ;;  %v1298_v55 = vpack.c.bf16 %v1287_v50, %v1286_v49  ;;  %v1582_v49 = vld [vmem:[#allocation3 + $0x2a] sm:$0xff] }
 0x21b   : > { %v3672_v57 = vpop.f32.mrb[14].mxu0 }
 0x21c   : > { %v1044_v58 = vpop.f32.mrb[15].mxu0 }
 0x21d   : > { %v4150_v58 = vld [vmem:[#allocation10 + $0x18] sm:$0xff]  }
 0x220   : > { %v3609_v59 = vpop.f32.mrb[12].mxu1 }
 0x221   : > { %v3675_v60 = vpop.f32.mrb[16].mxu0  ;;  %v607_v61 = vpop.f32.mrb[13].mxu1 }
 0x222   : > { %v1054_v62 = vpop.f32.mrb[17].mxu0  ;;  %v3610_v63 = vpop.f32.mrb[14].mxu1 }
 0x223   : > { %v3676_v0 = vpop.f32.mrb[18].mxu0  ;;  %v609_v1 = vpop.f32.mrb[15].mxu1  ;;  %v1288_v62 = vld [vmem:[#allocation3 + $0x51] sm:$0xff]  ;;  %v1289_v63 = vld [vmem:[#allocation3 + $0x59] sm:$0xff] }
 0x224   : > { %v1056_v3 = vpop.f32.mrb[19].mxu0  ;;  %v1290_v0 = vld [vmem:[#allocation3 + $0x61] sm:$0xff]  ;;  %v1291_v1 = vld [vmem:[#allocation3 + $0x69] sm:$0xff] }
 0x225   : > { %v4151_v3 = vld [vmem:[#allocation10 + $0x40] sm:$0xff]  }
 0x228   : > { %v3619_v4 = vpop.f32.mrb[0].mxu1 }
 0x229   : > { %v3685_v6 = vpop.f32.mrb[0].mxu0  ;;  %v694_v8 = vpop.f32.mrb[1].mxu1 }
 0x22a   : > { %v3945_v7 = vadd.f32 %v3685_v6, %v3619_v4  ;;  %v1176_v10 = vpop.f32.mrb[1].mxu0  ;;  %v3620_v11 = vpop.f32.mrb[2].mxu1  ;;  %v1299_v4 = vpack.c.bf16 %v1289_v63, %v1288_v62  ;;  %v1587_v62 = vld [vmem:[#allocation3 + $0x52] sm:$0xff]  ;;  %v1588_v63 = vld [vmem:[#allocation3 + $0x5a] sm:$0xff] }
 0x22b   : > { %v3946_v9 = vadd.f32 %v1176_v10, %v694_v8  ;;  %v3686_v13 = vpop.f32.mrb[2].mxu0  ;;  %v697_v16 = vpop.f32.mrb[3].mxu1 }
 0x22c   : > { %v1240_v14 = vadd.f32 %v3945_v7, %v3285_v5  ;;  %v3947_v15 = vadd.f32 %v3686_v13, %v3620_v11  ;;  %v1179_v17 = vpop.f32.mrb[3].mxu0  ;;  %v1293_v11 = vld [vmem:[#allocation3 + $0x79] sm:$0xff] }
 0x22d   : > { %v1238_v12 = vadd.f32 %v3946_v9, %v3285_v5  ;;  %v3948_v18 = vadd.f32 %v1179_v17, %v697_v16  ;;  %v1292_v9 = vld [vmem:[#allocation3 + $0x71] sm:$0xff] }
 0x22e   : > { %1244 = vst.msk [vmem:[#allocation3 + $0x12] sm:$0xff] %vm347_vm2, %v1240_v14  ;;  %v1241_v19 = vadd.f32 %v3947_v15, %v3285_v5  ;;  %v1301_v13 = vpack.c.bf16 %v1293_v11, %v1292_v9 }
 0x22f   : > { %1242 = vst.msk [vmem:[#allocation3 + $0x2] sm:$0xff] %vm347_vm2, %v1238_v12  ;;  %v1239_v20 = vadd.f32 %v3948_v18, %v3285_v5  ;;  %v1300_v5 = vpack.c.bf16 %v1291_v1, %v1290_v0  ;;  %v1589_v0 = vld [vmem:[#allocation3 + $0x62] sm:$0xff]  ;;  %v1590_v1 = vld [vmem:[#allocation3 + $0x6a] sm:$0xff] }
 0x230   : > { %1245 = vst.msk [vmem:[#allocation3 + $0x1a] sm:$0xff] %vm347_vm2, %v1241_v19  ;;  %v3623_v21 = vpop.f32.mrb[16].mxu1 }
 0x231   : > { %1243 = vst.msk [vmem:[#allocation3 + $0xa] sm:$0xff] %vm347_vm2, %v1239_v20  ;;  %v3689_v22 = vpop.f32.mrb[20].mxu0  ;;  %v710_v23 = vpop.f32.mrb[17].mxu1 }
 0x232   : > { %v1192_v24 = vpop.f32.mrb[21].mxu0  ;;  %v3624_v25 = vpop.f32.mrb[18].mxu1  ;;  %v1251_v23 = vld [vmem:[#allocation3 + $0x28] sm:$0xff] }
 0x233   : > { %v3690_v26 = vpop.f32.mrb[22].mxu0  ;;  %v712_v27 = vpop.f32.mrb[19].mxu1  ;;  %v4152_v25 = vld [vmem:[#allocation10 + $0x48] sm:$0xff]  }
 0x234   : > { %v1194_v28 = vpop.f32.mrb[23].mxu0  ;;  %v1252_v27 = vld [vmem:[#allocation3 + $0x30] sm:$0xff] }
 0x235   : > { %v1253_v28 = vld [vmem:[#allocation3 + $0x38] sm:$0xff] }
 0x236   : > { %v1278_v29 = vld [vmem:[#allocation3 + $0x1] sm:$0xff] }
 0x237   : > { %v1281_v30 = vld [vmem:[#allocation3 + $0x19] sm:$0xff]  ;;  %v1282_v34 = vld [vmem:[#allocation3 + $0x21] sm:$0xff] }
 0x238   : > { %v1279_v32 = vld [vmem:[#allocation3 + $0x9] sm:$0xff]  ;;  %v1280_v33 = vld [vmem:[#allocation3 + $0x11] sm:$0xff]  ;;  %v3627_v35 = vpop.f32.mrb[20].mxu1  ;;  %v1296_v45 = vpack.c.bf16 %v1283_v31, %v1282_v34  ;;  %v1246_v17 = vld [vmem:[#allocation3] sm:$0xff] }
 0x239   : > { %v3693_v36 = vpop.f32.mrb[24].mxu0  ;;  %v1294_v37 = vpack.c.bf16 %v1279_v32, %v1278_v29  ;;  %v1295_v38 = vpack.c.bf16 %v1281_v30, %v1280_v33  ;;  %v722_v40 = vpop.f32.mrb[21].mxu1  ;;  %v1247_v14 = vld [vmem:[#allocation3 + $0x8] sm:$0xff]  ;;  %v1248_v20 = vld [vmem:[#allocation3 + $0x10] sm:$0xff]  ;;  %v1249_v21 = vld [vmem:[#allocation3 + $0x18] sm:$0xff]  ;;  %v1265_v32 = vpack.c.bf16 %v1253_v28, %v1252_v27 }
 0x23a   : > { %v1204_v41 = vpop.f32.mrb[25].mxu0  ;;  %v3628_v43 = vpop.f32.mrb[22].mxu1  ;;  %v1262_v18 = vpack.c.bf16 %v1247_v14, %v1246_v17  ;;  %v1250_v22 = vld [vmem:[#allocation3 + $0x20] sm:$0xff]  ;;  %v1263_v24 = vpack.c.bf16 %v1249_v21, %v1248_v20  ;;  %v1255_v30 = vld [vmem:[#allocation3 + $0x48] sm:$0xff]  ;;  %v4153_v31 = vld [vmem:[#allocation10 + $0x50] sm:$0xff]  }
 0x23b   : > { %v3694_v44 = vpop.f32.mrb[26].mxu0  ;;  %3707 = vmatprep.mubr.msk.bf16.mxu1 %vm347_vm2, %v1294_v37  ;;  %v724_v46 = vpop.f32.mrb[23].mxu1  ;;  %v1264_v26 = vpack.c.bf16 %v1251_v23, %v1250_v22  ;;  %v1254_v29 = vld [vmem:[#allocation3 + $0x40] sm:$0xff]  ;;  %v1256_v35 = vld [vmem:[#allocation3 + $0x50] sm:$0xff]  ;;  %v1257_v36 = vld [vmem:[#allocation3 + $0x58] sm:$0xff] }
 0x23c   : > { %v1206_v2 = vpop.f32.mrb[27].mxu0  ;;  %3708 = vmatmul.mubr.msk.bf16.vlgmr.msra.gmra.mrb[36].mxu1 %vm347_vm2, %v1295_v38  ;;  %v1266_v33 = vpack.c.bf16 %v1255_v30, %v1254_v29  ;;  %v4154_v34 = vld [vmem:[#allocation10 + $0x58] sm:$0xff]   ;;  %v1259_v38 = vld [vmem:[#allocation3 + $0x68] sm:$0xff]  ;;  %v1267_v41 = vpack.c.bf16 %v1257_v36, %v1256_v35  ;;  %v1260_v43 = vld [vmem:[#allocation3 + $0x70] sm:$0xff] }
 0x23d   : > { %3724 = vmatpush3.bf16.msra.mxu1 %v4771_v39  ;;  %3711 = vmatprep.mubr.msk.bf16.mxu1 %vm347_vm2, %v1296_v45  ;;  %v1258_v37 = vld [vmem:[#allocation3 + $0x60] sm:$0xff]  ;;  %v4155_v40 = vld [vmem:[#allocation10 + $0x60] sm:$0xff]   ;;  %v1261_v44 = vld [vmem:[#allocation3 + $0x78] sm:$0xff] }
 0x23e   : > { %3725 = vmatprep.subr.bf16.mxu1 %v4148_v42  ;;  %v1269_v45 = vpack.c.bf16 %v1261_v44, %v1260_v43  ;;  %v1578_v46 = vld [vmem:[#allocation3 + $0xa] sm:$0xff]  ;;  %v1577_v2 = vld [vmem:[#allocation3 + $0x2] sm:$0xff]  ;;  %v1580_v50 = vld [vmem:[#allocation3 + $0x1a] sm:$0xff] }
 0x23f   : > { %v1593_v47 = vpack.c.bf16 %v1578_v46, %v1577_v2  ;;  %v1748_v9 = vld [vmem:[#allocation3 + $0xb] sm:$0xff]  ;;  %v1754_v20 = vld [vmem:[#allocation3 + $0x3b] sm:$0xff]  ;;  %v1755_v21 = vld [vmem:[#allocation3 + $0x43] sm:$0xff] }
 0x240   : > { %v3631_v53 = vpop.f32.mrb[24].mxu1  ;;  %v1752_v14 = vld [vmem:[#allocation3 + $0x2b] sm:$0xff]  ;;  %v4161_v23 = vld [vmem:[#allocation10 + $0x90] sm:$0xff]   ;;  %v1759_v29 = vld [vmem:[#allocation3 + $0x63] sm:$0xff] }
 0x241   : > { %v3697_v54 = vpop.f32.mrb[28].mxu0  ;;  %3726 = vmatpush3.bf16.msra.mxu1 %v4148_v42  ;;  %v734_v56 = vpop.f32.mrb[25].mxu1  ;;  %v1268_v42 = vpack.c.bf16 %v1259_v38, %v1258_v37  ;;  %v1756_v22 = vld [vmem:[#allocation3 + $0x4b] sm:$0xff]  ;;  %v1757_v27 = vld [vmem:[#allocation3 + $0x53] sm:$0xff]  ;;  %v1758_v28 = vld [vmem:[#allocation3 + $0x5b] sm:$0xff] }
 0x242   : > { %v1216_v57 = vpop.f32.mrb[29].mxu0  ;;  %3727 = vmatprep.subr.bf16.mxu1 %v4149_v51  ;;  %v3632_v59 = vpop.f32.mrb[26].mxu1  ;;  %v4156_v54 = vld [vmem:[#allocation10 + $0x68] sm:$0xff]   ;;  %v1584_v56 = vld [vmem:[#allocation3 + $0x3a] sm:$0xff]  ;;  %v1917_v36 = vld [vmem:[#allocation3 + $0x4] sm:$0xff] }
 0x243   : > { %v3698_v60 = vpop.f32.mrb[30].mxu0  ;;  %v736_v39 = vpop.f32.mrb[27].mxu1  ;;  %v1585_v57 = vld [vmem:[#allocation3 + $0x42] sm:$0xff]  ;;  %v4157_v59 = vld [vmem:[#allocation10 + $0x70] sm:$0xff]   ;;  %v1760_v30 = vld [vmem:[#allocation3 + $0x6b] sm:$0xff] }
 0x244   : > { %v1218_v61 = vpop.f32.mrb[31].mxu0  ;;  %3712 = vmatmul.mubr.msk.bf16.gmra.mrb[40].mxu1 %vm347_vm2, %v1297_v52  ;;  %v1595_v52 = vpack.c.bf16 %v1582_v49, %v1581_v48  ;;  %v1918_v37 = vld [vmem:[#allocation3 + $0xc] sm:$0xff]  ;;  %v4166_v46 = vld [vmem:[#allocation11 + $0x38] sm:$0xff]  }
 0x245   : > { %3715 = vmatprep.mubr.msk.bf16.mxu1 %vm347_vm2, %v1298_v55  ;;  %3728 = vmatpush3.bf16.msra.mxu1 %v4149_v51  ;;  %v1579_v51 = vld [vmem:[#allocation3 + $0x12] sm:$0xff]  ;;  %v4158_v61 = vld [vmem:[#allocation10 + $0x78] sm:$0xff]   ;;  %v1933_v38 = vpack.c.bf16 %v1918_v37, %v1917_v36  ;;  %v4163_v43 = vld [vmem:[#allocation11 + $0x20] sm:$0xff]  }
 0x246   : > { %3729 = vmatprep.subr.bf16.mxu1 %v4150_v58  ;;  %v1594_v53 = vpack.c.bf16 %v1580_v50, %v1579_v51  ;;  %v1583_v55 = vld [vmem:[#allocation3 + $0x32] sm:$0xff]  ;;  %3819 = vmatprep.subr.bf16.mxu0 %v4163_v43  ;;  %v4816_v51 = vld [vmem:[#allocation11] sm:$0xff]  }
 0x247   : > { %v1596_v60 = vpack.c.bf16 %v1584_v56, %v1583_v55  ;;  %3820 = vmatpush3.bf16.msra.mxu0 %v4163_v43  ;;  %v4164_v44 = vld [vmem:[#allocation11 + $0x28] sm:$0xff]  }
 0x248   : > { %v3649_v6 = vpop.f32.mrb[28].mxu1  ;;  %3821 = vmatprep.subr.bf16.mxu0 %v4164_v44  ;;  %v2139_v43 = vld [vmem:[#allocation4 + $0x29] sm:$0xff] }
 0x249   : > { %3730 = vmatpush3.bf16.msra.mxu1 %v4150_v58  ;;  %v880_v7 = vpop.f32.mrb[29].mxu1  ;;  %v1586_v58 = vld [vmem:[#allocation3 + $0x4a] sm:$0xff]  ;;  %v1599_v6 = vpack.c.bf16 %v1590_v1, %v1589_v0 }
 0x24a   : > { %3747 = vmatprep.subr.bf16.mxu1 %v4151_v3  ;;  %v3650_v8 = vpop.f32.mrb[30].mxu1  ;;  %v1597_v39 = vpack.c.bf16 %v1586_v58, %v1585_v57  ;;  %v1592_v7 = vld [vmem:[#allocation3 + $0x7a] sm:$0xff] }
 0x24b   : > { %v882_v10 = vpop.f32.mrb[31].mxu1  ;;  %3822 = vmatpush3.bf16.msra.mxu0 %v4164_v44 }
 0x24c   : > { %3716 = vmatmul.mubr.msk.bf16.gmra.mrb[44].mxu1 %vm347_vm2, %v1299_v4  ;;  %v1598_v4 = vpack.c.bf16 %v1588_v63, %v1587_v62  ;;  %v1747_v10 = vld [vmem:[#allocation3 + $0x3] sm:$0xff] }
 0x24d   : > { %3719 = vmatprep.mubr.msk.bf16.mxu1 %vm347_vm2, %v1300_v5  ;;  %v1591_v5 = vld [vmem:[#allocation3 + $0x72] sm:$0xff]  ;;  %v1763_v11 = vpack.c.bf16 %v1748_v9, %v1747_v10 }
 0x24e   : > { %v1600_v8 = vpack.c.bf16 %v1592_v7, %v1591_v5 }
 0x250   : > { %v3653_v15 = vpop.f32.mrb[32].mxu1 }
 0x251   : > { %v892_v16 = vpop.f32.mrb[33].mxu1  ;;  %v1749_v15 = vld [vmem:[#allocation3 + $0x13] sm:$0xff] }
 0x252   : > { %v3654_v12 = vpop.f32.mrb[34].mxu1  ;;  %v1750_v16 = vld [vmem:[#allocation3 + $0x1b] sm:$0xff] }
 0x253   : > { %v894_v19 = vpop.f32.mrb[35].mxu1  ;;  %v1764_v12 = vpack.c.bf16 %v1750_v16, %v1749_v15 }
 0x254   : > { %3720 = vmatmul.mubr.msk.bf16.gmra.mrb[48].mxu1 %vm347_vm2, %v1301_v13  ;;  %v1751_v13 = vld [vmem:[#allocation3 + $0x23] sm:$0xff]  ;;  %v1753_v19 = vld [vmem:[#allocation3 + $0x33] sm:$0xff] }
 0x255   : > { %3731 = vmatprep.mubr.msk.bf16.mxu1 %vm347_vm2, %v1262_v18  ;;  %v1765_v17 = vpack.c.bf16 %v1752_v14, %v1751_v13  ;;  %v4160_v18 = vld [vmem:[#allocation10 + $0x88] sm:$0xff]  }
 0x25c   : > { %3732 = vmatmul.mubr.msk.bf16.vlgmr.msra.gmra.mrb[36].mxu1 %vm347_vm2, %v1263_v24  ;;  %v1766_v24 = vpack.c.bf16 %v1754_v20, %v1753_v19 }
 0x25d   : > { %3748 = vmatpush3.bf16.msra.mxu1 %v4151_v3  ;;  %3735 = vmatprep.mubr.msk.bf16.mxu1 %vm347_vm2, %v1264_v26  ;;  %v4159_v3 = vld [vmem:[#allocation10 + $0x80] sm:$0xff]   ;;  %v4162_v26 = vld [vmem:[#allocation10 + $0x98] sm:$0xff]  }
 0x25e   : > { %3749 = vmatprep.subr.bf16.mxu1 %v4152_v25 }
 0x261   : > { %3750 = vmatpush3.bf16.msra.mxu1 %v4152_v25  ;;  %v1767_v25 = vpack.c.bf16 %v1756_v22, %v1755_v21 }
 0x262   : > { %3751 = vmatprep.subr.bf16.mxu1 %v4153_v31 }
 0x264   : > { %3736 = vmatmul.mubr.msk.bf16.gmra.mrb[52].mxu1 %vm347_vm2, %v1265_v32  ;;  %v1769_v32 = vpack.c.bf16 %v1760_v30, %v1759_v29 }
 0x265   : > { %3739 = vmatprep.mubr.msk.bf16.mxu1 %vm347_vm2, %v1266_v33  ;;  %3752 = vmatpush3.bf16.msra.mxu1 %v4153_v31  ;;  %v1768_v31 = vpack.c.bf16 %v1758_v28, %v1757_v27  ;;  %v1761_v33 = vld [vmem:[#allocation3 + $0x73] sm:$0xff] }
 0x266   : > { %3753 = vmatprep.subr.bf16.mxu1 %v4154_v34 }
 0x269   : > { %3754 = vmatpush3.bf16.msra.mxu1 %v4154_v34  ;;  %v1762_v34 = vld [vmem:[#allocation3 + $0x7b] sm:$0xff] }
 0x26a   : > { %3771 = vmatprep.subr.bf16.mxu1 %v4155_v40  ;;  %v1770_v35 = vpack.c.bf16 %v1762_v34, %v1761_v33 }
 0x26c   : > { %3740 = vmatmul.mubr.msk.bf16.gmra.mrb[56].mxu1 %vm347_vm2, %v1267_v41  ;;  %v1920_v41 = vld [vmem:[#allocation3 + $0x1c] sm:$0xff] }
 0x26d   : > { %3743 = vmatprep.mubr.msk.bf16.mxu1 %vm347_vm2, %v1268_v42 }
 0x274   : > { %3744 = vmatmul.mubr.msk.bf16.gmra.mrb[60].mxu1 %vm347_vm2, %v1269_v45  ;;  %v4165_v45 = vld [vmem:[#allocation11 + $0x30] sm:$0xff]  }
 0x275   : > { %3755 = vmatprep.mubr.msk.bf16.mxu1 %vm347_vm2, %v1593_v47  ;;  %3823 = vmatprep.subr.bf16.mxu0 %v4165_v45 }
 0x276   : > { %3824 = vmatpush3.bf16.msra.mxu0 %v4165_v45 }
 0x277   : > { %3825 = vmatprep.subr.bf16.mxu0 %v4166_v46 }
 0x27a   : > { %3826 = vmatpush3.bf16.msra.mxu0 %v4166_v46 }
 0x27b   : > { %3843 = vmatprep.subr.bf16.mxu0 %v4816_v51 }
 0x27c   : > { %3756 = vmatmul.mubr.msk.bf16.vlgmr.msra.gmra.mrb[36].mxu1 %vm347_vm2, %v1594_v53 }
 0x27d   : > { %3772 = vmatpush3.bf16.msra.mxu1 %v4155_v40  ;;  %3759 = vmatprep.mubr.msk.bf16.mxu1 %vm347_vm2, %v1595_v52  ;;  %v1919_v40 = vld [vmem:[#allocation3 + $0x14] sm:$0xff] }
 0x27e   : > { %3773 = vmatprep.subr.bf16.mxu1 %v4156_v54  ;;  %v1934_v42 = vpack.c.bf16 %v1920_v41, %v1919_v40 }
 0x281   : > { %3774 = vmatpush3.bf16.msra.mxu1 %v4156_v54 }
 0x282   : > { %3775 = vmatprep.subr.bf16.mxu1 %v4157_v59 }
 0x284   : > { %3760 = vmatmul.mubr.msk.bf16.gmra.mrb[64].mxu1 %vm347_vm2, %v1596_v60 }
 0x285   : > { %3763 = vmatprep.mubr.msk.bf16.mxu1 %vm347_vm2, %v1597_v39  ;;  %3776 = vmatpush3.bf16.msra.mxu1 %v4157_v59 }
 0x286   : > { %3777 = vmatprep.subr.bf16.mxu1 %v4158_v61 }
 0x289   : > { %3778 = vmatpush3.bf16.msra.mxu1 %v4158_v61 }
 0x28a   : > { %3795 = vmatprep.subr.bf16.mxu1 %v4159_v3 }
 0x28c   : > { %3764 = vmatmul.mubr.msk.bf16.gmra.mrb[68].mxu1 %vm347_vm2, %v1598_v4 }
 0x28d   : > { %3767 = vmatprep.mubr.msk.bf16.mxu1 %vm347_vm2, %v1599_v6 }
 0x294   : > { %3768 = vmatmul.mubr.msk.bf16.gmra.mrb[72].mxu1 %vm347_vm2, %v1600_v8 }
 0x295   : > { %3779 = vmatprep.mubr.msk.bf16.mxu1 %vm347_vm2, %v1763_v11 }
 0x29c   : > { %3780 = vmatmul.mubr.msk.bf16.vlgmr.msra.gmra.mrb[36].mxu1 %vm347_vm2, %v1764_v12 }
 0x29d   : > { %3796 = vmatpush3.bf16.msra.mxu1 %v4159_v3  ;;  %3783 = vmatprep.mubr.msk.bf16.mxu1 %vm347_vm2, %v1765_v17 }
 0x29e   : > { %3797 = vmatprep.subr.bf16.mxu1 %v4160_v18 }
 0x2a1   : > { %3798 = vmatpush3.bf16.msra.mxu1 %v4160_v18 }
 0x2a2   : > { %3799 = vmatprep.subr.bf16.mxu1 %v4161_v23 }
 0x2a4   : > { %3784 = vmatmul.mubr.msk.bf16.gmra.mrb[76].mxu1 %vm347_vm2, %v1766_v24 }
 0x2a5   : > { %3787 = vmatprep.mubr.msk.bf16.mxu1 %vm347_vm2, %v1767_v25  ;;  %3800 = vmatpush3.bf16.msra.mxu1 %v4161_v23 }
 0x2a6   : > { %3801 = vmatprep.subr.bf16.mxu1 %v4162_v26 }
 0x2a9   : > { %3802 = vmatpush3.bf16.msra.mxu1 %v4162_v26 }
 0x2ac   : > { %3788 = vmatmul.mubr.msk.bf16.gmra.mrb[80].mxu1 %vm347_vm2, %v1768_v31  ;;  %v3346_v31 = vld [vmem:[%s4931_s4] ss:$0 sm:$0xff] }
 0x2ad   : > { %3791 = vmatprep.mubr.msk.bf16.mxu1 %vm347_vm2, %v1769_v32 }
 0x2b4   : > { %3792 = vmatmul.mubr.msk.bf16.gmra.mrb[84].mxu1 %vm347_vm2, %v1770_v35 }
 0x2b5   : > { %3803 = vmatprep.mubr.msk.bf16.mxu1 %vm347_vm2, %v1933_v38 }
 0x2bc   : > { %3804 = vmatmul.mubr.msk.bf16.vlgmr.msra.gmra.mrb[36].mxu1 %vm347_vm2, %v1934_v42 }
 0x317   : > { %v3713_v2 = vpop.f32.mrb[40].mxu1 }
 0x318   : > { %v1409_v47 = vpop.f32.mrb[41].mxu1 }
 0x319   : > { %v3714_v48 = vpop.f32.mrb[42].mxu1 }
 0x31a   : > { %v1411_v49 = vpop.f32.mrb[43].mxu1  ;;  %v4168_v48 = vld [vmem:[#allocation11 + $0x8] sm:$0xff]  }
 0x31f   : > { %v3717_v50 = vpop.f32.mrb[44].mxu1 }
 0x320   : > { %v1421_v52 = vpop.f32.mrb[45].mxu1  ;;  %v2140_v50 = vld [vmem:[#allocation4 + $0x31] sm:$0xff] }
 0x321   : > { %v3718_v53 = vpop.f32.mrb[46].mxu1  ;;  %v2141_v52 = vld [vmem:[#allocation4 + $0x39] sm:$0xff] }
 0x322   : > { %v1423_v54 = vpop.f32.mrb[47].mxu1  ;;  %v2142_v53 = vld [vmem:[#allocation4 + $0x41] sm:$0xff] }
 0x323   : > { %v2143_v54 = vld [vmem:[#allocation4 + $0x49] sm:$0xff] }
 0x327   : > { %v3721_v55 = vpop.f32.mrb[48].mxu1 }
 0x328   : > { %v1433_v56 = vpop.f32.mrb[49].mxu1  ;;  %v4169_v55 = vld [vmem:[#allocation11 + $0x10] sm:$0xff]  }
 0x329   : > { %v3722_v57 = vpop.f32.mrb[50].mxu1  ;;  %v2153_v56 = vpack.c.bf16 %v2141_v52, %v2140_v50 }
 0x32a   : > { %v1435_v58 = vpop.f32.mrb[51].mxu1  ;;  %v2154_v57 = vpack.c.bf16 %v2143_v54, %v2142_v53  ;;  %v2461_v54 = vld [vmem:[#allocation4 + $0x22] sm:$0xff] }
 0x32b   : > { %v4170_v58 = vld [vmem:[#allocation11 + $0x18] sm:$0xff]  }
 0x337   : > { %v3737_v59 = vpop.f32.mrb[52].mxu1 }
 0x338   : > { %v1542_v60 = vpop.f32.mrb[53].mxu1  ;;  %v2144_v59 = vld [vmem:[#allocation4 + $0x51] sm:$0xff] }
 0x339   : > { %v3738_v39 = vpop.f32.mrb[54].mxu1  ;;  %v2145_v60 = vld [vmem:[#allocation4 + $0x59] sm:$0xff] }
 0x33a   : > { %v1544_v61 = vpop.f32.mrb[55].mxu1  ;;  %v2147_v39 = vld [vmem:[#allocation4 + $0x69] sm:$0xff] }
 0x33b   : > { %v4171_v61 = vld [vmem:[#allocation11 + $0x40] sm:$0xff]  }
 0x33f   : > { %v3741_v62 = vpop.f32.mrb[56].mxu1 }
 0x340   : > { %v1554_v63 = vpop.f32.mrb[57].mxu1  ;;  %v2155_v62 = vpack.c.bf16 %v2145_v60, %v2144_v59  ;;  %v4176_v60 = vld [vmem:[#allocation11 + $0x68] sm:$0xff]  }
 0x341   : > { %v3742_v0 = vpop.f32.mrb[58].mxu1 }
 0x342   : > { %v1556_v1 = vpop.f32.mrb[59].mxu1  ;;  %v2148_v0 = vld [vmem:[#allocation4 + $0x71] sm:$0xff] }
 0x343   : > { %v2149_v1 = vld [vmem:[#allocation4 + $0x79] sm:$0xff] }
 0x347   : > { %v3745_v3 = vpop.f32.mrb[60].mxu1 }
 0x348   : > { %v1566_v4 = vpop.f32.mrb[61].mxu1  ;;  %v2157_v3 = vpack.c.bf16 %v2149_v1, %v2148_v0 }
 0x349   : > { %v3746_v6 = vpop.f32.mrb[62].mxu1 }
 0x34a   : > { %v1568_v5 = vpop.f32.mrb[63].mxu1 }
 0x357   : > { %v3761_v7 = vpop.f32.mrb[64].mxu1 }
 0x358   : > { %v1708_v8 = vpop.f32.mrb[65].mxu1  ;;  %v1921_v7 = vld [vmem:[#allocation3 + $0x24] sm:$0xff] }
 0x359   : > { %v3762_v10 = vpop.f32.mrb[66].mxu1  ;;  %v1922_v8 = vld [vmem:[#allocation3 + $0x2c] sm:$0xff] }
 0x35a   : > { %v1710_v9 = vpop.f32.mrb[67].mxu1  ;;  %v1923_v10 = vld [vmem:[#allocation3 + $0x34] sm:$0xff] }
 0x35b   : > { %v1935_v9 = vpack.c.bf16 %v1922_v8, %v1921_v7  ;;  %v2470_v7 = vld [vmem:[#allocation4 + $0x6a] sm:$0xff]  ;;  %v4179_v8 = vld [vmem:[#allocation11 + $0x80] sm:$0xff]  }
 0x35d   : > { %3807 = vmatprep.mubr.msk.bf16.mxu1 %vm347_vm2, %v1935_v9 }
 0x35f   : > { %v3765_v11 = vpop.f32.mrb[68].mxu1 }
 0x360   : > { %v1720_v13 = vpop.f32.mrb[69].mxu1  ;;  %v1924_v11 = vld [vmem:[#allocation3 + $0x3c] sm:$0xff] }
 0x361   : > { %v3766_v14 = vpop.f32.mrb[70].mxu1  ;;  %v1925_v13 = vld [vmem:[#allocation3 + $0x44] sm:$0xff] }
 0x362   : > { %v1722_v15 = vpop.f32.mrb[71].mxu1  ;;  %v1926_v14 = vld [vmem:[#allocation3 + $0x4c] sm:$0xff] }
 0x363   : > { %v1936_v15 = vpack.c.bf16 %v1924_v11, %v1923_v10  ;;  %v2471_v11 = vld [vmem:[#allocation4 + $0x72] sm:$0xff] }
 0x365   : > { %3808 = vmatmul.mubr.msk.bf16.gmra.mrb[88].mxu1 %vm347_vm2, %v1936_v15 }
 0x367   : > { %v3769_v16 = vpop.f32.mrb[72].mxu1 }
 0x368   : > { %v1732_v17 = vpop.f32.mrb[73].mxu1  ;;  %v1937_v16 = vpack.c.bf16 %v1926_v14, %v1925_v13  ;;  %v2472_v13 = vld [vmem:[#allocation4 + $0x7a] sm:$0xff] }
 0x369   : > { %v3770_v12 = vpop.f32.mrb[74].mxu1  ;;  %v2480_v14 = vpack.c.bf16 %v2472_v13, %v2471_v11 }
 0x36a   : > { %v1734_v18 = vpop.f32.mrb[75].mxu1  ;;  %3811 = vmatprep.mubr.msk.bf16.mxu1 %vm347_vm2, %v1937_v16 }
 0x377   : > { %v3785_v19 = vpop.f32.mrb[76].mxu1 }
 0x378   : > { %v1878_v20 = vpop.f32.mrb[77].mxu1  ;;  %v2107_v19 = vld [vmem:[#allocation4 + $0x28] sm:$0xff] }
 0x379   : > { %v3786_v21 = vpop.f32.mrb[78].mxu1  ;;  %v1927_v20 = vld [vmem:[#allocation3 + $0x54] sm:$0xff] }
 0x37a   : > { %v1880_v22 = vpop.f32.mrb[79].mxu1  ;;  %v1928_v21 = vld [vmem:[#allocation3 + $0x5c] sm:$0xff] }
 0x37f   : > { %v3789_v23 = vpop.f32.mrb[80].mxu1 }
 0x380   : > { %v1890_v24 = vpop.f32.mrb[81].mxu1  ;;  %v4172_v23 = vld [vmem:[#allocation11 + $0x48] sm:$0xff]  }
 0x381   : > { %v3790_v25 = vpop.f32.mrb[82].mxu1  ;;  %v1929_v24 = vld [vmem:[#allocation3 + $0x64] sm:$0xff] }
 0x382   : > { %v1892_v26 = vpop.f32.mrb[83].mxu1  ;;  %v1930_v25 = vld [vmem:[#allocation3 + $0x6c] sm:$0xff] }
 0x387   : > { %v3793_v27 = vpop.f32.mrb[84].mxu1 }
 0x388   : > { %v1902_v28 = vpop.f32.mrb[85].mxu1  ;;  %v1938_v27 = vpack.c.bf16 %v1928_v21, %v1927_v20 }
 0x389   : > { %v3794_v29 = vpop.f32.mrb[86].mxu1  ;;  %v2108_v28 = vld [vmem:[#allocation4 + $0x30] sm:$0xff] }
 0x38a   : > { %v1904_v30 = vpop.f32.mrb[87].mxu1  ;;  %v2109_v29 = vld [vmem:[#allocation4 + $0x38] sm:$0xff]  ;;  %3812 = vmatmul.mubr.msk.bf16.gmra.mrb[92].mxu1 %vm347_vm2, %v1938_v27  ;;  %v2660_v27 = vld [vmem:[#allocation4 + $0x4b] sm:$0xff] }
 0x38b   : > { %v1939_v30 = vpack.c.bf16 %v1930_v25, %v1929_v24  ;;  %v2657_v24 = vld [vmem:[#allocation4 + $0x33] sm:$0xff]  ;;  %v2658_v25 = vld [vmem:[#allocation4 + $0x3b] sm:$0xff] }
 0x38d   : > { %3815 = vmatprep.mubr.msk.bf16.mxu1 %vm347_vm2, %v1939_v30 }
 0x38f   : > { %v3805_v32 = vpop.f32.mrb[36].mxu1 }
 0x390   : > { %v2096_v33 = vadd.f32 %v3805_v32, %v3346_v31  ;;  %v2032_v34 = vpop.f32.mrb[37].mxu1  ;;  %v2111_v32 = vld [vmem:[#allocation4 + $0x48] sm:$0xff] }
 0x391   : > { %v2094_v35 = vadd.f32 %v3346_v31, %v2032_v34  ;;  %v3806_v36 = vpop.f32.mrb[38].mxu1  ;;  %v2121_v34 = vpack.c.bf16 %v2109_v29, %v2108_v28  ;;  %v4181_v28 = vld [vmem:[#allocation11 + $0x90] sm:$0xff]   ;;  %v2670_v29 = vpack.c.bf16 %v2658_v25, %v2657_v24 }
 0x392   : > { %2100 = vst.msk [vmem:[#allocation4 + $0x12] sm:$0xff] %vm347_vm2, %v2096_v33  ;;  %v2097_v37 = vadd.f32 %v3806_v36, %v3346_v31  ;;  %v2035_v38 = vpop.f32.mrb[39].mxu1  ;;  %v4173_v33 = vld [vmem:[#allocation11 + $0x50] sm:$0xff]  }
 0x393   : > { %2098 = vst.msk [vmem:[#allocation4 + $0x2] sm:$0xff] %vm347_vm2, %v2094_v35  ;;  %v2095_v40 = vadd.f32 %v3346_v31, %v2035_v38  ;;  %v2110_v31 = vld [vmem:[#allocation4 + $0x40] sm:$0xff]  ;;  %v1931_v36 = vld [vmem:[#allocation3 + $0x74] sm:$0xff]  ;;  %v4174_v38 = vld [vmem:[#allocation11 + $0x58] sm:$0xff]  }
 0x394   : > { %2101 = vst.msk [vmem:[#allocation4 + $0x1a] sm:$0xff] %vm347_vm2, %v2097_v37  ;;  %v2122_v35 = vpack.c.bf16 %v2111_v32, %v2110_v31  ;;  %v1932_v37 = vld [vmem:[#allocation3 + $0x7c] sm:$0xff] }
 0x395   : > { %2099 = vst.msk [vmem:[#allocation4 + $0xa] sm:$0xff] %vm347_vm2, %v2095_v40  ;;  %v1940_v40 = vpack.c.bf16 %v1932_v37, %v1931_v36  ;;  %v4182_v31 = vld [vmem:[#allocation11 + $0x98] sm:$0xff]  }
 0x396   : > { %v2661_v32 = vld [vmem:[#allocation4 + $0x53] sm:$0xff] }
 0x397   : > { %3816 = vmatmul.mubr.msk.bf16.gmra.mrb[96].mxu1 %vm347_vm2, %v1940_v40  ;;  %v2666_v40 = vld [vmem:[#allocation4 + $0x7b] sm:$0xff] }
 0x39a   : > { %v2134_v41 = vld [vmem:[#allocation4 + $0x1] sm:$0xff] }
 0x39b   : > { %v2137_v42 = vld [vmem:[#allocation4 + $0x19] sm:$0xff]  ;;  %v2138_v46 = vld [vmem:[#allocation4 + $0x21] sm:$0xff] }
 0x39c   : > { %v2135_v44 = vld [vmem:[#allocation4 + $0x9] sm:$0xff]  ;;  %v2136_v45 = vld [vmem:[#allocation4 + $0x11] sm:$0xff]  ;;  %v2152_v49 = vpack.c.bf16 %v2139_v43, %v2138_v46  ;;  %v2102_v6 = vld [vmem:[#allocation4] sm:$0xff] }
 0x39d   : > { %v2150_v2 = vpack.c.bf16 %v2135_v44, %v2134_v41  ;;  %v2151_v47 = vpack.c.bf16 %v2137_v42, %v2136_v45  ;;  %v2103_v4 = vld [vmem:[#allocation4 + $0x8] sm:$0xff]  ;;  %v2104_v17 = vld [vmem:[#allocation4 + $0x10] sm:$0xff]  ;;  %v2105_v12 = vld [vmem:[#allocation4 + $0x18] sm:$0xff] }
 0x39e   : > { %v2118_v5 = vpack.c.bf16 %v2103_v4, %v2102_v6  ;;  %v2106_v18 = vld [vmem:[#allocation4 + $0x20] sm:$0xff]  ;;  %v2119_v22 = vpack.c.bf16 %v2105_v12, %v2104_v17  ;;  %v2112_v41 = vld [vmem:[#allocation4 + $0x50] sm:$0xff]  ;;  %v2113_v42 = vld [vmem:[#allocation4 + $0x58] sm:$0xff] }
 0x39f   : > { %3827 = vmatprep.mubr.msk.bf16.mxu0 %vm347_vm2, %v2150_v2  ;;  %v2120_v26 = vpack.c.bf16 %v2107_v19, %v2106_v18  ;;  %v2114_v43 = vld [vmem:[#allocation4 + $0x60] sm:$0xff]  ;;  %v2115_v44 = vld [vmem:[#allocation4 + $0x68] sm:$0xff]  ;;  %v2123_v46 = vpack.c.bf16 %v2113_v42, %v2112_v41  ;;  %v2467_v4 = vld [vmem:[#allocation4 + $0x52] sm:$0xff] }
 0x3a0   : > { %3828 = vmatmul.mubr.msk.bf16.vlgmr.msra.gmra.mrb[32].mxu0 %vm347_vm2, %v2151_v47  ;;  %v4175_v45 = vld [vmem:[#allocation11 + $0x60] sm:$0xff]   ;;  %v2124_v2 = vpack.c.bf16 %v2115_v44, %v2114_v43  ;;  %v2116_v47 = vld [vmem:[#allocation4 + $0x70] sm:$0xff] }
 0x3a1   : > { %3844 = vmatpush3.bf16.msra.mxu0 %v4816_v51  ;;  %3831 = vmatprep.mubr.msk.bf16.mxu0 %vm347_vm2, %v2152_v49  ;;  %v2146_v51 = vld [vmem:[#allocation4 + $0x61] sm:$0xff]  ;;  %v2458_v50 = vld [vmem:[#allocation4 + $0xa] sm:$0xff]  ;;  %v2653_v19 = vld [vmem:[#allocation4 + $0x13] sm:$0xff] }
 0x3a2   : > { %3845 = vmatprep.subr.bf16.mxu0 %v4168_v48  ;;  %v2156_v63 = vpack.c.bf16 %v2147_v39, %v2146_v51  ;;  %v2457_v52 = vld [vmem:[#allocation4 + $0x2] sm:$0xff]  ;;  %v2463_v51 = vld [vmem:[#allocation4 + $0x32] sm:$0xff]  ;;  %v2464_v39 = vld [vmem:[#allocation4 + $0x3a] sm:$0xff] }
 0x3a3   : > { %v2473_v53 = vpack.c.bf16 %v2458_v50, %v2457_v52  ;;  %v2476_v0 = vpack.c.bf16 %v2464_v39, %v2463_v51  ;;  %v2468_v6 = vld [vmem:[#allocation4 + $0x5a] sm:$0xff]  ;;  %v2651_v15 = vld [vmem:[#allocation4 + $0x3] sm:$0xff]  ;;  %v2652_v16 = vld [vmem:[#allocation4 + $0xb] sm:$0xff] }
 0x3a4   : > { %v2478_v10 = vpack.c.bf16 %v2468_v6, %v2467_v4  ;;  %v2667_v17 = vpack.c.bf16 %v2652_v16, %v2651_v15  ;;  %v2655_v12 = vld [vmem:[#allocation4 + $0x23] sm:$0xff]  ;;  %v2656_v18 = vld [vmem:[#allocation4 + $0x2b] sm:$0xff]  ;;  %v2654_v20 = vld [vmem:[#allocation4 + $0x1b] sm:$0xff] }
 0x3a5   : > { %3846 = vmatpush3.bf16.msra.mxu0 %v4168_v48  ;;  %v2117_v48 = vld [vmem:[#allocation4 + $0x78] sm:$0xff]  ;;  %v2669_v21 = vpack.c.bf16 %v2656_v18, %v2655_v12  ;;  %v2845_v42 = vld [vmem:[#allocation4 + $0x4] sm:$0xff]  ;;  %v2846_v43 = vld [vmem:[#allocation4 + $0xc] sm:$0xff] }
 0x3a6   : > { %3847 = vmatprep.subr.bf16.mxu0 %v4169_v55  ;;  %v2125_v49 = vpack.c.bf16 %v2117_v48, %v2116_v47  ;;  %v2861_v44 = vpack.c.bf16 %v2846_v43, %v2845_v42  ;;  %v2848_v47 = vld [vmem:[#allocation4 + $0x1c] sm:$0xff]  ;;  %v2851_v50 = vld [vmem:[#allocation4 + $0x34] sm:$0xff] }
 0x3a7   : > { %v2852_v52 = vld [vmem:[#allocation4 + $0x3c] sm:$0xff] }
 0x3a8   : > { %3832 = vmatmul.mubr.msk.bf16.gmra.mrb[36].mxu0 %vm347_vm2, %v2153_v56  ;;  %v2460_v56 = vld [vmem:[#allocation4 + $0x1a] sm:$0xff] }
 0x3a9   : > { %3835 = vmatprep.mubr.msk.bf16.mxu0 %vm347_vm2, %v2154_v57  ;;  %3848 = vmatpush3.bf16.msra.mxu0 %v4169_v55  ;;  %v2462_v55 = vld [vmem:[#allocation4 + $0x2a] sm:$0xff]  ;;  %v2459_v57 = vld [vmem:[#allocation4 + $0x12] sm:$0xff] }
 0x3aa   : > { %3849 = vmatprep.subr.bf16.mxu0 %v4170_v58  ;;  %v2474_v59 = vpack.c.bf16 %v2460_v56, %v2459_v57  ;;  %v2855_v57 = vld [vmem:[#allocation4 + $0x54] sm:$0xff] }
 0x3ad   : > { %3850 = vmatpush3.bf16.msra.mxu0 %v4170_v58  ;;  %v2475_v58 = vpack.c.bf16 %v2462_v55, %v2461_v54  ;;  %v2854_v54 = vld [vmem:[#allocation4 + $0x4c] sm:$0xff]  ;;  %v2864_v55 = vpack.c.bf16 %v2852_v52, %v2851_v50 }
 0x3ae   : > { %3867 = vmatprep.subr.bf16.mxu0 %v4171_v61 }
 0x3b0   : > { %3836 = vmatmul.mubr.msk.bf16.gmra.mrb[40].mxu0 %vm347_vm2, %v2155_v62  ;;  %v2466_v62 = vld [vmem:[#allocation4 + $0x4a] sm:$0xff] }
 0x3b1   : > { %3839 = vmatprep.mubr.msk.bf16.mxu0 %vm347_vm2, %v2156_v63  ;;  %v4177_v63 = vld [vmem:[#allocation11 + $0x70] sm:$0xff]  }
 0x3b8   : > { %3840 = vmatmul.mubr.msk.bf16.gmra.mrb[44].mxu0 %vm347_vm2, %v2157_v3  ;;  %v4178_v3 = vld [vmem:[#allocation11 + $0x78] sm:$0xff]  }
 0x3b9   : > { %3851 = vmatprep.mubr.msk.bf16.mxu0 %vm347_vm2, %v2118_v5  ;;  %v2469_v5 = vld [vmem:[#allocation4 + $0x62] sm:$0xff] }
 0x3ba   : > { %v2479_v9 = vpack.c.bf16 %v2470_v7, %v2469_v5 }
 0x3c0   : > { %3852 = vmatmul.mubr.msk.bf16.vlgmr.msra.gmra.mrb[32].mxu0 %vm347_vm2, %v2119_v22  ;;  %v2668_v22 = vpack.c.bf16 %v2654_v20, %v2653_v19 }
 0x3c1   : > { %3868 = vmatpush3.bf16.msra.mxu0 %v4171_v61  ;;  %3855 = vmatprep.mubr.msk.bf16.mxu0 %vm347_vm2, %v2120_v26  ;;  %v2465_v61 = vld [vmem:[#allocation4 + $0x42] sm:$0xff] }
 0x3c2   : > { %3869 = vmatprep.subr.bf16.mxu0 %v4172_v23  ;;  %v2477_v1 = vpack.c.bf16 %v2466_v62, %v2465_v61  ;;  %v2659_v26 = vld [vmem:[#allocation4 + $0x43] sm:$0xff]  ;;  %v2859_v61 = vld [vmem:[#allocation4 + $0x74] sm:$0xff] }
 0x3c3   : > { %v2671_v30 = vpack.c.bf16 %v2660_v27, %v2659_v26  ;;  %v2860_v62 = vld [vmem:[#allocation4 + $0x7c] sm:$0xff] }
 0x3c5   : > { %3870 = vmatpush3.bf16.msra.mxu0 %v4172_v23  ;;  %v4180_v23 = vld [vmem:[#allocation11 + $0x88] sm:$0xff]  }
 0x3c6   : > { %3871 = vmatprep.subr.bf16.mxu0 %v4173_v33 }
 0x3c8   : > { %3856 = vmatmul.mubr.msk.bf16.gmra.mrb[36].mxu0 %vm347_vm2, %v2121_v34  ;;  %v2663_v34 = vld [vmem:[#allocation4 + $0x63] sm:$0xff] }
 0x3c9   : > { %3859 = vmatprep.mubr.msk.bf16.mxu0 %vm347_vm2, %v2122_v35  ;;  %3872 = vmatpush3.bf16.msra.mxu0 %v4173_v33  ;;  %v2662_v33 = vld [vmem:[#allocation4 + $0x5b] sm:$0xff]  ;;  %v2664_v35 = vld [vmem:[#allocation4 + $0x6b] sm:$0xff] }
 0x3ca   : > { %3873 = vmatprep.subr.bf16.mxu0 %v4174_v38  ;;  %v2672_v36 = vpack.c.bf16 %v2662_v33, %v2661_v32  ;;  %v2673_v37 = vpack.c.bf16 %v2664_v35, %v2663_v34 }
 0x3cd   : > { %3874 = vmatpush3.bf16.msra.mxu0 %v4174_v38  ;;  %v2665_v38 = vld [vmem:[#allocation4 + $0x73] sm:$0xff] }
 0x3ce   : > { %3891 = vmatprep.subr.bf16.mxu0 %v4175_v45  ;;  %v2674_v41 = vpack.c.bf16 %v2666_v40, %v2665_v38 }
 0x3d0   : > { %3860 = vmatmul.mubr.msk.bf16.gmra.mrb[40].mxu0 %vm347_vm2, %v2123_v46  ;;  %v2850_v46 = vld [vmem:[#allocation4 + $0x2c] sm:$0xff] }
 0x3d1   : > { %3863 = vmatprep.mubr.msk.bf16.mxu0 %vm347_vm2, %v2124_v2  ;;  %v2847_v2 = vld [vmem:[#allocation4 + $0x14] sm:$0xff] }
 0x3d8   : > { %3864 = vmatmul.mubr.msk.bf16.gmra.mrb[44].mxu0 %vm347_vm2, %v2125_v49  ;;  %v2862_v49 = vpack.c.bf16 %v2848_v47, %v2847_v2 }
 0x3d9   : > { %3875 = vmatprep.mubr.msk.bf16.mxu0 %vm347_vm2, %v2473_v53  ;;  %v2853_v53 = vld [vmem:[#allocation4 + $0x44] sm:$0xff] }
 0x3da   : > { %v2865_v56 = vpack.c.bf16 %v2854_v54, %v2853_v53 }
 0x3e0   : > { %3876 = vmatmul.mubr.msk.bf16.vlgmr.msra.gmra.mrb[32].mxu0 %vm347_vm2, %v2474_v59  ;;  %v2857_v59 = vld [vmem:[#allocation4 + $0x64] sm:$0xff] }
 0x3e1   : > { %3892 = vmatpush3.bf16.msra.mxu0 %v4175_v45  ;;  %3879 = vmatprep.mubr.msk.bf16.mxu0 %vm347_vm2, %v2475_v58  ;;  %v2849_v45 = vld [vmem:[#allocation4 + $0x24] sm:$0xff]  ;;  %v2856_v58 = vld [vmem:[#allocation4 + $0x5c] sm:$0xff] }
 0x3e2   : > { %3893 = vmatprep.subr.bf16.mxu0 %v4176_v60  ;;  %v2863_v48 = vpack.c.bf16 %v2850_v46, %v2849_v45  ;;  %v2866_v51 = vpack.c.bf16 %v2856_v58, %v2855_v57 }
 0x3e5   : > { %3894 = vmatpush3.bf16.msra.mxu0 %v4176_v60  ;;  %v2858_v60 = vld [vmem:[#allocation4 + $0x6c] sm:$0xff] }
 0x3e6   : > { %3895 = vmatprep.subr.bf16.mxu0 %v4177_v63  ;;  %v2867_v39 = vpack.c.bf16 %v2858_v60, %v2857_v59 }
 0x3e8   : > { %3880 = vmatmul.mubr.msk.bf16.gmra.mrb[36].mxu0 %vm347_vm2, %v2476_v0 }
 0x3e9   : > { %3883 = vmatprep.mubr.msk.bf16.mxu0 %vm347_vm2, %v2477_v1  ;;  %3896 = vmatpush3.bf16.msra.mxu0 %v4177_v63  ;;  %v2868_v63 = vpack.c.bf16 %v2860_v62, %v2859_v61 }
 0x3ea   : > { %3897 = vmatprep.subr.bf16.mxu0 %v4178_v3 }
 0x3ed   : > { %3898 = vmatpush3.bf16.msra.mxu0 %v4178_v3 }
 0x3ee   : > { %3915 = vmatprep.subr.bf16.mxu0 %v4179_v8 }
 0x3f0   : > { %3884 = vmatmul.mubr.msk.bf16.gmra.mrb[40].mxu0 %vm347_vm2, %v2478_v10 }
 0x3f1   : > { %3887 = vmatprep.mubr.msk.bf16.mxu0 %vm347_vm2, %v2479_v9 }
 0x3f8   : > { %3888 = vmatmul.mubr.msk.bf16.gmra.mrb[44].mxu0 %vm347_vm2, %v2480_v14  ;;  %v3407_v14 = vld [vmem:[%s4933_s6] ss:$0 sm:$0xff] }
 0x3f9   : > { %3899 = vmatprep.mubr.msk.bf16.mxu0 %vm347_vm2, %v2667_v17 }
 0x400   : > { %3900 = vmatmul.mubr.msk.bf16.vlgmr.msra.gmra.mrb[32].mxu0 %vm347_vm2, %v2668_v22 }
 0x401   : > { %3916 = vmatpush3.bf16.msra.mxu0 %v4179_v8  ;;  %3903 = vmatprep.mubr.msk.bf16.mxu0 %vm347_vm2, %v2669_v21 }
 0x402   : > { %3917 = vmatprep.subr.bf16.mxu0 %v4180_v23 }
 0x405   : > { %3918 = vmatpush3.bf16.msra.mxu0 %v4180_v23 }
 0x406   : > { %3919 = vmatprep.subr.bf16.mxu0 %v4181_v28 }
 0x408   : > { %3904 = vmatmul.mubr.msk.bf16.gmra.mrb[36].mxu0 %vm347_vm2, %v2670_v29 }
 0x409   : > { %3907 = vmatprep.mubr.msk.bf16.mxu0 %vm347_vm2, %v2671_v30  ;;  %3920 = vmatpush3.bf16.msra.mxu0 %v4181_v28 }
 0x40a   : > { %3921 = vmatprep.subr.bf16.mxu0 %v4182_v31 }
 0x40d   : > { %3922 = vmatpush3.bf16.msra.mxu0 %v4182_v31 }
 0x410   : > { %3908 = vmatmul.mubr.msk.bf16.gmra.mrb[40].mxu0 %vm347_vm2, %v2672_v36 }
 0x411   : > { %3911 = vmatprep.mubr.msk.bf16.mxu0 %vm347_vm2, %v2673_v37 }
 0x418   : > { %3912 = vmatmul.mubr.msk.bf16.gmra.mrb[44].mxu0 %vm347_vm2, %v2674_v41 }
 0x419   : > { %3923 = vmatprep.mubr.msk.bf16.mxu0 %vm347_vm2, %v2861_v44 }
 0x420   : > { %3924 = vmatmul.mubr.msk.bf16.vlgmr.msra.gmra.mrb[32].mxu0 %vm347_vm2, %v2862_v49 }
 0x421   : > { %3927 = vmatprep.mubr.msk.bf16.mxu0 %vm347_vm2, %v2863_v48 }
 0x428   : > { %3928 = vmatmul.mubr.msk.bf16.gmra.mrb[36].mxu0 %vm347_vm2, %v2864_v55 }
 0x429   : > { %3931 = vmatprep.mubr.msk.bf16.mxu0 %vm347_vm2, %v2865_v56 }
 0x430   : > { %3932 = vmatmul.mubr.msk.bf16.gmra.mrb[40].mxu0 %vm347_vm2, %v2866_v51 }
 0x431   : > { %3935 = vmatprep.mubr.msk.bf16.mxu0 %vm347_vm2, %v2867_v39 }
 0x438   : > { %3936 = vmatmul.mubr.msk.bf16.gmra.mrb[44].mxu0 %vm347_vm2, %v2868_v63  ;;  %v3809_v0 = vpop.f32.mrb[88].mxu1 }
 0x439   : > { %v2048_v1 = vpop.f32.mrb[89].mxu1 }
 0x43a   : > { %v3810_v3 = vpop.f32.mrb[90].mxu1 }
 0x43b   : > { %v2050_v4 = vpop.f32.mrb[91].mxu1 }
 0x45d   : > { %v3813_v6 = vpop.f32.mrb[92].mxu1 }
 0x45e   : > { %v2060_v5 = vpop.f32.mrb[93].mxu1 }
 0x45f   : > { %v3814_v7 = vpop.f32.mrb[94].mxu1 }
 0x460   : > { %v2062_v8 = vpop.f32.mrb[95].mxu1 }
 0x46a   : > { %v3817_v10 = vpop.f32.mrb[96].mxu1 }
 0x46b   : > { %v2072_v9 = vpop.f32.mrb[97].mxu1 }
 0x46c   : > { %v3818_v11 = vpop.f32.mrb[98].mxu1 }
 0x46d   : > { %v2074_v13 = vpop.f32.mrb[99].mxu1 }
 0x4f3   : > { %v3925_v15 = vpop.f32.mrb[32].mxu0 }
 0x4f4   : > { %v2960_v16 = vpop.f32.mrb[33].mxu0  ;;  %v3048_v22 = vadd.f32 %v3925_v15, %v3407_v14 }
 0x4f5   : > { %v3926_v17 = vpop.f32.mrb[34].mxu0  ;;  %v3046_v12 = vadd.f32 %v3407_v14, %v2960_v16 }
 0x4f6   : > { %v2963_v18 = vpop.f32.mrb[35].mxu0  ;;  %v3049_v25 = vadd.f32 %v3926_v17, %v3407_v14 }
 0x4f7   : > { %3062 = vxpose.xlu1.b32.start [1/16] (narrow) %v3046_v12, 64  ;;  %v3047_v19 = vadd.f32 %v3407_v14, %v2963_v18 }
 0x4fb   : > { %3063 = vxpose.xlu1.b32.cont [2/16] (narrow) %v3047_v19, 64  ;;  %v3929_v20 = vpop.f32.mrb[36].mxu0 }
 0x4fc   : > { %v2976_v21 = vpop.f32.mrb[37].mxu0  ;;  %v3052_v34 = vadd.f32 %v3929_v20, %v3407_v14 }
 0x4fd   : > { %v3930_v23 = vpop.f32.mrb[38].mxu0  ;;  %v3050_v28 = vadd.f32 %v3407_v14, %v2976_v21 }
 0x4fe   : > { %v2979_v24 = vpop.f32.mrb[39].mxu0  ;;  %v3053_v37 = vadd.f32 %v3930_v23, %v3407_v14 }
 0x4ff   : > { %3064 = vxpose.xlu1.b32.cont [3/16] (narrow) %v3048_v22, 64  ;;  %v3051_v31 = vadd.f32 %v3407_v14, %v2979_v24 }
 0x503   : > { %3065 = vxpose.xlu1.b32.cont [4/16] (narrow) %v3049_v25, 64  ;;  %v3933_v26 = vpop.f32.mrb[40].mxu0 }
 0x504   : > { %v2992_v27 = vpop.f32.mrb[41].mxu0  ;;  %v3056_v41 = vadd.f32 %v3933_v26, %v3407_v14 }
 0x505   : > { %v3934_v29 = vpop.f32.mrb[42].mxu0  ;;  %v3054_v38 = vadd.f32 %v3407_v14, %v2992_v27 }
 0x506   : > { %v2995_v30 = vpop.f32.mrb[43].mxu0  ;;  %v3057_v42 = vadd.f32 %v3934_v29, %v3407_v14 }
 0x507   : > { %3066 = vxpose.xlu1.b32.cont [5/16] (narrow) %v3050_v28, 64  ;;  %v3055_v40 = vadd.f32 %v3407_v14, %v2995_v30 }
 0x50b   : > { %3067 = vxpose.xlu1.b32.cont [6/16] (narrow) %v3051_v31, 64  ;;  %v3937_v32 = vpop.f32.mrb[44].mxu0 }
 0x50c   : > { %v3008_v33 = vpop.f32.mrb[45].mxu0  ;;  %v3060_v45 = vadd.f32 %v3937_v32, %v3407_v14 }
 0x50d   : > { %v3938_v35 = vpop.f32.mrb[46].mxu0  ;;  %v3058_v43 = vadd.f32 %v3407_v14, %v3008_v33 }
 0x50e   : > { %v3011_v36 = vpop.f32.mrb[47].mxu0  ;;  %v3061_v46 = vadd.f32 %v3938_v35, %v3407_v14 }
 0x50f   : > { %3068 = vxpose.xlu1.b32.cont [7/16] (narrow) %v3052_v34, 64  ;;  %v3059_v44 = vadd.f32 %v3407_v14, %v3011_v36 }
 0x513   : > { %3069 = vxpose.xlu1.b32.cont [8/16] (narrow) %v3053_v37, 64 }
 0x517   : > { %3070 = vxpose.xlu1.b32.cont [9/16] (narrow) %v3054_v38, 64 }
 0x51b   : > { %3071 = vxpose.xlu1.b32.cont [10/16] (narrow) %v3055_v40, 64 }
 0x51f   : > { %3072 = vxpose.xlu1.b32.cont [11/16] (narrow) %v3056_v41, 64 }
 0x523   : > { %3073 = vxpose.xlu1.b32.cont [12/16] (narrow) %v3057_v42, 64 }
 0x527   : > { %3074 = vxpose.xlu1.b32.cont [13/16] (narrow) %v3058_v43, 64 }
 0x52b   : > { %3075 = vxpose.xlu1.b32.cont [14/16] (narrow) %v3059_v44, 64 }
 0x52f   : > { %3076 = vxpose.xlu1.b32.cont [15/16] (narrow) %v3060_v45, 64 }
 0x533   : > { %3077 = vxpose.xlu1.b32.end [16/16] (narrow) %v3061_v46, 64 }
 0x577   : > { %v3078_v2 = vpop.trf.xlu1 }
 0x578   : > { %3094 = vst [vmem:[%s340_s10] sm:$0xff] %v3078_v2 }
 0x57b   : > { %v3079_v47 = vpop.trf.xlu1 }
 0x57c   : > { %3095 = vst [vmem:[%s340_s10 + $0x8] sm:$0xff] %v3079_v47 }
 0x57f   : > { %v3080_v48 = vpop.trf.xlu1 }
 0x580   : > { %3096 = vst [vmem:[%s340_s10 + $0x10] sm:$0xff] %v3080_v48 }
 0x583   : > { %v3081_v49 = vpop.trf.xlu1 }
 0x584   : > { %3097 = vst [vmem:[%s340_s10 + $0x18] sm:$0xff] %v3081_v49 }
 0x587   : > { %v3082_v50 = vpop.trf.xlu1 }
 0x588   : > { %3098 = vst [vmem:[%s340_s10 + $0x20] sm:$0xff] %v3082_v50 }
 0x58b   : > { %v3083_v52 = vpop.trf.xlu1 }
 0x58c   : > { %3099 = vst [vmem:[%s340_s10 + $0x28] sm:$0xff] %v3083_v52 }
 0x58f   : > { %v3084_v53 = vpop.trf.xlu1 }
 0x590   : > { %3100 = vst [vmem:[%s340_s10 + $0x30] sm:$0xff] %v3084_v53 }
 0x593   : > { %v3085_v54 = vpop.trf.xlu1 }
 0x594   : > { %3101 = vst [vmem:[%s340_s10 + $0x38] sm:$0xff] %v3085_v54 }
 0x595   : > { %4310 = shalt.err (!%p4307_p4)
}
 0x596   : > { %s4311_s29 = scalar_lea.hbm %s4883_s15, 1024  ;;  %s4315_s16 = scalar_lea.hbm %s4934_s7, 2048 }
 0x597   : > { %p4312_p9 = scmp.ne.s32.totalorder %s4883_s15, %s4311_s29  ;;  %p4316_p11 = scmp.lt.u32.totalorder %s4883_s15, %s4934_s7 }
 0x598   : > { %p4317_p13 = scmp.lt.u32.totalorder %s4315_s16, %s4311_s29  ;;  %p4319_p10 = scmp.lt.u32.totalorder %s4311_s29, %s4883_s15 }
 0x599   : > { %p4313_p0 = pnand %p4312_p9, %p4579_p5 }
 0x59a   : > { %p4318_p6 = por %p4317_p13, %p4316_p11 }
 0x59b   : > { %p4314_p8 = pneg %p4313_p0 }
 0x59c   : > { %p4320_p3 = por %p4319_p10, %p4318_p6 }
 0x59e   : > { %p4321_p7 = pnand %p4320_p3, %p4314_p8 }
 0x5a0   : > { %4324 = shalt.err (!%p4321_p7)
}
 0x5a1   : > { %s4383_s17 = smov 128   ;;  %s4384_s13 = smov 8  }
 0x5a2   : > { %4058 = dma.vmem_to_hbm [thread:$0]  (%p4579_p5), %s4878_s12, 1024, %s4883_s15, %s3103_s20, %s4383_s17, %s4383_s17, %s4384_s13  }
 0x5a3 PF: > { %s4954_s30 = sld [smem:[#allocation18_spill]]  ;;  %s3131_s28 = sand.u32 1, %s4359_s24  }
 0x5a4   : > { %p4956_p1 = scmp.ge.s32.totalorder %s4371_s27, 2  ;;  %s3132_s9 = scalar_lea.sflag [#allocation7], %s3131_s28 }
 0x5a9   : > { %p4955_p12 = scmp.ne.s32.totalorder %s4954_s30, 0 }
 0x5ab   : > { %p4075_p2 = pnand %p4956_p1, %p4955_p12 }
 0x5ad   : > { %4354 = dma.done.wait (!%p4075_p2), %s3132_s9, 1024  }
 0x5ae   : > { %4356 = vsyncadd (!%p4075_p2), %s3132_s9, 4294966272  ;;  %p22_p4 = scmp.ge.s32.totalorder %s4565_s22, 4   ;;  %s4957_s24 = smov %s4363_s25 }
 0x5af   : > { %s4958_s25 = smov %s4367_s26  ;;  %s4959_s26 = smov %s4575_s18 }
 0x5b0   : > { %s4960_s27 = smov %s4565_s22  ;;  %24 = sbr.rel (!%p22_p4) target bundleno = 7 (0x7), region = 117 }
 0x5b7   :  { %3137 = vsyncpa [#allocation6], 1 }
 0x5b8   :  { %3139 = vsyncpa [#allocation6 + $0x1], 1 }
 0x5b9   :  { %3140 = vsyncpa [#allocation9], 1 }
 0x5ba   :  { %3141 = vsyncpa [#allocation12], 1 }
 0x5bb   :  { %3142 = vsyncpa [#allocation7], 1 }
 0x5bc   :  { %3144 = vsyncpa [#allocation7 + $0x1], 1 }

</bundles_post_ra>
